<compile_context>
chip_gen: v7x
topology: tpu7x:2x2x1
jax: 0.10.0
libtpu: 0.0.40
codegen_flags: <defaults>
</compile_context>

<pallas_src>
import jax
import jax.numpy as jnp
from jax import lax
from jax.experimental import pallas as pl
from jax.experimental.pallas import tpu as pltpu

KSIZE = 7
PAD = (KSIZE - 1) // 2          # 3
NTAP = 2 * KSIZE * KSIZE        # 98 taps (2 pooled channels x 7 x 7)


def _pick_tb(n, bytes_per_sample, budget=20 << 20):
    """Largest divisor of n such that double-buffered in+out blocks stay under `budget`."""
    max_tb = max(1, budget // max(1, 4 * bytes_per_sample))
    tb = 1
    for d in range(1, n + 1):
        if n % d == 0 and d <= max_tb:
            tb = d
    return tb


def _make_kernel(TB, C, H, W):
    HW = H * W
    OFF = PAD * W + PAD          # flat shift margin (51 for W=16)
    HWP = HW + 2 * OFF

    def kernel(x_ref, wm_ref, b_ref, o_ref, pmax_ref, pmean_ref):
        # x_ref:  (TB, C, HW) block (native dtype)
        # wm_ref: (NTAP, HW) f32 BN-folded conv weights, pre-multiplied with the 0/1
        #         row/col validity masks of each tap (exact zero padding).
        # b_ref:  SMEM (1,) folded bias
        # pmax_ref/pmean_ref: (TB, HWP) f32 flat pooled maps with OFF-wide zero margins

        # --- ChannelPool: max over C (native dtype), mean over C (f32 accumulation) ---
        xb = x_ref[...]                                        # loaded once, reused below
        max_c = jnp.max(xb, axis=1)                            # (TB, HW)
        mean_c = jnp.mean(xb, axis=1, dtype=jnp.float32)       # (TB, HW) f32

        # Margins must contain finite zeros: row-shifted taps read them directly.
        zero_margin = jnp.zeros((TB, OFF), jnp.float32)
        pmax_ref[:, :OFF] = zero_margin
        pmax_ref[:, OFF + HW:HWP] = zero_margin
        pmean_ref[:, :OFF] = zero_margin
        pmean_ref[:, OFF + HW:HWP] = zero_margin
        pmax_ref[:, OFF:OFF + HW] = max_c.astype(jnp.float32)
        pmean_ref[:, OFF:OFF + HW] = mean_c

        # --- 7x7 conv (2 -> 1) with BN folded in; zero padding via pre-masked weights ---
        acc = jnp.full((TB, HW), b_ref[0], dtype=jnp.float32)
        for c, src in enumerate((pmax_ref, pmean_ref)):
            for dy in range(KSIZE):
                base = OFF + (dy - PAD) * W
                for dx in range(KSIZE):
                    t = c * KSIZE * KSIZE + dy * KSIZE + dx
                    start = base + (dx - PAD)
                    tap = src[:, start:start + HW]             # (TB, HW) f32 shifted slice
                    acc = acc + tap * wm_ref[t:t + 1, :]       # FMA with pre-masked weight row

        # --- sigmoid gate, rescale x (single full-tensor multiply, lane-dense store) ---
        scale = jax.nn.sigmoid(acc).astype(o_ref.dtype)        # (TB, HW)
        o_ref[...] = (xb * scale[:, None, :]).astype(o_ref.dtype)

    return kernel


def spatial_gate(x, conv_w, bn_gamma, bn_beta, bn_mean, bn_var, eps=1e-5):
    """x: (N, C, H, W); conv_w: (1, 2, 7, 7); bn_*: (1,) (BatchNorm2d(1), inference mode)."""
    N, C, H, W = x.shape
    HW = H * W
    OFF = PAD * W + PAD
    HWP = HW + 2 * OFF

    # Fold inference BN into the (linear, bias-free) conv:
    #   y = gamma/sqrt(var+eps) * conv(x) + (beta - gamma*mean/sqrt(var+eps))
    bn_scale = bn_gamma / jnp.sqrt(bn_var + eps)
    w_folded = (conv_w * bn_scale[:, None, None, None])[0].astype(jnp.float32)   # (2, 7, 7)
    bias = (bn_beta - bn_scale * bn_mean).astype(jnp.float32)                    # (1,)

    # Pre-fold each tap's weight with its 0/1 row/col validity mask (exact zero padding),
    # so the kernel's inner loop is a pure FMA.
    idx = jnp.arange(HW, dtype=jnp.int32)
    row = idx // W
    col = idx % W
    wm_rows = []
    for c in range(2):
        for dy in range(KSIZE):
            ry = ((row + dy - PAD) >= 0) & ((row + dy - PAD) < H)
            for dx in range(KSIZE):
                cx = ((col + dx - PAD) >= 0) & ((col + dx - PAD) < W)
                wm_rows.append(w_folded[c, dy, dx] * (ry & cx).astype(jnp.float32))
    wmask = jnp.stack(wm_rows)                                                   # (98, HW) f32

    # Multi-sample blocks, sized so double-buffered in+out stays well under VMEM on all gens.
    # TODO(synk): a single sample with very large C*H*W may still exceed VMEM; would need H*W tiling.
    TB = _pick_tb(N, C * HW * x.dtype.itemsize)

    xf = x.reshape(N, C, HW)   # lane-dense view (free, contiguous reshape outside the kernel)
    kernel = _make_kernel(TB, C, H, W)

    out = pl.pallas_call(
        kernel,
        out_shape=jax.ShapeDtypeStruct((N, C, HW), x.dtype),
        grid_spec=pltpu.PrefetchScalarGridSpec(
            num_scalar_prefetch=0,
            grid=(N // TB,),
            in_specs=[
                pl.BlockSpec((TB, C, HW), lambda n: (n, 0, 0)),
                pl.BlockSpec((NTAP, HW), lambda n: (0, 0)),              # constant block: DMA'd once
                pl.BlockSpec(memory_space=pltpu.MemorySpace.SMEM),       # folded bias
            ],
            out_specs=pl.BlockSpec((TB, C, HW), lambda n: (n, 0, 0)),
            scratch_shapes=[
                pltpu.VMEM((TB, HWP), jnp.float32),   # flat max-pooled map with margins
                pltpu.VMEM((TB, HWP), jnp.float32),   # flat mean-pooled map with margins
            ],
        ),
        compiler_params=pltpu.CompilerParams(
            dimension_semantics=("parallel",),        # batch samples independent
            vmem_limit_bytes=48 * 1024 * 1024,
        ),
    )(xf, wmask, bias)
    return out.reshape(N, C, H, W)


def spatial_gate_ref(x, conv_w, bn_gamma, bn_beta, bn_mean, bn_var, eps=1e-5):
    """Pure-JAX reference matching the PyTorch forward."""
    pooled = jnp.concatenate(
        [jnp.max(x, axis=1, keepdims=True), jnp.mean(x, axis=1, keepdims=True)], axis=1)
    conv = lax.conv_general_dilated(
        pooled, conv_w, window_strides=(1, 1), padding=[(PAD, PAD), (PAD, PAD)],
        dimension_numbers=('NCHW', 'OIHW', 'NCHW'))
    bn = (conv - bn_mean[None, :, None, None]) / jnp.sqrt(bn_var[None, :, None, None] + eps)
    bn = bn * bn_gamma[None, :, None, None] + bn_beta[None, :, None, None]
    return x * jax.nn.sigmoid(bn)


if __name__ == "__main__":
    key = jax.random.PRNGKey(0)
    k_x, k_w = jax.random.split(key)

    N, C, H, W = 2, 4, 16, 16
    x = jax.random.normal(k_x, (N, C, H, W), dtype=jnp.float32)

    # Deterministic synthetic parameters (Conv2d(2,1,7,bias=False) + BatchNorm2d(1), inference).
    conv_w = 0.1 * jax.random.normal(k_w, (1, 2, KSIZE, KSIZE), dtype=jnp.float32)
    bn_gamma = jnp.ones((1,), jnp.float32)
    bn_beta = jnp.zeros((1,), jnp.float32)
    bn_mean = jnp.zeros((1,), jnp.float32)
    bn_var = jnp.ones((1,), jnp.float32)
    # TODO(synk): norm_cfg in the original ConvModule is configurable; fixed here to
    # inference-mode BatchNorm2d folded into the conv weights.

    out = jax.block_until_ready(spatial_gate(x, conv_w, bn_gamma, bn_beta, bn_mean, bn_var))
    ref = spatial_gate_ref(x, conv_w, bn_gamma, bn_beta, bn_mean, bn_var)
    assert out.shape == (N, C, H, W)
    assert jnp.allclose(out, ref, atol=1e-4, rtol=1e-4), float(jnp.max(jnp.abs(out - ref)))
    print("KERNEL_OK")
</pallas_src>

<mosaic_0001>
module attributes {stable_mosaic.version = 11 : i64} {
  func.func @kernel(%arg0: i32, %arg1: memref<2x4x256xf32, #tpu.memory_space<vmem>>, %arg2: memref<98x256xf32, #tpu.memory_space<vmem>>, %arg3: memref<1xf32, #tpu.memory_space<smem>>, %arg4: memref<2x4x256xf32, #tpu.memory_space<vmem>>, %arg5: memref<2x358xf32, #tpu.memory_space<vmem>>, %arg6: memref<2x358xf32, #tpu.memory_space<vmem>>) attributes {dimension_semantics = [#tpu.dimension_semantics<parallel>], iteration_bounds = array<i64: 1>, scalar_prefetch = 0 : i64, scratch_operands = 2 : i64, tpu.core_type = #tpu.core_type<tc>, window_params = [{transform_indices = @transform_0, window_bounds = array<i64: 2, 4, 256>}, {pipeline_mode = #tpu.pipeline_mode<synchronous>, transform_indices = @transform_1, window_bounds = array<i64: 98, 256>}, {transform_indices = @transform_2, window_bounds = array<i64: 1>}, {transform_indices = @transform_3, window_bounds = array<i64: 2, 4, 256>}]} {
    %c0 = arith.constant 0 : index
    %c0_0 = arith.constant 0 : index
    %c0_1 = arith.constant 0 : index
    %0 = vector.load %arg1[%c0, %c0_0, %c0_1] : memref<2x4x256xf32, #tpu.memory_space<vmem>>, vector<2x4x256xf32>
    %cst = arith.constant dense<0xFF800000> : vector<2x256xf32>
    %1 = vector.multi_reduction <maximumf>, %0, %cst [1] : vector<2x4x256xf32> to vector<2x256xf32>
    %cst_2 = arith.constant dense<0.000000e+00> : vector<2x256xf32>
    %2 = vector.multi_reduction <add>, %0, %cst_2 [1] : vector<2x4x256xf32> to vector<2x256xf32>
    %cst_3 = arith.constant 4.000000e+00 : f32
    %3 = vector.broadcast %cst_3 : f32 to vector<2x256xf32>
    %4 = arith.divf %2, %3 : vector<2x256xf32>
    %cst_4 = arith.constant 0.000000e+00 : f32
    %5 = vector.broadcast %cst_4 : f32 to vector<2x51xf32>
    %c0_5 = arith.constant 0 : index
    %c0_6 = arith.constant 0 : index
    %6 = vector.load %arg5[%c0_5, %c0_6] : memref<2x358xf32, #tpu.memory_space<vmem>>, vector<2x51xf32>
    tpu.vector_store %arg5[%c0_5, %c0_6], %5 {strides = array<i32>} : memref<2x358xf32, #tpu.memory_space<vmem>>, vector<2x51xf32>,
    %c0_7 = arith.constant 0 : index
    %c307 = arith.constant 307 : index
    %7 = vector.load %arg5[%c0_7, %c307] : memref<2x358xf32, #tpu.memory_space<vmem>>, vector<2x51xf32>
    tpu.vector_store %arg5[%c0_7, %c307], %5 {strides = array<i32>} : memref<2x358xf32, #tpu.memory_space<vmem>>, vector<2x51xf32>,
    %c0_8 = arith.constant 0 : index
    %c0_9 = arith.constant 0 : index
    %8 = vector.load %arg6[%c0_8, %c0_9] : memref<2x358xf32, #tpu.memory_space<vmem>>, vector<2x51xf32>
    tpu.vector_store %arg6[%c0_8, %c0_9], %5 {strides = array<i32>} : memref<2x358xf32, #tpu.memory_space<vmem>>, vector<2x51xf32>,
    %c0_10 = arith.constant 0 : index
    %c307_11 = arith.constant 307 : index
    %9 = vector.load %arg6[%c0_10, %c307_11] : memref<2x358xf32, #tpu.memory_space<vmem>>, vector<2x51xf32>
    tpu.vector_store %arg6[%c0_10, %c307_11], %5 {strides = array<i32>} : memref<2x358xf32, #tpu.memory_space<vmem>>, vector<2x51xf32>,
    %c0_12 = arith.constant 0 : index
    %c51 = arith.constant 51 : index
    %10 = vector.load %arg5[%c0_12, %c51] : memref<2x358xf32, #tpu.memory_space<vmem>>, vector<2x256xf32>
    tpu.vector_store %arg5[%c0_12, %c51], %1 {strides = array<i32>} : memref<2x358xf32, #tpu.memory_space<vmem>>, vector<2x256xf32>,
    %c0_13 = arith.constant 0 : index
    %c51_14 = arith.constant 51 : index
    %11 = vector.load %arg6[%c0_13, %c51_14] : memref<2x358xf32, #tpu.memory_space<vmem>>, vector<2x256xf32>
    tpu.vector_store %arg6[%c0_13, %c51_14], %4 {strides = array<i32>} : memref<2x358xf32, #tpu.memory_space<vmem>>, vector<2x256xf32>,
    %c0_15 = arith.constant 0 : index
    %12 = memref.load %arg3[%c0_15] : memref<1xf32, #tpu.memory_space<smem>>
    %13 = vector.broadcast %12 : f32 to vector<2x256xf32>
    %c0_16 = arith.constant 0 : index
    %c0_17 = arith.constant 0 : index
    %14 = vector.load %arg5[%c0_16, %c0_17] : memref<2x358xf32, #tpu.memory_space<vmem>>, vector<2x256xf32>
    %c0_18 = arith.constant 0 : index
    %c0_19 = arith.constant 0 : index
    %15 = vector.load %arg2[%c0_18, %c0_19] : memref<98x256xf32, #tpu.memory_space<vmem>>, vector<1x256xf32>
    %16 = vector.broadcast %15 : vector<1x256xf32> to vector<2x256xf32>
    %17 = arith.mulf %14, %16 : vector<2x256xf32>
    %18 = arith.addf %13, %17 : vector<2x256xf32>
    %c0_20 = arith.constant 0 : index
    %c1 = arith.constant 1 : index
    %19 = vector.load %arg5[%c0_20, %c1] : memref<2x358xf32, #tpu.memory_space<vmem>>, vector<2x256xf32>
    %c1_21 = arith.constant 1 : index
    %c0_22 = arith.constant 0 : index
    %20 = vector.load %arg2[%c1_21, %c0_22] : memref<98x256xf32, #tpu.memory_space<vmem>>, vector<1x256xf32>
    %21 = vector.broadcast %20 : vector<1x256xf32> to vector<2x256xf32>
    %22 = arith.mulf %19, %21 : vector<2x256xf32>
    %23 = arith.addf %18, %22 : vector<2x256xf32>
    %c0_23 = arith.constant 0 : index
    %c2 = arith.constant 2 : index
    %24 = vector.load %arg5[%c0_23, %c2] : memref<2x358xf32, #tpu.memory_space<vmem>>, vector<2x256xf32>
    %c2_24 = arith.constant 2 : index
    %c0_25 = arith.constant 0 : index
    %25 = vector.load %arg2[%c2_24, %c0_25] : memref<98x256xf32, #tpu.memory_space<vmem>>, vector<1x256xf32>
    %26 = vector.broadcast %25 : vector<1x256xf32> to vector<2x256xf32>
    %27 = arith.mulf %24, %26 : vector<2x256xf32>
    %28 = arith.addf %23, %27 : vector<2x256xf32>
    %c0_26 = arith.constant 0 : index
    %c3 = arith.constant 3 : index
    %29 = vector.load %arg5[%c0_26, %c3] : memref<2x358xf32, #tpu.memory_space<vmem>>, vector<2x256xf32>
    %c3_27 = arith.constant 3 : index
    %c0_28 = arith.constant 0 : index
    %30 = vector.load %arg2[%c3_27, %c0_28] : memref<98x256xf32, #tpu.memory_space<vmem>>, vector<1x256xf32>
    %31 = vector.broadcast %30 : vector<1x256xf32> to vector<2x256xf32>
    %32 = arith.mulf %29, %31 : vector<2x256xf32>
    %33 = arith.addf %28, %32 : vector<2x256xf32>
    %c0_29 = arith.constant 0 : index
    %c4 = arith.constant 4 : index
    %34 = vector.load %arg5[%c0_29, %c4] : memref<2x358xf32, #tpu.memory_space<vmem>>, vector<2x256xf32>
    %c4_30 = arith.constant 4 : index
    %c0_31 = arith.constant 0 : index
    %35 = vector.load %arg2[%c4_30, %c0_31] : memref<98x256xf32, #tpu.memory_space<vmem>>, vector<1x256xf32>
    %36 = vector.broadcast %35 : vector<1x256xf32> to vector<2x256xf32>
    %37 = arith.mulf %34, %36 : vector<2x256xf32>
    %38 = arith.addf %33, %37 : vector<2x256xf32>
    %c0_32 = arith.constant 0 : index
    %c5 = arith.constant 5 : index
    %39 = vector.load %arg5[%c0_32, %c5] : memref<2x358xf32, #tpu.memory_space<vmem>>, vector<2x256xf32>
    %c5_33 = arith.constant 5 : index
    %c0_34 = arith.constant 0 : index
    %40 = vector.load %arg2[%c5_33, %c0_34] : memref<98x256xf32, #tpu.memory_space<vmem>>, vector<1x256xf32>
    %41 = vector.broadcast %40 : vector<1x256xf32> to vector<2x256xf32>
    %42 = arith.mulf %39, %41 : vector<2x256xf32>
    %43 = arith.addf %38, %42 : vector<2x256xf32>
    %c0_35 = arith.constant 0 : index
    %c6 = arith.constant 6 : index
    %44 = vector.load %arg5[%c0_35, %c6] : memref<2x358xf32, #tpu.memory_space<vmem>>, vector<2x256xf32>
    %c6_36 = arith.constant 6 : index
    %c0_37 = arith.constant 0 : index
    %45 = vector.load %arg2[%c6_36, %c0_37] : memref<98x256xf32, #tpu.memory_space<vmem>>, vector<1x256xf32>
    %46 = vector.broadcast %45 : vector<1x256xf32> to vector<2x256xf32>
    %47 = arith.mulf %44, %46 : vector<2x256xf32>
    %48 = arith.addf %43, %47 : vector<2x256xf32>
    %c0_38 = arith.constant 0 : index
    %c16 = arith.constant 16 : index
    %49 = vector.load %arg5[%c0_38, %c16] : memref<2x358xf32, #tpu.memory_space<vmem>>, vector<2x256xf32>
    %c7 = arith.constant 7 : index
    %c0_39 = arith.constant 0 : index
    %50 = vector.load %arg2[%c7, %c0_39] : memref<98x256xf32, #tpu.memory_space<vmem>>, vector<1x256xf32>
    %51 = vector.broadcast %50 : vector<1x256xf32> to vector<2x256xf32>
    %52 = arith.mulf %49, %51 : vector<2x256xf32>
    %53 = arith.addf %48, %52 : vector<2x256xf32>
    %c0_40 = arith.constant 0 : index
    %c17 = arith.constant 17 : index
    %54 = vector.load %arg5[%c0_40, %c17] : memref<2x358xf32, #tpu.memory_space<vmem>>, vector<2x256xf32>
    %c8 = arith.constant 8 : index
    %c0_41 = arith.constant 0 : index
    %55 = vector.load %arg2[%c8, %c0_41] : memref<98x256xf32, #tpu.memory_space<vmem>>, vector<1x256xf32>
    %56 = vector.broadcast %55 : vector<1x256xf32> to vector<2x256xf32>
    %57 = arith.mulf %54, %56 : vector<2x256xf32>
    %58 = arith.addf %53, %57 : vector<2x256xf32>
    %c0_42 = arith.constant 0 : index
    %c18 = arith.constant 18 : index
    %59 = vector.load %arg5[%c0_42, %c18] : memref<2x358xf32, #tpu.memory_space<vmem>>, vector<2x256xf32>
    %c9 = arith.constant 9 : index
    %c0_43 = arith.constant 0 : index
    %60 = vector.load %arg2[%c9, %c0_43] : memref<98x256xf32, #tpu.memory_space<vmem>>, vector<1x256xf32>
    %61 = vector.broadcast %60 : vector<1x256xf32> to vector<2x256xf32>
    %62 = arith.mulf %59, %61 : vector<2x256xf32>
    %63 = arith.addf %58, %62 : vector<2x256xf32>
    %c0_44 = arith.constant 0 : index
    %c19 = arith.constant 19 : index
    %64 = vector.load %arg5[%c0_44, %c19] : memref<2x358xf32, #tpu.memory_space<vmem>>, vector<2x256xf32>
    %c10 = arith.constant 10 : index
    %c0_45 = arith.constant 0 : index
    %65 = vector.load %arg2[%c10, %c0_45] : memref<98x256xf32, #tpu.memory_space<vmem>>, vector<1x256xf32>
    %66 = vector.broadcast %65 : vector<1x256xf32> to vector<2x256xf32>
    %67 = arith.mulf %64, %66 : vector<2x256xf32>
    %68 = arith.addf %63, %67 : vector<2x256xf32>
    %c0_46 = arith.constant 0 : index
    %c20 = arith.constant 20 : index
    %69 = vector.load %arg5[%c0_46, %c20] : memref<2x358xf32, #tpu.memory_space<vmem>>, vector<2x256xf32>
    %c11 = arith.constant 11 : index
    %c0_47 = arith.constant 0 : index
    %70 = vector.load %arg2[%c11, %c0_47] : memref<98x256xf32, #tpu.memory_space<vmem>>, vector<1x256xf32>
    %71 = vector.broadcast %70 : vector<1x256xf32> to vector<2x256xf32>
    %72 = arith.mulf %69, %71 : vector<2x256xf32>
    %73 = arith.addf %68, %72 : vector<2x256xf32>
    %c0_48 = arith.constant 0 : index
    %c21 = arith.constant 21 : index
    %74 = vector.load %arg5[%c0_48, %c21] : memref<2x358xf32, #tpu.memory_space<vmem>>, vector<2x256xf32>
    %c12 = arith.constant 12 : index
    %c0_49 = arith.constant 0 : index
    %75 = vector.load %arg2[%c12, %c0_49] : memref<98x256xf32, #tpu.memory_space<vmem>>, vector<1x256xf32>
    %76 = vector.broadcast %75 : vector<1x256xf32> to vector<2x256xf32>
    %77 = arith.mulf %74, %76 : vector<2x256xf32>
    %78 = arith.addf %73, %77 : vector<2x256xf32>
    %c0_50 = arith.constant 0 : index
    %c22 = arith.constant 22 : index
    %79 = vector.load %arg5[%c0_50, %c22] : memref<2x358xf32, #tpu.memory_space<vmem>>, vector<2x256xf32>
    %c13 = arith.constant 13 : index
    %c0_51 = arith.constant 0 : index
    %80 = vector.load %arg2[%c13, %c0_51] : memref<98x256xf32, #tpu.memory_space<vmem>>, vector<1x256xf32>
    %81 = vector.broadcast %80 : vector<1x256xf32> to vector<2x256xf32>
    %82 = arith.mulf %79, %81 : vector<2x256xf32>
    %83 = arith.addf %78, %82 : vector<2x256xf32>
    %c0_52 = arith.constant 0 : index
    %c32 = arith.constant 32 : index
    %84 = vector.load %arg5[%c0_52, %c32] : memref<2x358xf32, #tpu.memory_space<vmem>>, vector<2x256xf32>
    %c14 = arith.constant 14 : index
    %c0_53 = arith.constant 0 : index
    %85 = vector.load %arg2[%c14, %c0_53] : memref<98x256xf32, #tpu.memory_space<vmem>>, vector<1x256xf32>
    %86 = vector.broadcast %85 : vector<1x256xf32> to vector<2x256xf32>
    %87 = arith.mulf %84, %86 : vector<2x256xf32>
    %88 = arith.addf %83, %87 : vector<2x256xf32>
    %c0_54 = arith.constant 0 : index
    %c33 = arith.constant 33 : index
    %89 = vector.load %arg5[%c0_54, %c33] : memref<2x358xf32, #tpu.memory_space<vmem>>, vector<2x256xf32>
    %c15 = arith.constant 15 : index
    %c0_55 = arith.constant 0 : index
    %90 = vector.load %arg2[%c15, %c0_55] : memref<98x256xf32, #tpu.memory_space<vmem>>, vector<1x256xf32>
    %91 = vector.broadcast %90 : vector<1x256xf32> to vector<2x256xf32>
    %92 = arith.mulf %89, %91 : vector<2x256xf32>
    %93 = arith.addf %88, %92 : vector<2x256xf32>
    %c0_56 = arith.constant 0 : index
    %c34 = arith.constant 34 : index
    %94 = vector.load %arg5[%c0_56, %c34] : memref<2x358xf32, #tpu.memory_space<vmem>>, vector<2x256xf32>
    %c16_57 = arith.constant 16 : index
    %c0_58 = arith.constant 0 : index
    %95 = vector.load %arg2[%c16_57, %c0_58] : memref<98x256xf32, #tpu.memory_space<vmem>>, vector<1x256xf32>
    %96 = vector.broadcast %95 : vector<1x256xf32> to vector<2x256xf32>
    %97 = arith.mulf %94, %96 : vector<2x256xf32>
    %98 = arith.addf %93, %97 : vector<2x256xf32>
    %c0_59 = arith.constant 0 : index
    %c35 = arith.constant 35 : index
    %99 = vector.load %arg5[%c0_59, %c35] : memref<2x358xf32, #tpu.memory_space<vmem>>, vector<2x256xf32>
    %c17_60 = arith.constant 17 : index
    %c0_61 = arith.constant 0 : index
    %100 = vector.load %arg2[%c17_60, %c0_61] : memref<98x256xf32, #tpu.memory_space<vmem>>, vector<1x256xf32>
    %101 = vector.broadcast %100 : vector<1x256xf32> to vector<2x256xf32>
    %102 = arith.mulf %99, %101 : vector<2x256xf32>
    %103 = arith.addf %98, %102 : vector<2x256xf32>
    %c0_62 = arith.constant 0 : index
    %c36 = arith.constant 36 : index
    %104 = vector.load %arg5[%c0_62, %c36] : memref<2x358xf32, #tpu.memory_space<vmem>>, vector<2x256xf32>
    %c18_63 = arith.constant 18 : index
    %c0_64 = arith.constant 0 : index
    %105 = vector.load %arg2[%c18_63, %c0_64] : memref<98x256xf32, #tpu.memory_space<vmem>>, vector<1x256xf32>
    %106 = vector.broadcast %105 : vector<1x256xf32> to vector<2x256xf32>
    %107 = arith.mulf %104, %106 : vector<2x256xf32>
    %108 = arith.addf %103, %107 : vector<2x256xf32>
    %c0_65 = arith.constant 0 : index
    %c37 = arith.constant 37 : index
    %109 = vector.load %arg5[%c0_65, %c37] : memref<2x358xf32, #tpu.memory_space<vmem>>, vector<2x256xf32>
    %c19_66 = arith.constant 19 : index
    %c0_67 = arith.constant 0 : index
    %110 = vector.load %arg2[%c19_66, %c0_67] : memref<98x256xf32, #tpu.memory_space<vmem>>, vector<1x256xf32>
    %111 = vector.broadcast %110 : vector<1x256xf32> to vector<2x256xf32>
    %112 = arith.mulf %109, %111 : vector<2x256xf32>
    %113 = arith.addf %108, %112 : vector<2x256xf32>
    %c0_68 = arith.constant 0 : index
    %c38 = arith.constant 38 : index
    %114 = vector.load %arg5[%c0_68, %c38] : memref<2x358xf32, #tpu.memory_space<vmem>>, vector<2x256xf32>
    %c20_69 = arith.constant 20 : index
    %c0_70 = arith.constant 0 : index
    %115 = vector.load %arg2[%c20_69, %c0_70] : memref<98x256xf32, #tpu.memory_space<vmem>>, vector<1x256xf32>
    %116 = vector.broadcast %115 : vector<1x256xf32> to vector<2x256xf32>
    %117 = arith.mulf %114, %116 : vector<2x256xf32>
    %118 = arith.addf %113, %117 : vector<2x256xf32>
    %c0_71 = arith.constant 0 : index
    %c48 = arith.constant 48 : index
    %119 = vector.load %arg5[%c0_71, %c48] : memref<2x358xf32, #tpu.memory_space<vmem>>, vector<2x256xf32>
    %c21_72 = arith.constant 21 : index
    %c0_73 = arith.constant 0 : index
    %120 = vector.load %arg2[%c21_72, %c0_73] : memref<98x256xf32, #tpu.memory_space<vmem>>, vector<1x256xf32>
    %121 = vector.broadcast %120 : vector<1x256xf32> to vector<2x256xf32>
    %122 = arith.mulf %119, %121 : vector<2x256xf32>
    %123 = arith.addf %118, %122 : vector<2x256xf32>
    %c0_74 = arith.constant 0 : index
    %c49 = arith.constant 49 : index
    %124 = vector.load %arg5[%c0_74, %c49] : memref<2x358xf32, #tpu.memory_space<vmem>>, vector<2x256xf32>
    %c22_75 = arith.constant 22 : index
    %c0_76 = arith.constant 0 : index
    %125 = vector.load %arg2[%c22_75, %c0_76] : memref<98x256xf32, #tpu.memory_space<vmem>>, vector<1x256xf32>
    %126 = vector.broadcast %125 : vector<1x256xf32> to vector<2x256xf32>
    %127 = arith.mulf %124, %126 : vector<2x256xf32>
    %128 = arith.addf %123, %127 : vector<2x256xf32>
    %c0_77 = arith.constant 0 : index
    %c50 = arith.constant 50 : index
    %129 = vector.load %arg5[%c0_77, %c50] : memref<2x358xf32, #tpu.memory_space<vmem>>, vector<2x256xf32>
    %c23 = arith.constant 23 : index
    %c0_78 = arith.constant 0 : index
    %130 = vector.load %arg2[%c23, %c0_78] : memref<98x256xf32, #tpu.memory_space<vmem>>, vector<1x256xf32>
    %131 = vector.broadcast %130 : vector<1x256xf32> to vector<2x256xf32>
    %132 = arith.mulf %129, %131 : vector<2x256xf32>
    %133 = arith.addf %128, %132 : vector<2x256xf32>
    %c0_79 = arith.constant 0 : index
    %c51_80 = arith.constant 51 : index
    %134 = vector.load %arg5[%c0_79, %c51_80] : memref<2x358xf32, #tpu.memory_space<vmem>>, vector<2x256xf32>
    %c24 = arith.constant 24 : index
    %c0_81 = arith.constant 0 : index
    %135 = vector.load %arg2[%c24, %c0_81] : memref<98x256xf32, #tpu.memory_space<vmem>>, vector<1x256xf32>
    %136 = vector.broadcast %135 : vector<1x256xf32> to vector<2x256xf32>
    %137 = arith.mulf %134, %136 : vector<2x256xf32>
    %138 = arith.addf %133, %137 : vector<2x256xf32>
    %c0_82 = arith.constant 0 : index
    %c52 = arith.constant 52 : index
    %139 = vector.load %arg5[%c0_82, %c52] : memref<2x358xf32, #tpu.memory_space<vmem>>, vector<2x256xf32>
    %c25 = arith.constant 25 : index
    %c0_83 = arith.constant 0 : index
    %140 = vector.load %arg2[%c25, %c0_83] : memref<98x256xf32, #tpu.memory_space<vmem>>, vector<1x256xf32>
    %141 = vector.broadcast %140 : vector<1x256xf32> to vector<2x256xf32>
    %142 = arith.mulf %139, %141 : vector<2x256xf32>
    %143 = arith.addf %138, %142 : vector<2x256xf32>
    %c0_84 = arith.constant 0 : index
    %c53 = arith.constant 53 : index
    %144 = vector.load %arg5[%c0_84, %c53] : memref<2x358xf32, #tpu.memory_space<vmem>>, vector<2x256xf32>
    %c26 = arith.constant 26 : index
    %c0_85 = arith.constant 0 : index
    %145 = vector.load %arg2[%c26, %c0_85] : memref<98x256xf32, #tpu.memory_space<vmem>>, vector<1x256xf32>
    %146 = vector.broadcast %145 : vector<1x256xf32> to vector<2x256xf32>
    %147 = arith.mulf %144, %146 : vector<2x256xf32>
    %148 = arith.addf %143, %147 : vector<2x256xf32>
    %c0_86 = arith.constant 0 : index
    %c54 = arith.constant 54 : index
    %149 = vector.load %arg5[%c0_86, %c54] : memref<2x358xf32, #tpu.memory_space<vmem>>, vector<2x256xf32>
    %c27 = arith.constant 27 : index
    %c0_87 = arith.constant 0 : index
    %150 = vector.load %arg2[%c27, %c0_87] : memref<98x256xf32, #tpu.memory_space<vmem>>, vector<1x256xf32>
    %151 = vector.broadcast %150 : vector<1x256xf32> to vector<2x256xf32>
    %152 = arith.mulf %149, %151 : vector<2x256xf32>
    %153 = arith.addf %148, %152 : vector<2x256xf32>
    %c0_88 = arith.constant 0 : index
    %c64 = arith.constant 64 : index
    %154 = vector.load %arg5[%c0_88, %c64] : memref<2x358xf32, #tpu.memory_space<vmem>>, vector<2x256xf32>
    %c28 = arith.constant 28 : index
    %c0_89 = arith.constant 0 : index
    %155 = vector.load %arg2[%c28, %c0_89] : memref<98x256xf32, #tpu.memory_space<vmem>>, vector<1x256xf32>
    %156 = vector.broadcast %155 : vector<1x256xf32> to vector<2x256xf32>
    %157 = arith.mulf %154, %156 : vector<2x256xf32>
    %158 = arith.addf %153, %157 : vector<2x256xf32>
    %c0_90 = arith.constant 0 : index
    %c65 = arith.constant 65 : index
    %159 = vector.load %arg5[%c0_90, %c65] : memref<2x358xf32, #tpu.memory_space<vmem>>, vector<2x256xf32>
    %c29 = arith.constant 29 : index
    %c0_91 = arith.constant 0 : index
    %160 = vector.load %arg2[%c29, %c0_91] : memref<98x256xf32, #tpu.memory_space<vmem>>, vector<1x256xf32>
    %161 = vector.broadcast %160 : vector<1x256xf32> to vector<2x256xf32>
    %162 = arith.mulf %159, %161 : vector<2x256xf32>
    %163 = arith.addf %158, %162 : vector<2x256xf32>
    %c0_92 = arith.constant 0 : index
    %c66 = arith.constant 66 : index
    %164 = vector.load %arg5[%c0_92, %c66] : memref<2x358xf32, #tpu.memory_space<vmem>>, vector<2x256xf32>
    %c30 = arith.constant 30 : index
    %c0_93 = arith.constant 0 : index
    %165 = vector.load %arg2[%c30, %c0_93] : memref<98x256xf32, #tpu.memory_space<vmem>>, vector<1x256xf32>
    %166 = vector.broadcast %165 : vector<1x256xf32> to vector<2x256xf32>
    %167 = arith.mulf %164, %166 : vector<2x256xf32>
    %168 = arith.addf %163, %167 : vector<2x256xf32>
    %c0_94 = arith.constant 0 : index
    %c67 = arith.constant 67 : index
    %169 = vector.load %arg5[%c0_94, %c67] : memref<2x358xf32, #tpu.memory_space<vmem>>, vector<2x256xf32>
    %c31 = arith.constant 31 : index
    %c0_95 = arith.constant 0 : index
    %170 = vector.load %arg2[%c31, %c0_95] : memref<98x256xf32, #tpu.memory_space<vmem>>, vector<1x256xf32>
    %171 = vector.broadcast %170 : vector<1x256xf32> to vector<2x256xf32>
    %172 = arith.mulf %169, %171 : vector<2x256xf32>
    %173 = arith.addf %168, %172 : vector<2x256xf32>
    %c0_96 = arith.constant 0 : index
    %c68 = arith.constant 68 : index
    %174 = vector.load %arg5[%c0_96, %c68] : memref<2x358xf32, #tpu.memory_space<vmem>>, vector<2x256xf32>
    %c32_97 = arith.constant 32 : index
    %c0_98 = arith.constant 0 : index
    %175 = vector.load %arg2[%c32_97, %c0_98] : memref<98x256xf32, #tpu.memory_space<vmem>>, vector<1x256xf32>
    %176 = vector.broadcast %175 : vector<1x256xf32> to vector<2x256xf32>
    %177 = arith.mulf %174, %176 : vector<2x256xf32>
    %178 = arith.addf %173, %177 : vector<2x256xf32>
    %c0_99 = arith.constant 0 : index
    %c69 = arith.constant 69 : index
    %179 = vector.load %arg5[%c0_99, %c69] : memref<2x358xf32, #tpu.memory_space<vmem>>, vector<2x256xf32>
    %c33_100 = arith.constant 33 : index
    %c0_101 = arith.constant 0 : index
    %180 = vector.load %arg2[%c33_100, %c0_101] : memref<98x256xf32, #tpu.memory_space<vmem>>, vector<1x256xf32>
    %181 = vector.broadcast %180 : vector<1x256xf32> to vector<2x256xf32>
    %182 = arith.mulf %179, %181 : vector<2x256xf32>
    %183 = arith.addf %178, %182 : vector<2x256xf32>
    %c0_102 = arith.constant 0 : index
    %c70 = arith.constant 70 : index
    %184 = vector.load %arg5[%c0_102, %c70] : memref<2x358xf32, #tpu.memory_space<vmem>>, vector<2x256xf32>
    %c34_103 = arith.constant 34 : index
    %c0_104 = arith.constant 0 : index
    %185 = vector.load %arg2[%c34_103, %c0_104] : memref<98x256xf32, #tpu.memory_space<vmem>>, vector<1x256xf32>
    %186 = vector.broadcast %185 : vector<1x256xf32> to vector<2x256xf32>
    %187 = arith.mulf %184, %186 : vector<2x256xf32>
    %188 = arith.addf %183, %187 : vector<2x256xf32>
    %c0_105 = arith.constant 0 : index
    %c80 = arith.constant 80 : index
    %189 = vector.load %arg5[%c0_105, %c80] : memref<2x358xf32, #tpu.memory_space<vmem>>, vector<2x256xf32>
    %c35_106 = arith.constant 35 : index
    %c0_107 = arith.constant 0 : index
    %190 = vector.load %arg2[%c35_106, %c0_107] : memref<98x256xf32, #tpu.memory_space<vmem>>, vector<1x256xf32>
    %191 = vector.broadcast %190 : vector<1x256xf32> to vector<2x256xf32>
    %192 = arith.mulf %189, %191 : vector<2x256xf32>
    %193 = arith.addf %188, %192 : vector<2x256xf32>
    %c0_108 = arith.constant 0 : index
    %c81 = arith.constant 81 : index
    %194 = vector.load %arg5[%c0_108, %c81] : memref<2x358xf32, #tpu.memory_space<vmem>>, vector<2x256xf32>
    %c36_109 = arith.constant 36 : index
    %c0_110 = arith.constant 0 : index
    %195 = vector.load %arg2[%c36_109, %c0_110] : memref<98x256xf32, #tpu.memory_space<vmem>>, vector<1x256xf32>
    %196 = vector.broadcast %195 : vector<1x256xf32> to vector<2x256xf32>
    %197 = arith.mulf %194, %196 : vector<2x256xf32>
    %198 = arith.addf %193, %197 : vector<2x256xf32>
    %c0_111 = arith.constant 0 : index
    %c82 = arith.constant 82 : index
    %199 = vector.load %arg5[%c0_111, %c82] : memref<2x358xf32, #tpu.memory_space<vmem>>, vector<2x256xf32>
    %c37_112 = arith.constant 37 : index
    %c0_113 = arith.constant 0 : index
    %200 = vector.load %arg2[%c37_112, %c0_113] : memref<98x256xf32, #tpu.memory_space<vmem>>, vector<1x256xf32>
    %201 = vector.broadcast %200 : vector<1x256xf32> to vector<2x256xf32>
    %202 = arith.mulf %199, %201 : vector<2x256xf32>
    %203 = arith.addf %198, %202 : vector<2x256xf32>
    %c0_114 = arith.constant 0 : index
    %c83 = arith.constant 83 : index
    %204 = vector.load %arg5[%c0_114, %c83] : memref<2x358xf32, #tpu.memory_space<vmem>>, vector<2x256xf32>
    %c38_115 = arith.constant 38 : index
    %c0_116 = arith.constant 0 : index
    %205 = vector.load %arg2[%c38_115, %c0_116] : memref<98x256xf32, #tpu.memory_space<vmem>>, vector<1x256xf32>
    %206 = vector.broadcast %205 : vector<1x256xf32> to vector<2x256xf32>
    %207 = arith.mulf %204, %206 : vector<2x256xf32>
    %208 = arith.addf %203, %207 : vector<2x256xf32>
    %c0_117 = arith.constant 0 : index
    %c84 = arith.constant 84 : index
    %209 = vector.load %arg5[%c0_117, %c84] : memref<2x358xf32, #tpu.memory_space<vmem>>, vector<2x256xf32>
    %c39 = arith.constant 39 : index
    %c0_118 = arith.constant 0 : index
    %210 = vector.load %arg2[%c39, %c0_118] : memref<98x256xf32, #tpu.memory_space<vmem>>, vector<1x256xf32>
    %211 = vector.broadcast %210 : vector<1x256xf32> to vector<2x256xf32>
    %212 = arith.mulf %209, %211 : vector<2x256xf32>
    %213 = arith.addf %208, %212 : vector<2x256xf32>
    %c0_119 = arith.constant 0 : index
    %c85 = arith.constant 85 : index
    %214 = vector.load %arg5[%c0_119, %c85] : memref<2x358xf32, #tpu.memory_space<vmem>>, vector<2x256xf32>
    %c40 = arith.constant 40 : index
    %c0_120 = arith.constant 0 : index
    %215 = vector.load %arg2[%c40, %c0_120] : memref<98x256xf32, #tpu.memory_space<vmem>>, vector<1x256xf32>
    %216 = vector.broadcast %215 : vector<1x256xf32> to vector<2x256xf32>
    %217 = arith.mulf %214, %216 : vector<2x256xf32>
    %218 = arith.addf %213, %217 : vector<2x256xf32>
    %c0_121 = arith.constant 0 : index
    %c86 = arith.constant 86 : index
    %219 = vector.load %arg5[%c0_121, %c86] : memref<2x358xf32, #tpu.memory_space<vmem>>, vector<2x256xf32>
    %c41 = arith.constant 41 : index
    %c0_122 = arith.constant 0 : index
    %220 = vector.load %arg2[%c41, %c0_122] : memref<98x256xf32, #tpu.memory_space<vmem>>, vector<1x256xf32>
    %221 = vector.broadcast %220 : vector<1x256xf32> to vector<2x256xf32>
    %222 = arith.mulf %219, %221 : vector<2x256xf32>
    %223 = arith.addf %218, %222 : vector<2x256xf32>
    %c0_123 = arith.constant 0 : index
    %c96 = arith.constant 96 : index
    %224 = vector.load %arg5[%c0_123, %c96] : memref<2x358xf32, #tpu.memory_space<vmem>>, vector<2x256xf32>
    %c42 = arith.constant 42 : index
    %c0_124 = arith.constant 0 : index
    %225 = vector.load %arg2[%c42, %c0_124] : memref<98x256xf32, #tpu.memory_space<vmem>>, vector<1x256xf32>
    %226 = vector.broadcast %225 : vector<1x256xf32> to vector<2x256xf32>
    %227 = arith.mulf %224, %226 : vector<2x256xf32>
    %228 = arith.addf %223, %227 : vector<2x256xf32>
    %c0_125 = arith.constant 0 : index
    %c97 = arith.constant 97 : index
    %229 = vector.load %arg5[%c0_125, %c97] : memref<2x358xf32, #tpu.memory_space<vmem>>, vector<2x256xf32>
    %c43 = arith.constant 43 : index
    %c0_126 = arith.constant 0 : index
    %230 = vector.load %arg2[%c43, %c0_126] : memref<98x256xf32, #tpu.memory_space<vmem>>, vector<1x256xf32>
    %231 = vector.broadcast %230 : vector<1x256xf32> to vector<2x256xf32>
    %232 = arith.mulf %229, %231 : vector<2x256xf32>
    %233 = arith.addf %228, %232 : vector<2x256xf32>
    %c0_127 = arith.constant 0 : index
    %c98 = arith.constant 98 : index
    %234 = vector.load %arg5[%c0_127, %c98] : memref<2x358xf32, #tpu.memory_space<vmem>>, vector<2x256xf32>
    %c44 = arith.constant 44 : index
    %c0_128 = arith.constant 0 : index
    %235 = vector.load %arg2[%c44, %c0_128] : memref<98x256xf32, #tpu.memory_space<vmem>>, vector<1x256xf32>
    %236 = vector.broadcast %235 : vector<1x256xf32> to vector<2x256xf32>
    %237 = arith.mulf %234, %236 : vector<2x256xf32>
    %238 = arith.addf %233, %237 : vector<2x256xf32>
    %c0_129 = arith.constant 0 : index
    %c99 = arith.constant 99 : index
    %239 = vector.load %arg5[%c0_129, %c99] : memref<2x358xf32, #tpu.memory_space<vmem>>, vector<2x256xf32>
    %c45 = arith.constant 45 : index
    %c0_130 = arith.constant 0 : index
    %240 = vector.load %arg2[%c45, %c0_130] : memref<98x256xf32, #tpu.memory_space<vmem>>, vector<1x256xf32>
    %241 = vector.broadcast %240 : vector<1x256xf32> to vector<2x256xf32>
    %242 = arith.mulf %239, %241 : vector<2x256xf32>
    %243 = arith.addf %238, %242 : vector<2x256xf32>
    %c0_131 = arith.constant 0 : index
    %c100 = arith.constant 100 : index
    %244 = vector.load %arg5[%c0_131, %c100] : memref<2x358xf32, #tpu.memory_space<vmem>>, vector<2x256xf32>
    %c46 = arith.constant 46 : index
    %c0_132 = arith.constant 0 : index
    %245 = vector.load %arg2[%c46, %c0_132] : memref<98x256xf32, #tpu.memory_space<vmem>>, vector<1x256xf32>
    %246 = vector.broadcast %245 : vector<1x256xf32> to vector<2x256xf32>
    %247 = arith.mulf %244, %246 : vector<2x256xf32>
    %248 = arith.addf %243, %247 : vector<2x256xf32>
    %c0_133 = arith.constant 0 : index
    %c101 = arith.constant 101 : index
    %249 = vector.load %arg5[%c0_133, %c101] : memref<2x358xf32, #tpu.memory_space<vmem>>, vector<2x256xf32>
    %c47 = arith.constant 47 : index
    %c0_134 = arith.constant 0 : index
    %250 = vector.load %arg2[%c47, %c0_134] : memref<98x256xf32, #tpu.memory_space<vmem>>, vector<1x256xf32>
    %251 = vector.broadcast %250 : vector<1x256xf32> to vector<2x256xf32>
    %252 = arith.mulf %249, %251 : vector<2x256xf32>
    %253 = arith.addf %248, %252 : vector<2x256xf32>
    %c0_135 = arith.constant 0 : index
    %c102 = arith.constant 102 : index
    %254 = vector.load %arg5[%c0_135, %c102] : memref<2x358xf32, #tpu.memory_space<vmem>>, vector<2x256xf32>
    %c48_136 = arith.constant 48 : index
    %c0_137 = arith.constant 0 : index
    %255 = vector.load %arg2[%c48_136, %c0_137] : memref<98x256xf32, #tpu.memory_space<vmem>>, vector<1x256xf32>
    %256 = vector.broadcast %255 : vector<1x256xf32> to vector<2x256xf32>
    %257 = arith.mulf %254, %256 : vector<2x256xf32>
    %258 = arith.addf %253, %257 : vector<2x256xf32>
    %c0_138 = arith.constant 0 : index
    %c0_139 = arith.constant 0 : index
    %259 = vector.load %arg6[%c0_138, %c0_139] : memref<2x358xf32, #tpu.memory_space<vmem>>, vector<2x256xf32>
    %c49_140 = arith.constant 49 : index
    %c0_141 = arith.constant 0 : index
    %260 = vector.load %arg2[%c49_140, %c0_141] : memref<98x256xf32, #tpu.memory_space<vmem>>, vector<1x256xf32>
    %261 = vector.broadcast %260 : vector<1x256xf32> to vector<2x256xf32>
    %262 = arith.mulf %259, %261 : vector<2x256xf32>
    %263 = arith.addf %258, %262 : vector<2x256xf32>
    %c0_142 = arith.constant 0 : index
    %c1_143 = arith.constant 1 : index
    %264 = vector.load %arg6[%c0_142, %c1_143] : memref<2x358xf32, #tpu.memory_space<vmem>>, vector<2x256xf32>
    %c50_144 = arith.constant 50 : index
    %c0_145 = arith.constant 0 : index
    %265 = vector.load %arg2[%c50_144, %c0_145] : memref<98x256xf32, #tpu.memory_space<vmem>>, vector<1x256xf32>
    %266 = vector.broadcast %265 : vector<1x256xf32> to vector<2x256xf32>
    %267 = arith.mulf %264, %266 : vector<2x256xf32>
    %268 = arith.addf %263, %267 : vector<2x256xf32>
    %c0_146 = arith.constant 0 : index
    %c2_147 = arith.constant 2 : index
    %269 = vector.load %arg6[%c0_146, %c2_147] : memref<2x358xf32, #tpu.memory_space<vmem>>, vector<2x256xf32>
    %c51_148 = arith.constant 51 : index
    %c0_149 = arith.constant 0 : index
    %270 = vector.load %arg2[%c51_148, %c0_149] : memref<98x256xf32, #tpu.memory_space<vmem>>, vector<1x256xf32>
    %271 = vector.broadcast %270 : vector<1x256xf32> to vector<2x256xf32>
    %272 = arith.mulf %269, %271 : vector<2x256xf32>
    %273 = arith.addf %268, %272 : vector<2x256xf32>
    %c0_150 = arith.constant 0 : index
    %c3_151 = arith.constant 3 : index
    %274 = vector.load %arg6[%c0_150, %c3_151] : memref<2x358xf32, #tpu.memory_space<vmem>>, vector<2x256xf32>
    %c52_152 = arith.constant 52 : index
    %c0_153 = arith.constant 0 : index
    %275 = vector.load %arg2[%c52_152, %c0_153] : memref<98x256xf32, #tpu.memory_space<vmem>>, vector<1x256xf32>
    %276 = vector.broadcast %275 : vector<1x256xf32> to vector<2x256xf32>
    %277 = arith.mulf %274, %276 : vector<2x256xf32>
    %278 = arith.addf %273, %277 : vector<2x256xf32>
    %c0_154 = arith.constant 0 : index
    %c4_155 = arith.constant 4 : index
    %279 = vector.load %arg6[%c0_154, %c4_155] : memref<2x358xf32, #tpu.memory_space<vmem>>, vector<2x256xf32>
    %c53_156 = arith.constant 53 : index
    %c0_157 = arith.constant 0 : index
    %280 = vector.load %arg2[%c53_156, %c0_157] : memref<98x256xf32, #tpu.memory_space<vmem>>, vector<1x256xf32>
    %281 = vector.broadcast %280 : vector<1x256xf32> to vector<2x256xf32>
    %282 = arith.mulf %279, %281 : vector<2x256xf32>
    %283 = arith.addf %278, %282 : vector<2x256xf32>
    %c0_158 = arith.constant 0 : index
    %c5_159 = arith.constant 5 : index
    %284 = vector.load %arg6[%c0_158, %c5_159] : memref<2x358xf32, #tpu.memory_space<vmem>>, vector<2x256xf32>
    %c54_160 = arith.constant 54 : index
    %c0_161 = arith.constant 0 : index
    %285 = vector.load %arg2[%c54_160, %c0_161] : memref<98x256xf32, #tpu.memory_space<vmem>>, vector<1x256xf32>
    %286 = vector.broadcast %285 : vector<1x256xf32> to vector<2x256xf32>
    %287 = arith.mulf %284, %286 : vector<2x256xf32>
    %288 = arith.addf %283, %287 : vector<2x256xf32>
    %c0_162 = arith.constant 0 : index
    %c6_163 = arith.constant 6 : index
    %289 = vector.load %arg6[%c0_162, %c6_163] : memref<2x358xf32, #tpu.memory_space<vmem>>, vector<2x256xf32>
    %c55 = arith.constant 55 : index
    %c0_164 = arith.constant 0 : index
    %290 = vector.load %arg2[%c55, %c0_164] : memref<98x256xf32, #tpu.memory_space<vmem>>, vector<1x256xf32>
    %291 = vector.broadcast %290 : vector<1x256xf32> to vector<2x256xf32>
    %292 = arith.mulf %289, %291 : vector<2x256xf32>
    %293 = arith.addf %288, %292 : vector<2x256xf32>
    %c0_165 = arith.constant 0 : index
    %c16_166 = arith.constant 16 : index
    %294 = vector.load %arg6[%c0_165, %c16_166] : memref<2x358xf32, #tpu.memory_space<vmem>>, vector<2x256xf32>
    %c56 = arith.constant 56 : index
    %c0_167 = arith.constant 0 : index
    %295 = vector.load %arg2[%c56, %c0_167] : memref<98x256xf32, #tpu.memory_space<vmem>>, vector<1x256xf32>
    %296 = vector.broadcast %295 : vector<1x256xf32> to vector<2x256xf32>
    %297 = arith.mulf %294, %296 : vector<2x256xf32>
    %298 = arith.addf %293, %297 : vector<2x256xf32>
    %c0_168 = arith.constant 0 : index
    %c17_169 = arith.constant 17 : index
    %299 = vector.load %arg6[%c0_168, %c17_169] : memref<2x358xf32, #tpu.memory_space<vmem>>, vector<2x256xf32>
    %c57 = arith.constant 57 : index
    %c0_170 = arith.constant 0 : index
    %300 = vector.load %arg2[%c57, %c0_170] : memref<98x256xf32, #tpu.memory_space<vmem>>, vector<1x256xf32>
    %301 = vector.broadcast %300 : vector<1x256xf32> to vector<2x256xf32>
    %302 = arith.mulf %299, %301 : vector<2x256xf32>
    %303 = arith.addf %298, %302 : vector<2x256xf32>
    %c0_171 = arith.constant 0 : index
    %c18_172 = arith.constant 18 : index
    %304 = vector.load %arg6[%c0_171, %c18_172] : memref<2x358xf32, #tpu.memory_space<vmem>>, vector<2x256xf32>
    %c58 = arith.constant 58 : index
    %c0_173 = arith.constant 0 : index
    %305 = vector.load %arg2[%c58, %c0_173] : memref<98x256xf32, #tpu.memory_space<vmem>>, vector<1x256xf32>
    %306 = vector.broadcast %305 : vector<1x256xf32> to vector<2x256xf32>
    %307 = arith.mulf %304, %306 : vector<2x256xf32>
    %308 = arith.addf %303, %307 : vector<2x256xf32>
    %c0_174 = arith.constant 0 : index
    %c19_175 = arith.constant 19 : index
    %309 = vector.load %arg6[%c0_174, %c19_175] : memref<2x358xf32, #tpu.memory_space<vmem>>, vector<2x256xf32>
    %c59 = arith.constant 59 : index
    %c0_176 = arith.constant 0 : index
    %310 = vector.load %arg2[%c59, %c0_176] : memref<98x256xf32, #tpu.memory_space<vmem>>, vector<1x256xf32>
    %311 = vector.broadcast %310 : vector<1x256xf32> to vector<2x256xf32>
    %312 = arith.mulf %309, %311 : vector<2x256xf32>
    %313 = arith.addf %308, %312 : vector<2x256xf32>
    %c0_177 = arith.constant 0 : index
    %c20_178 = arith.constant 20 : index
    %314 = vector.load %arg6[%c0_177, %c20_178] : memref<2x358xf32, #tpu.memory_space<vmem>>, vector<2x256xf32>
    %c60 = arith.constant 60 : index
    %c0_179 = arith.constant 0 : index
    %315 = vector.load %arg2[%c60, %c0_179] : memref<98x256xf32, #tpu.memory_space<vmem>>, vector<1x256xf32>
    %316 = vector.broadcast %315 : vector<1x256xf32> to vector<2x256xf32>
    %317 = arith.mulf %314, %316 : vector<2x256xf32>
    %318 = arith.addf %313, %317 : vector<2x256xf32>
    %c0_180 = arith.constant 0 : index
    %c21_181 = arith.constant 21 : index
    %319 = vector.load %arg6[%c0_180, %c21_181] : memref<2x358xf32, #tpu.memory_space<vmem>>, vector<2x256xf32>
    %c61 = arith.constant 61 : index
    %c0_182 = arith.constant 0 : index
    %320 = vector.load %arg2[%c61, %c0_182] : memref<98x256xf32, #tpu.memory_space<vmem>>, vector<1x256xf32>
    %321 = vector.broadcast %320 : vector<1x256xf32> to vector<2x256xf32>
    %322 = arith.mulf %319, %321 : vector<2x256xf32>
    %323 = arith.addf %318, %322 : vector<2x256xf32>
    %c0_183 = arith.constant 0 : index
    %c22_184 = arith.constant 22 : index
    %324 = vector.load %arg6[%c0_183, %c22_184] : memref<2x358xf32, #tpu.memory_space<vmem>>, vector<2x256xf32>
    %c62 = arith.constant 62 : index
    %c0_185 = arith.constant 0 : index
    %325 = vector.load %arg2[%c62, %c0_185] : memref<98x256xf32, #tpu.memory_space<vmem>>, vector<1x256xf32>
    %326 = vector.broadcast %325 : vector<1x256xf32> to vector<2x256xf32>
    %327 = arith.mulf %324, %326 : vector<2x256xf32>
    %328 = arith.addf %323, %327 : vector<2x256xf32>
    %c0_186 = arith.constant 0 : index
    %c32_187 = arith.constant 32 : index
    %329 = vector.load %arg6[%c0_186, %c32_187] : memref<2x358xf32, #tpu.memory_space<vmem>>, vector<2x256xf32>
    %c63 = arith.constant 63 : index
    %c0_188 = arith.constant 0 : index
    %330 = vector.load %arg2[%c63, %c0_188] : memref<98x256xf32, #tpu.memory_space<vmem>>, vector<1x256xf32>
    %331 = vector.broadcast %330 : vector<1x256xf32> to vector<2x256xf32>
    %332 = arith.mulf %329, %331 : vector<2x256xf32>
    %333 = arith.addf %328, %332 : vector<2x256xf32>
    %c0_189 = arith.constant 0 : index
    %c33_190 = arith.constant 33 : index
    %334 = vector.load %arg6[%c0_189, %c33_190] : memref<2x358xf32, #tpu.memory_space<vmem>>, vector<2x256xf32>
    %c64_191 = arith.constant 64 : index
    %c0_192 = arith.constant 0 : index
    %335 = vector.load %arg2[%c64_191, %c0_192] : memref<98x256xf32, #tpu.memory_space<vmem>>, vector<1x256xf32>
    %336 = vector.broadcast %335 : vector<1x256xf32> to vector<2x256xf32>
    %337 = arith.mulf %334, %336 : vector<2x256xf32>
    %338 = arith.addf %333, %337 : vector<2x256xf32>
    %c0_193 = arith.constant 0 : index
    %c34_194 = arith.constant 34 : index
    %339 = vector.load %arg6[%c0_193, %c34_194] : memref<2x358xf32, #tpu.memory_space<vmem>>, vector<2x256xf32>
    %c65_195 = arith.constant 65 : index
    %c0_196 = arith.constant 0 : index
    %340 = vector.load %arg2[%c65_195, %c0_196] : memref<98x256xf32, #tpu.memory_space<vmem>>, vector<1x256xf32>
    %341 = vector.broadcast %340 : vector<1x256xf32> to vector<2x256xf32>
    %342 = arith.mulf %339, %341 : vector<2x256xf32>
    %343 = arith.addf %338, %342 : vector<2x256xf32>
    %c0_197 = arith.constant 0 : index
    %c35_198 = arith.constant 35 : index
    %344 = vector.load %arg6[%c0_197, %c35_198] : memref<2x358xf32, #tpu.memory_space<vmem>>, vector<2x256xf32>
    %c66_199 = arith.constant 66 : index
    %c0_200 = arith.constant 0 : index
    %345 = vector.load %arg2[%c66_199, %c0_200] : memref<98x256xf32, #tpu.memory_space<vmem>>, vector<1x256xf32>
    %346 = vector.broadcast %345 : vector<1x256xf32> to vector<2x256xf32>
    %347 = arith.mulf %344, %346 : vector<2x256xf32>
    %348 = arith.addf %343, %347 : vector<2x256xf32>
    %c0_201 = arith.constant 0 : index
    %c36_202 = arith.constant 36 : index
    %349 = vector.load %arg6[%c0_201, %c36_202] : memref<2x358xf32, #tpu.memory_space<vmem>>, vector<2x256xf32>
    %c67_203 = arith.constant 67 : index
    %c0_204 = arith.constant 0 : index
    %350 = vector.load %arg2[%c67_203, %c0_204] : memref<98x256xf32, #tpu.memory_space<vmem>>, vector<1x256xf32>
    %351 = vector.broadcast %350 : vector<1x256xf32> to vector<2x256xf32>
    %352 = arith.mulf %349, %351 : vector<2x256xf32>
    %353 = arith.addf %348, %352 : vector<2x256xf32>
    %c0_205 = arith.constant 0 : index
    %c37_206 = arith.constant 37 : index
    %354 = vector.load %arg6[%c0_205, %c37_206] : memref<2x358xf32, #tpu.memory_space<vmem>>, vector<2x256xf32>
    %c68_207 = arith.constant 68 : index
    %c0_208 = arith.constant 0 : index
    %355 = vector.load %arg2[%c68_207, %c0_208] : memref<98x256xf32, #tpu.memory_space<vmem>>, vector<1x256xf32>
    %356 = vector.broadcast %355 : vector<1x256xf32> to vector<2x256xf32>
    %357 = arith.mulf %354, %356 : vector<2x256xf32>
    %358 = arith.addf %353, %357 : vector<2x256xf32>
    %c0_209 = arith.constant 0 : index
    %c38_210 = arith.constant 38 : index
    %359 = vector.load %arg6[%c0_209, %c38_210] : memref<2x358xf32, #tpu.memory_space<vmem>>, vector<2x256xf32>
    %c69_211 = arith.constant 69 : index
    %c0_212 = arith.constant 0 : index
    %360 = vector.load %arg2[%c69_211, %c0_212] : memref<98x256xf32, #tpu.memory_space<vmem>>, vector<1x256xf32>
    %361 = vector.broadcast %360 : vector<1x256xf32> to vector<2x256xf32>
    %362 = arith.mulf %359, %361 : vector<2x256xf32>
    %363 = arith.addf %358, %362 : vector<2x256xf32>
    %c0_213 = arith.constant 0 : index
    %c48_214 = arith.constant 48 : index
    %364 = vector.load %arg6[%c0_213, %c48_214] : memref<2x358xf32, #tpu.memory_space<vmem>>, vector<2x256xf32>
    %c70_215 = arith.constant 70 : index
    %c0_216 = arith.constant 0 : index
    %365 = vector.load %arg2[%c70_215, %c0_216] : memref<98x256xf32, #tpu.memory_space<vmem>>, vector<1x256xf32>
    %366 = vector.broadcast %365 : vector<1x256xf32> to vector<2x256xf32>
    %367 = arith.mulf %364, %366 : vector<2x256xf32>
    %368 = arith.addf %363, %367 : vector<2x256xf32>
    %c0_217 = arith.constant 0 : index
    %c49_218 = arith.constant 49 : index
    %369 = vector.load %arg6[%c0_217, %c49_218] : memref<2x358xf32, #tpu.memory_space<vmem>>, vector<2x256xf32>
    %c71 = arith.constant 71 : index
    %c0_219 = arith.constant 0 : index
    %370 = vector.load %arg2[%c71, %c0_219] : memref<98x256xf32, #tpu.memory_space<vmem>>, vector<1x256xf32>
    %371 = vector.broadcast %370 : vector<1x256xf32> to vector<2x256xf32>
    %372 = arith.mulf %369, %371 : vector<2x256xf32>
    %373 = arith.addf %368, %372 : vector<2x256xf32>
    %c0_220 = arith.constant 0 : index
    %c50_221 = arith.constant 50 : index
    %374 = vector.load %arg6[%c0_220, %c50_221] : memref<2x358xf32, #tpu.memory_space<vmem>>, vector<2x256xf32>
    %c72 = arith.constant 72 : index
    %c0_222 = arith.constant 0 : index
    %375 = vector.load %arg2[%c72, %c0_222] : memref<98x256xf32, #tpu.memory_space<vmem>>, vector<1x256xf32>
    %376 = vector.broadcast %375 : vector<1x256xf32> to vector<2x256xf32>
    %377 = arith.mulf %374, %376 : vector<2x256xf32>
    %378 = arith.addf %373, %377 : vector<2x256xf32>
    %c0_223 = arith.constant 0 : index
    %c51_224 = arith.constant 51 : index
    %379 = vector.load %arg6[%c0_223, %c51_224] : memref<2x358xf32, #tpu.memory_space<vmem>>, vector<2x256xf32>
    %c73 = arith.constant 73 : index
    %c0_225 = arith.constant 0 : index
    %380 = vector.load %arg2[%c73, %c0_225] : memref<98x256xf32, #tpu.memory_space<vmem>>, vector<1x256xf32>
    %381 = vector.broadcast %380 : vector<1x256xf32> to vector<2x256xf32>
    %382 = arith.mulf %379, %381 : vector<2x256xf32>
    %383 = arith.addf %378, %382 : vector<2x256xf32>
    %c0_226 = arith.constant 0 : index
    %c52_227 = arith.constant 52 : index
    %384 = vector.load %arg6[%c0_226, %c52_227] : memref<2x358xf32, #tpu.memory_space<vmem>>, vector<2x256xf32>
    %c74 = arith.constant 74 : index
    %c0_228 = arith.constant 0 : index
    %385 = vector.load %arg2[%c74, %c0_228] : memref<98x256xf32, #tpu.memory_space<vmem>>, vector<1x256xf32>
    %386 = vector.broadcast %385 : vector<1x256xf32> to vector<2x256xf32>
    %387 = arith.mulf %384, %386 : vector<2x256xf32>
    %388 = arith.addf %383, %387 : vector<2x256xf32>
    %c0_229 = arith.constant 0 : index
    %c53_230 = arith.constant 53 : index
    %389 = vector.load %arg6[%c0_229, %c53_230] : memref<2x358xf32, #tpu.memory_space<vmem>>, vector<2x256xf32>
    %c75 = arith.constant 75 : index
    %c0_231 = arith.constant 0 : index
    %390 = vector.load %arg2[%c75, %c0_231] : memref<98x256xf32, #tpu.memory_space<vmem>>, vector<1x256xf32>
    %391 = vector.broadcast %390 : vector<1x256xf32> to vector<2x256xf32>
    %392 = arith.mulf %389, %391 : vector<2x256xf32>
    %393 = arith.addf %388, %392 : vector<2x256xf32>
    %c0_232 = arith.constant 0 : index
    %c54_233 = arith.constant 54 : index
    %394 = vector.load %arg6[%c0_232, %c54_233] : memref<2x358xf32, #tpu.memory_space<vmem>>, vector<2x256xf32>
    %c76 = arith.constant 76 : index
    %c0_234 = arith.constant 0 : index
    %395 = vector.load %arg2[%c76, %c0_234] : memref<98x256xf32, #tpu.memory_space<vmem>>, vector<1x256xf32>
    %396 = vector.broadcast %395 : vector<1x256xf32> to vector<2x256xf32>
    %397 = arith.mulf %394, %396 : vector<2x256xf32>
    %398 = arith.addf %393, %397 : vector<2x256xf32>
    %c0_235 = arith.constant 0 : index
    %c64_236 = arith.constant 64 : index
    %399 = vector.load %arg6[%c0_235, %c64_236] : memref<2x358xf32, #tpu.memory_space<vmem>>, vector<2x256xf32>
    %c77 = arith.constant 77 : index
    %c0_237 = arith.constant 0 : index
    %400 = vector.load %arg2[%c77, %c0_237] : memref<98x256xf32, #tpu.memory_space<vmem>>, vector<1x256xf32>
    %401 = vector.broadcast %400 : vector<1x256xf32> to vector<2x256xf32>
    %402 = arith.mulf %399, %401 : vector<2x256xf32>
    %403 = arith.addf %398, %402 : vector<2x256xf32>
    %c0_238 = arith.constant 0 : index
    %c65_239 = arith.constant 65 : index
    %404 = vector.load %arg6[%c0_238, %c65_239] : memref<2x358xf32, #tpu.memory_space<vmem>>, vector<2x256xf32>
    %c78 = arith.constant 78 : index
    %c0_240 = arith.constant 0 : index
    %405 = vector.load %arg2[%c78, %c0_240] : memref<98x256xf32, #tpu.memory_space<vmem>>, vector<1x256xf32>
    %406 = vector.broadcast %405 : vector<1x256xf32> to vector<2x256xf32>
    %407 = arith.mulf %404, %406 : vector<2x256xf32>
    %408 = arith.addf %403, %407 : vector<2x256xf32>
    %c0_241 = arith.constant 0 : index
    %c66_242 = arith.constant 66 : index
    %409 = vector.load %arg6[%c0_241, %c66_242] : memref<2x358xf32, #tpu.memory_space<vmem>>, vector<2x256xf32>
    %c79 = arith.constant 79 : index
    %c0_243 = arith.constant 0 : index
    %410 = vector.load %arg2[%c79, %c0_243] : memref<98x256xf32, #tpu.memory_space<vmem>>, vector<1x256xf32>
    %411 = vector.broadcast %410 : vector<1x256xf32> to vector<2x256xf32>
    %412 = arith.mulf %409, %411 : vector<2x256xf32>
    %413 = arith.addf %408, %412 : vector<2x256xf32>
    %c0_244 = arith.constant 0 : index
    %c67_245 = arith.constant 67 : index
    %414 = vector.load %arg6[%c0_244, %c67_245] : memref<2x358xf32, #tpu.memory_space<vmem>>, vector<2x256xf32>
    %c80_246 = arith.constant 80 : index
    %c0_247 = arith.constant 0 : index
    %415 = vector.load %arg2[%c80_246, %c0_247] : memref<98x256xf32, #tpu.memory_space<vmem>>, vector<1x256xf32>
    %416 = vector.broadcast %415 : vector<1x256xf32> to vector<2x256xf32>
    %417 = arith.mulf %414, %416 : vector<2x256xf32>
    %418 = arith.addf %413, %417 : vector<2x256xf32>
    %c0_248 = arith.constant 0 : index
    %c68_249 = arith.constant 68 : index
    %419 = vector.load %arg6[%c0_248, %c68_249] : memref<2x358xf32, #tpu.memory_space<vmem>>, vector<2x256xf32>
    %c81_250 = arith.constant 81 : index
    %c0_251 = arith.constant 0 : index
    %420 = vector.load %arg2[%c81_250, %c0_251] : memref<98x256xf32, #tpu.memory_space<vmem>>, vector<1x256xf32>
    %421 = vector.broadcast %420 : vector<1x256xf32> to vector<2x256xf32>
    %422 = arith.mulf %419, %421 : vector<2x256xf32>
    %423 = arith.addf %418, %422 : vector<2x256xf32>
    %c0_252 = arith.constant 0 : index
    %c69_253 = arith.constant 69 : index
    %424 = vector.load %arg6[%c0_252, %c69_253] : memref<2x358xf32, #tpu.memory_space<vmem>>, vector<2x256xf32>
    %c82_254 = arith.constant 82 : index
    %c0_255 = arith.constant 0 : index
    %425 = vector.load %arg2[%c82_254, %c0_255] : memref<98x256xf32, #tpu.memory_space<vmem>>, vector<1x256xf32>
    %426 = vector.broadcast %425 : vector<1x256xf32> to vector<2x256xf32>
    %427 = arith.mulf %424, %426 : vector<2x256xf32>
    %428 = arith.addf %423, %427 : vector<2x256xf32>
    %c0_256 = arith.constant 0 : index
    %c70_257 = arith.constant 70 : index
    %429 = vector.load %arg6[%c0_256, %c70_257] : memref<2x358xf32, #tpu.memory_space<vmem>>, vector<2x256xf32>
    %c83_258 = arith.constant 83 : index
    %c0_259 = arith.constant 0 : index
    %430 = vector.load %arg2[%c83_258, %c0_259] : memref<98x256xf32, #tpu.memory_space<vmem>>, vector<1x256xf32>
    %431 = vector.broadcast %430 : vector<1x256xf32> to vector<2x256xf32>
    %432 = arith.mulf %429, %431 : vector<2x256xf32>
    %433 = arith.addf %428, %432 : vector<2x256xf32>
    %c0_260 = arith.constant 0 : index
    %c80_261 = arith.constant 80 : index
    %434 = vector.load %arg6[%c0_260, %c80_261] : memref<2x358xf32, #tpu.memory_space<vmem>>, vector<2x256xf32>
    %c84_262 = arith.constant 84 : index
    %c0_263 = arith.constant 0 : index
    %435 = vector.load %arg2[%c84_262, %c0_263] : memref<98x256xf32, #tpu.memory_space<vmem>>, vector<1x256xf32>
    %436 = vector.broadcast %435 : vector<1x256xf32> to vector<2x256xf32>
    %437 = arith.mulf %434, %436 : vector<2x256xf32>
    %438 = arith.addf %433, %437 : vector<2x256xf32>
    %c0_264 = arith.constant 0 : index
    %c81_265 = arith.constant 81 : index
    %439 = vector.load %arg6[%c0_264, %c81_265] : memref<2x358xf32, #tpu.memory_space<vmem>>, vector<2x256xf32>
    %c85_266 = arith.constant 85 : index
    %c0_267 = arith.constant 0 : index
    %440 = vector.load %arg2[%c85_266, %c0_267] : memref<98x256xf32, #tpu.memory_space<vmem>>, vector<1x256xf32>
    %441 = vector.broadcast %440 : vector<1x256xf32> to vector<2x256xf32>
    %442 = arith.mulf %439, %441 : vector<2x256xf32>
    %443 = arith.addf %438, %442 : vector<2x256xf32>
    %c0_268 = arith.constant 0 : index
    %c82_269 = arith.constant 82 : index
    %444 = vector.load %arg6[%c0_268, %c82_269] : memref<2x358xf32, #tpu.memory_space<vmem>>, vector<2x256xf32>
    %c86_270 = arith.constant 86 : index
    %c0_271 = arith.constant 0 : index
    %445 = vector.load %arg2[%c86_270, %c0_271] : memref<98x256xf32, #tpu.memory_space<vmem>>, vector<1x256xf32>
    %446 = vector.broadcast %445 : vector<1x256xf32> to vector<2x256xf32>
    %447 = arith.mulf %444, %446 : vector<2x256xf32>
    %448 = arith.addf %443, %447 : vector<2x256xf32>
    %c0_272 = arith.constant 0 : index
    %c83_273 = arith.constant 83 : index
    %449 = vector.load %arg6[%c0_272, %c83_273] : memref<2x358xf32, #tpu.memory_space<vmem>>, vector<2x256xf32>
    %c87 = arith.constant 87 : index
    %c0_274 = arith.constant 0 : index
    %450 = vector.load %arg2[%c87, %c0_274] : memref<98x256xf32, #tpu.memory_space<vmem>>, vector<1x256xf32>
    %451 = vector.broadcast %450 : vector<1x256xf32> to vector<2x256xf32>
    %452 = arith.mulf %449, %451 : vector<2x256xf32>
    %453 = arith.addf %448, %452 : vector<2x256xf32>
    %c0_275 = arith.constant 0 : index
    %c84_276 = arith.constant 84 : index
    %454 = vector.load %arg6[%c0_275, %c84_276] : memref<2x358xf32, #tpu.memory_space<vmem>>, vector<2x256xf32>
    %c88 = arith.constant 88 : index
    %c0_277 = arith.constant 0 : index
    %455 = vector.load %arg2[%c88, %c0_277] : memref<98x256xf32, #tpu.memory_space<vmem>>, vector<1x256xf32>
    %456 = vector.broadcast %455 : vector<1x256xf32> to vector<2x256xf32>
    %457 = arith.mulf %454, %456 : vector<2x256xf32>
    %458 = arith.addf %453, %457 : vector<2x256xf32>
    %c0_278 = arith.constant 0 : index
    %c85_279 = arith.constant 85 : index
    %459 = vector.load %arg6[%c0_278, %c85_279] : memref<2x358xf32, #tpu.memory_space<vmem>>, vector<2x256xf32>
    %c89 = arith.constant 89 : index
    %c0_280 = arith.constant 0 : index
    %460 = vector.load %arg2[%c89, %c0_280] : memref<98x256xf32, #tpu.memory_space<vmem>>, vector<1x256xf32>
    %461 = vector.broadcast %460 : vector<1x256xf32> to vector<2x256xf32>
    %462 = arith.mulf %459, %461 : vector<2x256xf32>
    %463 = arith.addf %458, %462 : vector<2x256xf32>
    %c0_281 = arith.constant 0 : index
    %c86_282 = arith.constant 86 : index
    %464 = vector.load %arg6[%c0_281, %c86_282] : memref<2x358xf32, #tpu.memory_space<vmem>>, vector<2x256xf32>
    %c90 = arith.constant 90 : index
    %c0_283 = arith.constant 0 : index
    %465 = vector.load %arg2[%c90, %c0_283] : memref<98x256xf32, #tpu.memory_space<vmem>>, vector<1x256xf32>
    %466 = vector.broadcast %465 : vector<1x256xf32> to vector<2x256xf32>
    %467 = arith.mulf %464, %466 : vector<2x256xf32>
    %468 = arith.addf %463, %467 : vector<2x256xf32>
    %c0_284 = arith.constant 0 : index
    %c96_285 = arith.constant 96 : index
    %469 = vector.load %arg6[%c0_284, %c96_285] : memref<2x358xf32, #tpu.memory_space<vmem>>, vector<2x256xf32>
    %c91 = arith.constant 91 : index
    %c0_286 = arith.constant 0 : index
    %470 = vector.load %arg2[%c91, %c0_286] : memref<98x256xf32, #tpu.memory_space<vmem>>, vector<1x256xf32>
    %471 = vector.broadcast %470 : vector<1x256xf32> to vector<2x256xf32>
    %472 = arith.mulf %469, %471 : vector<2x256xf32>
    %473 = arith.addf %468, %472 : vector<2x256xf32>
    %c0_287 = arith.constant 0 : index
    %c97_288 = arith.constant 97 : index
    %474 = vector.load %arg6[%c0_287, %c97_288] : memref<2x358xf32, #tpu.memory_space<vmem>>, vector<2x256xf32>
    %c92 = arith.constant 92 : index
    %c0_289 = arith.constant 0 : index
    %475 = vector.load %arg2[%c92, %c0_289] : memref<98x256xf32, #tpu.memory_space<vmem>>, vector<1x256xf32>
    %476 = vector.broadcast %475 : vector<1x256xf32> to vector<2x256xf32>
    %477 = arith.mulf %474, %476 : vector<2x256xf32>
    %478 = arith.addf %473, %477 : vector<2x256xf32>
    %c0_290 = arith.constant 0 : index
    %c98_291 = arith.constant 98 : index
    %479 = vector.load %arg6[%c0_290, %c98_291] : memref<2x358xf32, #tpu.memory_space<vmem>>, vector<2x256xf32>
    %c93 = arith.constant 93 : index
    %c0_292 = arith.constant 0 : index
    %480 = vector.load %arg2[%c93, %c0_292] : memref<98x256xf32, #tpu.memory_space<vmem>>, vector<1x256xf32>
    %481 = vector.broadcast %480 : vector<1x256xf32> to vector<2x256xf32>
    %482 = arith.mulf %479, %481 : vector<2x256xf32>
    %483 = arith.addf %478, %482 : vector<2x256xf32>
    %c0_293 = arith.constant 0 : index
    %c99_294 = arith.constant 99 : index
    %484 = vector.load %arg6[%c0_293, %c99_294] : memref<2x358xf32, #tpu.memory_space<vmem>>, vector<2x256xf32>
    %c94 = arith.constant 94 : index
    %c0_295 = arith.constant 0 : index
    %485 = vector.load %arg2[%c94, %c0_295] : memref<98x256xf32, #tpu.memory_space<vmem>>, vector<1x256xf32>
    %486 = vector.broadcast %485 : vector<1x256xf32> to vector<2x256xf32>
    %487 = arith.mulf %484, %486 : vector<2x256xf32>
    %488 = arith.addf %483, %487 : vector<2x256xf32>
    %c0_296 = arith.constant 0 : index
    %c100_297 = arith.constant 100 : index
    %489 = vector.load %arg6[%c0_296, %c100_297] : memref<2x358xf32, #tpu.memory_space<vmem>>, vector<2x256xf32>
    %c95 = arith.constant 95 : index
    %c0_298 = arith.constant 0 : index
    %490 = vector.load %arg2[%c95, %c0_298] : memref<98x256xf32, #tpu.memory_space<vmem>>, vector<1x256xf32>
    %491 = vector.broadcast %490 : vector<1x256xf32> to vector<2x256xf32>
    %492 = arith.mulf %489, %491 : vector<2x256xf32>
    %493 = arith.addf %488, %492 : vector<2x256xf32>
    %c0_299 = arith.constant 0 : index
    %c101_300 = arith.constant 101 : index
    %494 = vector.load %arg6[%c0_299, %c101_300] : memref<2x358xf32, #tpu.memory_space<vmem>>, vector<2x256xf32>
    %c96_301 = arith.constant 96 : index
    %c0_302 = arith.constant 0 : index
    %495 = vector.load %arg2[%c96_301, %c0_302] : memref<98x256xf32, #tpu.memory_space<vmem>>, vector<1x256xf32>
    %496 = vector.broadcast %495 : vector<1x256xf32> to vector<2x256xf32>
    %497 = arith.mulf %494, %496 : vector<2x256xf32>
    %498 = arith.addf %493, %497 : vector<2x256xf32>
    %c0_303 = arith.constant 0 : index
    %c102_304 = arith.constant 102 : index
    %499 = vector.load %arg6[%c0_303, %c102_304] : memref<2x358xf32, #tpu.memory_space<vmem>>, vector<2x256xf32>
    %c97_305 = arith.constant 97 : index
    %c0_306 = arith.constant 0 : index
    %500 = vector.load %arg2[%c97_305, %c0_306] : memref<98x256xf32, #tpu.memory_space<vmem>>, vector<1x256xf32>
    %501 = vector.broadcast %500 : vector<1x256xf32> to vector<2x256xf32>
    %502 = arith.mulf %499, %501 : vector<2x256xf32>
    %503 = arith.addf %498, %502 : vector<2x256xf32>
    %504 = arith.negf %503 : vector<2x256xf32>
    %505 = math.exp %504 : vector<2x256xf32>
    %cst_307 = arith.constant 1.000000e+00 : f32
    %506 = vector.broadcast %cst_307 : f32 to vector<2x256xf32>
    %507 = arith.addf %506, %505 : vector<2x256xf32>
    %508 = arith.divf %506, %507 : vector<2x256xf32>
    %509 = vector.shape_cast %508 : vector<2x256xf32> to vector<2x1x256xf32>
    %510 = vector.broadcast %509 : vector<2x1x256xf32> to vector<2x4x256xf32>
    %511 = arith.mulf %0, %510 : vector<2x4x256xf32>
    %c0_308 = arith.constant 0 : index
    %c0_309 = arith.constant 0 : index
    %c0_310 = arith.constant 0 : index
    %512 = vector.load %arg4[%c0_308, %c0_309, %c0_310] : memref<2x4x256xf32, #tpu.memory_space<vmem>>, vector<2x4x256xf32>
    tpu.vector_store %arg4[%c0_308, %c0_309, %c0_310], %511 {strides = array<i32>} : memref<2x4x256xf32, #tpu.memory_space<vmem>>, vector<2x4x256xf32>,
    return
  }
  func.func @transform_0(%arg0: i32) -> (i32, i32, i32) {
    %c0_i32 = arith.constant 0 : i32
    %c0_i32_0 = arith.constant 0 : i32
    %c0_i32_1 = arith.constant 0 : i32
    return %arg0, %c0_i32, %c0_i32_0 : i32, i32, i32
  }
  func.func @transform_1(%arg0: i32) -> (i32, i32) {
    %c0_i32 = arith.constant 0 : i32
    %c0_i32_0 = arith.constant 0 : i32
    %c0_i32_1 = arith.constant 0 : i32
    return %c0_i32, %c0_i32_0 : i32, i32
  }
  func.func @transform_2(%arg0: i32) -> i32 {
    %c0_i32 = arith.constant 0 : i32
    %c0_i32_0 = arith.constant 0 : i32
    return %c0_i32 : i32
  }
  func.func @transform_3(%arg0: i32) -> (i32, i32, i32) {
    %c0_i32 = arith.constant 0 : i32
    %c0_i32_0 = arith.constant 0 : i32
    %c0_i32_1 = arith.constant 0 : i32
    return %arg0, %c0_i32, %c0_i32_0 : i32, i32, i32
  }
}

</mosaic_0001>

<bundles_post_ra>
// kernel: tpu_custom_call.1
= control target key start
LH: loop header
LB: loop body
LE: loop exit
PB: predicated region body
PF: predicated region fallthrough
CT: control target
= control target key end

     0   :  { %9 = vsyncpa [#allocation6], 0  ;;  %s5002_s0 = inlined_call_operand.hbm [shape: f32[2,4,256], index: 0, kind: input, shape index: {}]   ;;  %s5003_s1 = inlined_call_operand.hbm [shape: f32[98,256], index: 1, kind: input, shape index: {}]   ;;  %s5004_s2 = inlined_call_operand.<no memory space> [shape: f32[1], index: 2, kind: input, shape index: {}]   ;;  %s5005_s3 = inlined_call_operand.hbm [shape: f32[2,4,256], index: 3, kind: output, shape index: {}]  }
   0x1   :  { %10 = vsyncpa [#allocation9], 0 }
   0x2   :  { %11 = vsyncpa [#allocation7], 0  ;;  %s3649_s12 = smov [#allocation5]   ;;  %s3577_s16 = scalar_lea.hbm %s5002_s0, 256 }
   0x3   :  { %s17_s13 = sshll.u32 %s3649_s12, 4  ;;  %p3578_p0 = scmp.ne.s32.totalorder %s5002_s0, %s3577_s16  ;;  %s18_s13 = int_to_ptr.vmem [resolvable:$true] %s17_s13 }
   0x4   :  { %p3581_p1 = scmp.lt.u32.totalorder %s3577_s16, %s5002_s0 }
   0x6   :  { %p3583_p2 = pnand %p3581_p1, %p3578_p0 }
   0x8   :  { %3586 = shalt.err (!%p3583_p2)
}
   0x9   :  { %s3587_s21 = scalar_lea.vmem %s18_s13, 256  ;;  %p3592_p4 = scmp.lt.s32.totalorder %s18_s13, %s18_s13 }
   0xa   :  { %p3588_p3 = scmp.ne.s32.totalorder %s18_s13, %s3587_s21  ;;  %p3593_p5 = scmp.lt.s32.totalorder %s3587_s21, %s3587_s21 }
   0xc   :  { %p3594_p6 = por %p3593_p5, %p3592_p4 }
   0xe   :  { %p3595_p7 = pnand %p3594_p6, %p3588_p3 }
  0x10   :  { %3598 = shalt.err (!%p3595_p7)
}
  0x11   :  { %s5006_s22 = smov 128   ;;  %s5007_s23 = smov 8  }
  0x12   :  { %23 = dma.hbm_to_vmem [thread:$0]  %s5002_s0, 256, %s18_s13, [#allocation6], %s5006_s22, %s5006_s22, %s5007_s23  }
  0x13   :  { %s3652_s26 = smov [#allocation8]   ;;  %s3599_s30 = scalar_lea.hbm %s5003_s1, 3328 }
  0x14   :  { %s29_s27 = sshll.u32 %s3652_s26, 4  ;;  %p3600_p8 = scmp.ne.s32.totalorder %s5003_s1, %s3599_s30  ;;  %s30_s27 = int_to_ptr.vmem [resolvable:$true] %s29_s27 }
  0x15   :  { %p3603_p9 = scmp.lt.u32.totalorder %s3599_s30, %s5003_s1 }
  0x17   :  { %p3605_p10 = pnand %p3603_p9, %p3600_p8 }
  0x19   :  { %3608 = shalt.err (!%p3605_p10)
}
  0x1a   :  { %s3609_s8 = scalar_lea.vmem %s30_s27, 3328  ;;  %p3614_p12 = scmp.lt.s32.totalorder %s30_s27, %s30_s27 }
  0x1b   :  { %p3610_p11 = scmp.ne.s32.totalorder %s30_s27, %s3609_s8  ;;  %p3615_p13 = scmp.lt.s32.totalorder %s3609_s8, %s3609_s8 }
  0x1d   :  { %p3616_p0 = por %p3615_p13, %p3614_p12 }
  0x1f   :  { %p3617_p1 = pnand %p3616_p0, %p3610_p11 }
  0x21   :  { %3620 = shalt.err (!%p3617_p1)
}
  0x22   :  { %s3653_s0 = smov 256   ;;  %s3654_s9 = smov 16  }
  0x23   :  { %35 = dma.hbm_to_vmem [thread:$0]  %s5003_s1, 3328, %s30_s27, [#allocation9], %s3653_s0, %s3653_s0, %s3654_s9  }
  0x24   :  { %3643 = dma.done.wait [#allocation6], 256  }
  0x25   :  { %3644 = vsyncadd [#allocation6], 4294967040 }
  0x26   :  { %3645 = dma.done.wait [#allocation9], 3328  }
  0x27   :  { %3646 = vsyncadd [#allocation9], 4294963968  ;;  %v128_v0 = vlaneseq  ;;  %v3655_v1 = vmov 1983009808   ;;  %s3656_s1 = smov 2   ;;  %s3657_s12 = smov 1  }
  0x28   :  { %v126_v2 = vunpack.c.l.s4 %v3655_v1  ;;  %v258_v8 = vld [vmem:[#allocation8 + $0x2] ss:$8 sm:$0x3]  ;;  %v224_v9 = vld [vmem:[#allocation8 + $0x1] ss:$8 sm:$0x3] }
  0x29   :  { %v3797_v3 = vshrl.u32 %v128_v0, 7  ;;  %v292_v14 = vld [vmem:[#allocation8 + $0x3] ss:$8 sm:$0x3]  ;;  %s3658_s13 = smov 3   ;;  %s3659_s14 = smov 35  }
  0x2a   :  { %v127_v4 = vunpack.c.0.s8 %v126_v2  ;;  %v768_v15 = vld [vmem:[#allocation8 + $0x21] ss:$8 sm:$0x3]  ;;  %v326_v20 = vld [vmem:[#allocation8 + $0x4] ss:$8 sm:$0x3] }
  0x2b   :  { %v3800_v5 = vsub.s32 0, %v3797_v3  ;;  %v3803_v6 = vsub.s32 1, %v3797_v3  ;;  %v836_v21 = vld [vmem:[#allocation8 + $0x23] ss:$8 sm:$0x3]  ;;  %v44_v62 = vld [vmem:[#allocation5] sm:$0xff] }
  0x2c   :  { %v3806_v7 = vsub.s32 %v127_v4, %v3797_v3  ;;  %v360_v26 = vld [vmem:[#allocation8 + $0x5] ss:$8 sm:$0x3]  ;;  %v394_v36 = vld [vmem:[#allocation8 + $0x6] ss:$8 sm:$0x3] }
  0x2d   :  { %v263_v10 = vrot.slane %v258_v8, %v3800_v5  ;;  %v267_v11 = vrot.slane %v258_v8, %v3803_v6  ;;  %v229_v12 = vrot.slane %v224_v9, %v3800_v5  ;;  %v233_v13 = vrot.slane %v224_v9, %v3803_v6  ;;  %v904_v31 = vld [vmem:[#allocation8 + $0x25] ss:$8 sm:$0x3]  ;;  %v972_v40 = vld [vmem:[#allocation8 + $0x27] ss:$8 sm:$0x3] }
  0x2e   :  { %v297_v16 = vrot.slane %v292_v14, %v3800_v5  ;;  %v301_v17 = vrot.slane %v292_v14, %v3803_v6  ;;  %v773_v18 = vrot.slane %v768_v15, %v3800_v5  ;;  %v777_v19 = vrot.slane %v768_v15, %v3803_v6  ;;  %v428_v41 = vld [vmem:[#allocation8 + $0x7] ss:$8 sm:$0x3]  ;;  %v1039_v45 = vld [vmem:[#allocation8 + $0x31] ss:$8 sm:$0x3] }
  0x2f   :  { %v268_v22 = vcombine.low %v263_v10, %v267_v11  ;;  %v234_v23 = vcombine.low %v229_v12, %v233_v13  ;;  %v331_v24 = vrot.slane %v326_v20, %v3800_v5  ;;  %v335_v25 = vrot.slane %v326_v20, %v3803_v6  ;;  %v462_v53 = vld [vmem:[#allocation8 + $0x10] ss:$8 sm:$0x3]  ;;  %v1107_v58 = vld [vmem:[#allocation8 + $0x33] ss:$8 sm:$0x3] }
  0x30   :  { %v302_v27 = vcombine.low %v297_v16, %v301_v17  ;;  %v778_v28 = vcombine.low %v773_v18, %v777_v19  ;;  %v841_v29 = vrot.slane %v836_v21, %v3800_v5  ;;  %v845_v30 = vrot.slane %v836_v21, %v3803_v6  ;;  %v1174_v2 = vld [vmem:[#allocation8 + $0x35] ss:$8 sm:$0x3]  ;;  %s3660_s15 = smov 4   ;;  %s3661_s16 = smov 37  }
  0x31   :  { %v275_v32 = vrot.slane %v268_v22, %v3806_v7  ;;  %v241_v33 = vrot.slane %v234_v23, %v3806_v7  ;;  %v336_v34 = vcombine.low %v331_v24, %v335_v25  ;;  %v365_v35 = vrot.slane %v360_v26, %v3800_v5  ;;  %v45_v11 = vld [vmem:[#allocation5 + $0x8] sm:$0xff]  ;;  %s3662_s17 = smov 5   ;;  %s3663_s18 = smov 48  }
  0x32   :  { %v309_v37 = vrot.slane %v302_v27, %v3806_v7  ;;  %v785_v38 = vrot.slane %v778_v28, %v3806_v7  ;;  %v369_v39 = vrot.slane %v360_v26, %v3803_v6  ;;  %v846_v42 = vcombine.low %v841_v29, %v845_v30  ;;  %s3664_s19 = smov 6   ;;  %s3665_s20 = smov 50  }
  0x33   :  { %276 = vrot.lane.b32.xlu0 %v275_v32, %s3656_s1  ;;  %242 = vrot.lane.b32.xlu1 %v241_v33, %s3657_s12  ;;  %v909_v43 = vrot.slane %v904_v31, %v3800_v5  ;;  %v913_v44 = vrot.slane %v904_v31, %v3803_v6  ;;  %v343_v46 = vrot.slane %v336_v34, %v3806_v7  ;;  %vm52_vm0 = vcmask 1043456   ;;  %s5026_s21 = smov 52   ;;  %s3667_s24 = smov 17  }
  0x34   :  { %v399_v47 = vrot.slane %v394_v36, %v3800_v5  ;;  %v403_v48 = vrot.slane %v394_v36, %v3803_v6  ;;  %v370_v49 = vcombine.low %v365_v35, %v369_v39  ;;  %v977_v50 = vrot.slane %v972_v40, %v3800_v5  ;;  %s5018_s25 = smov 54   ;;  %s5017_s26 = smov 65  }
  0x35   :  { %v981_v51 = vrot.slane %v972_v40, %v3803_v6  ;;  %v433_v52 = vrot.slane %v428_v41, %v3800_v5  ;;  %v914_v54 = vcombine.low %v909_v43, %v913_v44  ;;  %v437_v56 = vrot.slane %v428_v41, %v3803_v6  ;;  %s5016_s27 = smov 67   ;;  %s3671_s28 = smov 51  }
  0x36   :  { %v3836_v55 = vcombine.low %v399_v47, %v403_v48  ;;  %v1044_v57 = vrot.slane %v1039_v45, %v3800_v5  ;;  %v853_v59 = vrot.slane %v846_v42, %v3806_v7  ;;  %v1048_v61 = vrot.slane %v1039_v45, %v3803_v6  ;;  %s5015_s29 = smov 69   ;;  %s3673_s30 = smov 80  }
  0x37   :  { %310 = vrot.lane.b32.xlu0 %v309_v37, %s3658_s13  ;;  %786 = vrot.lane.b32.xlu1 %v785_v38, %s3659_s14  ;;  %v982_v60 = vcombine.low %v977_v50, %v981_v51  ;;  %v3844_v63 = vcombine.low %v433_v52, %v437_v56  ;;  %v467_v0 = vrot.slane %v462_v53, %v3800_v5  ;;  %v53_v4 = vsel %vm52_vm0, %v44_v62, -inf  ;;  %v1242_v37 = vld [vmem:[#allocation8 + $0x37] ss:$8 sm:$0x3]  ;;  %s5014_s4 = smov 82   ;;  %s3675_s5 = smov 18  }
  0x38   :  { %v471_v1 = vrot.slane %v462_v53, %v3803_v6  ;;  %v377_v8 = vrot.slane %v370_v49, %v3806_v7  ;;  %v1112_v9 = vrot.slane %v1107_v58, %v3800_v5  ;;  %v1116_v10 = vrot.slane %v1107_v58, %v3803_v6  ;;  %s5013_s6 = smov 84   ;;  %s3677_s7 = smov 19  }
  0x39   :  { %v921_v12 = vrot.slane %v914_v54, %v3806_v7  ;;  %v411_v13 = vrot.slane %v3836_v55, %v3806_v7  ;;  %v3855_v14 = vcombine.low %v1044_v57, %v1048_v61  ;;  %v1179_v16 = vrot.slane %v1174_v2, %v3800_v5  ;;  %v1310_v61 = vld [vmem:[#allocation8 + $0x41] ss:$8 sm:$0x3]  ;;  %s5010_s8 = smov 86   ;;  %s3679_s0 = smov 20  }
  0x3a   :  { %v3857_v15 = vcombine.low %v467_v0, %v471_v1  ;;  %v1183_v17 = vrot.slane %v1174_v2, %v3803_v6  ;;  %v48_v18 = vcombine.high %v44_v62, %v44_v62  ;;  %v54_v19 = vrot.slane %v53_v4, 4  ;;  %s5008_s10 = smov 97   ;;  %s3681_s11 = smov 21  }
  0x3b   :  { %344 = vrot.lane.b32.xlu0 %v343_v46, %s3660_s15  ;;  %854 = vrot.lane.b32.xlu1 %v853_v59, %s3661_s16  ;;  %v989_v20 = vrot.slane %v982_v60, %v3806_v7  ;;  %v445_v21 = vrot.slane %v3844_v63, %v3806_v7  ;;  %v49_v22 = vcombine.high %v45_v11, %v45_v11  ;;  %v67_v23 = vsel %vm52_vm0, %v45_v11, -inf  ;;  %s5009_s22 = smov 99   ;;  %s3683_s23 = smov 22  }
  0x3c   :  { %v3867_v24 = vcombine.low %v1112_v9, %v1116_v10  ;;  %v55_v25 = vmax.f32 %v53_v4, %v54_v19  ;;  %v60_v26 = vsel %vm52_vm0, %v48_v18, -inf  ;;  %v68_v27 = vrot.slane %v67_v23, 4 }
  0x3d   :  { %v1056_v28 = vrot.slane %v3855_v14, %v3806_v7  ;;  %v479_v29 = vrot.slane %v3857_v15, %v3806_v7  ;;  %v61_v30 = vrot.slane %v60_v26, 4  ;;  %v74_v31 = vsel %vm52_vm0, %v49_v22, -inf }
  0x3e   :  { %v3877_v32 = vcombine.low %v1179_v16, %v1183_v17  ;;  %v56_v33 = vrot.slane %v55_v25, 2  ;;  %v69_v34 = vmax.f32 %v67_v23, %v68_v27  ;;  %v75_v35 = vrot.slane %v74_v31, 4  ;;  %v1378_v27 = vld [vmem:[#allocation8 + $0x43] ss:$8 sm:$0x3] }
  0x3f   :  { %378 = vrot.lane.b32.xlu0 %v377_v8, %s3662_s17  ;;  %922 = vrot.lane.b32.xlu1 %v921_v12, %s3663_s18  ;;  %v62_v36 = vmax.f32 %v60_v26, %v61_v30  ;;  %v81_v38 = vsel %vm52_vm0, %v44_v62, 0.0  ;;  %v88_v39 = vsel %vm52_vm0, %v48_v18, 0.0  ;;  %v95_v40 = vsel %vm52_vm0, %v45_v11, 0.0 }
  0x40   :  { %v1124_v41 = vrot.slane %v3867_v24, %v3806_v7  ;;  %v57_v42 = vmax.f32 %v55_v25, %v56_v33  ;;  %v70_v43 = vrot.slane %v69_v34, 2  ;;  %v76_v44 = vmax.f32 %v74_v31, %v75_v35 }
  0x41   :  { %v63_v45 = vrot.slane %v62_v36, 2  ;;  %v82_v46 = vrot.slane %v81_v38, 4  ;;  %v89_v47 = vrot.slane %v88_v39, 4  ;;  %v96_v48 = vrot.slane %v95_v40, 4 }
  0x42   :  { %v58_v49 = vrot.slane %v57_v42, 1  ;;  %v71_v50 = vmax.f32 %v69_v34, %v70_v43  ;;  %v77_v51 = vrot.slane %v76_v44, 2  ;;  %v1247_v52 = vrot.slane %v1242_v37, %v3800_v5 }
  0x43   :  { %412 = vrot.lane.b32.xlu0 %v411_v13, %s3664_s19  ;;  %990 = vrot.lane.b32.xlu1 %v989_v20, %s3665_s20  ;;  %v64_v53 = vmax.f32 %v62_v36, %v63_v45  ;;  %v83_v54 = vadd.f32 %v82_v46, %v81_v38  ;;  %v90_v55 = vadd.f32 %v89_v47, %v88_v39  ;;  %v102_v60 = vsel %vm52_vm0, %v49_v22, 0.0 }
  0x44   :  { %v97_v56 = vadd.f32 %v96_v48, %v95_v40  ;;  %v59_v57 = vmax.f32 %v57_v42, %v58_v49  ;;  %v72_v58 = vrot.slane %v71_v50, 1  ;;  %v78_v59 = vmax.f32 %v76_v44, %v77_v51  ;;  %v496_v48 = vld [vmem:[#allocation8 + $0x11] ss:$8 sm:$0x3] }
  0x45   :  { %v65_v62 = vrot.slane %v64_v53, 1  ;;  %v84_v63 = vrot.slane %v83_v54, 2  ;;  %v91_v0 = vrot.slane %v90_v55, 2  ;;  %v1251_v8 = vrot.slane %v1242_v37, %v3803_v6 }
  0x46   :  { %v98_v1 = vrot.slane %v97_v56, 2  ;;  %v73_v2 = vmax.f32 %v71_v50, %v72_v58  ;;  %v79_v4 = vrot.slane %v78_v59, 1  ;;  %v103_v9 = vrot.slane %v102_v60, 4 }
  0x47   :  { %446 = vrot.lane.b32.xlu0 %v445_v21, %s3654_s9  ;;  %1057 = vrot.lane.b32.xlu1 %v1056_v28, %s5026_s21  ;;  %v66_v10 = vmax.f32 %v64_v53, %v65_v62  ;;  %v85_v11 = vadd.f32 %v84_v63, %v83_v54  ;;  %v92_v12 = vadd.f32 %v91_v0, %v90_v55  ;;  %vm145_vm1 = vcmask 1041409   ;;  %v1512_v55 = vld [vmem:[#allocation8 + $0x47] ss:$8 sm:$0x3]  ;;  %s5027_s21 = smov 100  }
  0x48   :  { %v99_v13 = vadd.f32 %v98_v1, %v97_v56  ;;  %v80_v14 = vmax.f32 %v78_v59, %v79_v4  ;;  %v104_v16 = vadd.f32 %v103_v9, %v102_v60  ;;  %v1315_v17 = vrot.slane %v1310_v61, %v3800_v5 }
  0x49   :  { %v1319_v18 = vrot.slane %v1310_v61, %v3803_v6  ;;  %v124_v19 = vcombine.low %v59_v57, %v66_v10  ;;  %v86_v20 = vrot.slane %v85_v11, 1  ;;  %v93_v21 = vrot.slane %v92_v12, 1  ;;  %v530_v61 = vld [vmem:[#allocation8 + $0x12] ss:$8 sm:$0x3] }
  0x4a   :  { %v100_v22 = vrot.slane %v99_v13, 1  ;;  %v1191_v23 = vrot.slane %v3877_v32, %v3806_v7  ;;  %v132_v24 = vcombine.low %v73_v2, %v80_v14  ;;  %v1252_v25 = vcombine.low %v1247_v52, %v1251_v8  ;;  %v1580_v2 = vld [vmem:[#allocation8 + $0x51] ss:$8 sm:$0x3] }
  0x4b   :  { %480 = vrot.lane.b32.xlu0 %v479_v29, %s3667_s24  ;;  %1125 = vrot.lane.b32.xlu1 %v1124_v41, %s5018_s25  ;;  %v105_v26 = vrot.slane %v104_v16, 2  ;;  %vm147_vm2 = vcmask 1043459   ;;  %v87_v28 = vadd.f32 %v86_v20, %v85_v11  ;;  %v94_v30 = vadd.f32 %v93_v21, %v92_v12  ;;  %v1444_v41 = vld [vmem:[#allocation8 + $0x45] ss:$8 sm:$0x3]  ;;  %s5020_s25 = smov 66  }
  0x4c   :  { %v131_v31 = vrot.slane %v124_v19, %v3806_v7  ;;  %v139_v33 = vrot.slane %v132_v24, %v3806_v7  ;;  %v101_v15 = vadd.f32 %v100_v22, %v99_v13  ;;  %v1320_v36 = vcombine.low %v1315_v17, %v1319_v18  ;;  %v1646_v19 = vld [vmem:[#allocation8 + $0x53] ss:$8 sm:$0x3] }
  0x4d   :  { %v106_v29 = vadd.f32 %v105_v26, %v104_v16  ;;  %v110_v34 = vmul.f32 0.25, %v87_v28  ;;  %v111_v35 = vmul.f32 0.25, %v94_v30  ;;  %v1383_v37 = vrot.slane %v1378_v27, %v3800_v5  ;;  %v564_v16 = vld [vmem:[#allocation8 + $0x13] ss:$8 sm:$0x3] }
  0x4e   :  { %v144_v32 = vrot.slane %v139_v33, 7  ;;  %v1259_v38 = vrot.slane %v1252_v25, %v3806_v7  ;;  %v1387_v40 = vrot.slane %v1378_v27, %v3803_v6  ;;  %vm149_vm3 = vcmask 1045509   ;;  %v598_v26 = vld [vmem:[#allocation8 + $0x14] ss:$8 sm:$0x3] }
  0x4f   :  { %1192 = vrot.lane.b32.xlu1 %v1191_v23, %s5017_s26  ;;  %v107_v39 = vrot.slane %v106_v29, 1  ;;  %vm151_vm4 = vcmask 1047559   ;;  %v112_v44 = vmul.f32 0.25, %v101_v15  ;;  %v169_v46 = vcombine.low %v110_v34, %v111_v35  ;;  %v1714_v33 = vld [vmem:[#allocation8 + $0x55] ss:$8 sm:$0x3] }
  0x50   :  { %v146_v42 = vsel %vm145_vm1, %v144_v32, %v131_v31  ;;  %v1327_v47 = vrot.slane %v1320_v36, %v3806_v7  ;;  %v1388_v49 = vcombine.low %v1383_v37, %v1387_v40  ;;  %v1449_v52 = vrot.slane %v1444_v41, %v3800_v5  ;;  %v632_v35 = vld [vmem:[#allocation8 + $0x15] ss:$8 sm:$0x3]  ;;  %v1782_v40 = vld [vmem:[#allocation8 + $0x57] ss:$8 sm:$0x3] }
  0x51   :  { %v108_v43 = vadd.f32 %v107_v39, %v106_v29  ;;  %v148_v45 = vsel %vm147_vm2, %v144_v32, %v146_v42  ;;  %v1453_v53 = vrot.slane %v1444_v41, %v3803_v6  ;;  %v501_v57 = vrot.slane %v496_v48, %v3800_v5  ;;  %s3694_s26 = smov 64  }
  0x52   :  { %v150_v50 = vsel %vm149_vm3, %v144_v32, %v148_v45  ;;  %v505_v58 = vrot.slane %v496_v48, %v3803_v6  ;;  %v176_v59 = vrot.slane %v169_v46, %v3806_v7  ;;  %v1395_v60 = vrot.slane %v1388_v49, %v3806_v7 }
  0x53   :  { %1260 = vrot.lane.b32.xlu1 %v1259_v38, %s5016_s27  ;;  %v113_v51 = vmul.f32 0.25, %v108_v43  ;;  %v152_v54 = vsel %vm151_vm4, %v144_v32, %v150_v50  ;;  %v1454_v63 = vcombine.low %v1449_v52, %v1453_v53  ;;  %v1517_v0 = vrot.slane %v1512_v55, %v3800_v5  ;;  %v1816_v50 = vld [vmem:[#allocation8 + $0x60] ss:$8 sm:$0x3]  ;;  %s5019_s27 = smov 53  }
  0x54   :  { %153 = vrot.lane.b32.xlu0 %v152_v54, %s3671_s28  ;;  %v1521_v1 = vrot.slane %v1512_v55, %v3803_v6  ;;  %v506_v8 = vcombine.low %v501_v57, %v505_v58  ;;  %v535_v9 = vrot.slane %v530_v61, %v3800_v5  ;;  %v539_v10 = vrot.slane %v530_v61, %v3803_v6 }
  0x55   :  { %v177_v56 = vcombine.low %v112_v44, %v113_v51  ;;  %v1585_v11 = vrot.slane %v1580_v2, %v3800_v5  ;;  %v1589_v12 = vrot.slane %v1580_v2, %v3803_v6  ;;  %v1461_v14 = vrot.slane %v1454_v63, %v3806_v7  ;;  %v734_v2 = vld [vmem:[#allocation8 + $0x20] ss:$8 sm:$0x3] }
  0x56   :  { %v1522_v17 = vcombine.low %v1517_v0, %v1521_v1  ;;  %v513_v21 = vrot.slane %v506_v8, %v3806_v7  ;;  %v540_v22 = vcombine.low %v535_v9, %v539_v10  ;;  %v569_v24 = vrot.slane %v564_v16, %v3800_v5 }
  0x57   :  { %v184_v62 = vrot.slane %v177_v56, %v3806_v7  ;;  %1328 = vrot.lane.b32.xlu1 %v1327_v47, %s5015_s29  ;;  %v573_v25 = vrot.slane %v564_v16, %v3803_v6  ;;  %v1590_v27 = vcombine.low %v1585_v11, %v1589_v12  ;;  %v1651_v30 = vrot.slane %v1646_v19, %v3800_v5  ;;  %v666_v47 = vld [vmem:[#allocation8 + $0x16] ss:$8 sm:$0x3]  ;;  %v700_v56 = vld [vmem:[#allocation8 + $0x17] ss:$8 sm:$0x3] }
  0x58   :  { %v1529_v28 = vrot.slane %v1522_v17, %v3806_v7  ;;  %v1655_v31 = vrot.slane %v1646_v19, %v3803_v6  ;;  %v603_v15 = vrot.slane %v598_v26, %v3800_v5  ;;  %v607_v34 = vrot.slane %v598_v26, %v3803_v6  ;;  %v802_v12 = vld [vmem:[#allocation8 + $0x22] ss:$8 sm:$0x3]  ;;  %s3692_s29 = smov 49  }
  0x59   :  { %v187_v4 = vrot.slane %v184_v62, 7  ;;  %v574_v29 = vcombine.low %v569_v24, %v573_v25  ;;  %v1719_v36 = vrot.slane %v1714_v33, %v3800_v5  ;;  %v1723_v37 = vrot.slane %v1714_v33, %v3803_v6  ;;  %v938_v24 = vld [vmem:[#allocation8 + $0x26] ss:$8 sm:$0x3] }
  0x5a   :  { %v547_v32 = vrot.slane %v540_v22, %v3806_v7  ;;  %v1597_v38 = vrot.slane %v1590_v27, %v3806_v7  ;;  %v1656_v39 = vcombine.low %v1651_v30, %v1655_v31  ;;  %v637_v41 = vrot.slane %v632_v35, %v3800_v5  ;;  %v1006_v30 = vld [vmem:[#allocation8 + $0x30] ss:$8 sm:$0x3] }
  0x5b   :  { %v188_v13 = vsel %vm145_vm1, %v187_v4, %v176_v59  ;;  %1396 = vrot.lane.b32.xlu1 %v1395_v60, %s3673_s30  ;;  %v641_v42 = vrot.slane %v632_v35, %v3803_v6  ;;  %v581_v43 = vrot.slane %v574_v29, %v3806_v7  ;;  %v608_v44 = vcombine.low %v603_v15, %v607_v34  ;;  %v1073_v34 = vld [vmem:[#allocation8 + $0x32] ss:$8 sm:$0x3] }
  0x5c   :  { %v189_v18 = vsel %vm147_vm2, %v187_v4, %v188_v13  ;;  %v1724_v45 = vcombine.low %v1719_v36, %v1723_v37  ;;  %v1663_v46 = vrot.slane %v1656_v39, %v3806_v7  ;;  %v1787_v48 = vrot.slane %v1782_v40, %v3800_v5 }
  0x5d   :  { %v190_v20 = vsel %vm149_vm3, %v187_v4, %v189_v18  ;;  %v1791_v49 = vrot.slane %v1782_v40, %v3803_v6  ;;  %v642_v51 = vcombine.low %v637_v41, %v641_v42  ;;  %v615_v52 = vrot.slane %v608_v44, %v3806_v7  ;;  %v870_v18 = vld [vmem:[#allocation8 + $0x24] ss:$8 sm:$0x3] }
  0x5e   :  { %v191_v23 = vsel %vm151_vm4, %v187_v4, %v190_v20  ;;  %v671_v53 = vrot.slane %v666_v47, %v3800_v5  ;;  %v675_v54 = vrot.slane %v666_v47, %v3803_v6  ;;  %v1731_v55 = vrot.slane %v1724_v45, %v3806_v7 }
  0x5f   :  { %192 = vrot.lane.b32.xlu0 %v191_v23, %s3671_s28  ;;  %1462 = vrot.lane.b32.xlu1 %v1461_v14, %s5014_s4  ;;  %v1792_v57 = vcombine.low %v1787_v48, %v1791_v49  ;;  %v1821_v58 = vrot.slane %v1816_v50, %v3800_v5  ;;  %v1825_v59 = vrot.slane %v1816_v50, %v3803_v6  ;;  %vm114_vm5 = vcmask 410624   ;;  %s3691_s4 = smov 38   ;;  %v1276_v48 = vld [vmem:[#allocation8 + $0x40] ss:$8 sm:$0x3] }
  0x60   :  { %v676_v60 = vcombine.low %v671_v53, %v675_v54  ;;  %v705_v61 = vrot.slane %v700_v56, %v3800_v5  ;;  %v709_v62 = vrot.slane %v700_v56, %v3803_v6  ;;  %v649_v63 = vrot.slane %v642_v51, %v3806_v7  ;;  %v1344_v53 = vld [vmem:[#allocation8 + $0x42] ss:$8 sm:$0x3] }
  0x61   :  { %v1799_v0 = vrot.slane %v1792_v57, %v3806_v7  ;;  %v1826_v1 = vcombine.low %v1821_v58, %v1825_v59  ;;  %v739_v9 = vrot.slane %v734_v2, %v3800_v5  ;;  %v743_v10 = vrot.slane %v734_v2, %v3803_v6  ;;  %v1410_v58 = vld [vmem:[#allocation8 + $0x44] ss:$8 sm:$0x3] }
  0x62   :  { %v683_v4 = vrot.slane %v676_v60, %v3806_v7  ;;  %v710_v8 = vcombine.low %v705_v61, %v709_v62  ;;  %v807_v16 = vrot.slane %v802_v12, %v3800_v5  ;;  %v811_v17 = vrot.slane %v802_v12, %v3803_v6 }
  0x63   :  { %514 = vrot.lane.b32.xlu0 %v513_v21, %s3675_s5  ;;  %1530 = vrot.lane.b32.xlu1 %v1529_v28, %s5013_s6  ;;  %v1833_v11 = vrot.slane %v1826_v1, %v3806_v7  ;;  %v744_v14 = vcombine.low %v739_v9, %v743_v10  ;;  %vm116_vm6 = vcmask 828824   ;;  %v3687_v19 = vmov 0.0   ;;  %s3690_s6 = smov 36  }
  0x64   :  { %v717_v13 = vrot.slane %v710_v8, %v3806_v7  ;;  %115 = vst.msk [vmem:[#allocation2] sm:$0x3] %vm114_vm5, %v3687_v19  ;;  %118 = vst.msk [vmem:[#allocation3] sm:$0x3] %vm114_vm5, %v3687_v19  ;;  %v812_v21 = vcombine.low %v807_v16, %v811_v17  ;;  %v875_v22 = vrot.slane %v870_v18, %v3800_v5  ;;  %vm159_vm7 = vcmask 1041816  }
  0x65   :  { %117 = vst.msk [vmem:[#allocation2 + $0x4] sm:$0x3] %vm116_vm6, %v3687_v19  ;;  %119 = vst.msk [vmem:[#allocation3 + $0x4] sm:$0x3] %vm116_vm6, %v3687_v19  ;;  %v751_v20 = vrot.slane %v744_v14, %v3806_v7  ;;  %v879_v23 = vrot.slane %v870_v18, %v3803_v6  ;;  %v943_v27 = vrot.slane %v938_v24, %v3800_v5  ;;  %vm160_vm8 = vcmask 1043458  }
  0x66   :  { %v819_v25 = vrot.slane %v812_v21, %v3806_v7  ;;  %v947_v28 = vrot.slane %v938_v24, %v3803_v6  ;;  %v1011_v15 = vrot.slane %v1006_v30, %v3800_v5  ;;  %v1015_v29 = vrot.slane %v1006_v30, %v3803_v6  ;;  %v1546_v8 = vld [vmem:[#allocation8 + $0x50] ss:$8 sm:$0x3]  ;;  %vm161_vm9 = vmor %vm160_vm8, %vm159_vm7 }
  0x67   :  { %548 = vrot.lane.b32.xlu0 %v547_v32, %s3677_s7  ;;  %1598 = vrot.lane.b32.xlu1 %v1597_v38, %s5010_s8  ;;  %s5012_s8 = smov 102   ;;  %v880_v26 = vcombine.low %v875_v22, %v879_v23  ;;  %v1078_v37 = vrot.slane %v1073_v34, %v3800_v5  ;;  %v1082_v32 = vrot.slane %v1073_v34, %v3803_v6  ;;  %v1141_v38 = vld [vmem:[#allocation8 + $0x34] ss:$8 sm:$0x3]  ;;  %vm162_vm10 = vcmask 414724  }
  0x68   :  { %v948_v33 = vcombine.low %v943_v27, %v947_v28  ;;  %v1016_v36 = vcombine.low %v1011_v15, %v1015_v29  ;;  %v1146_v41 = vrot.slane %v1141_v38, %v3800_v5  ;;  %v1150_v42 = vrot.slane %v1141_v38, %v3803_v6  ;;  %v1874_v15 = vld [vmem:[#allocation8 + $0x62] ss:$8 sm:$0x3]  ;;  %vm4076_vm12 = vmor %vm162_vm10, %vm161_vm9 }
  0x69   :  { %v887_v31 = vrot.slane %v880_v26, %v3806_v7  ;;  %v1083_v40 = vcombine.low %v1078_v37, %v1082_v32  ;;  %v1281_v51 = vrot.slane %v1276_v48, %v3800_v5  ;;  %v1349_v56 = vrot.slane %v1344_v53, %v3800_v5  ;;  %v1748_v26 = vld [vmem:[#allocation8 + $0x56] ss:$8 sm:$0x3]  ;;  %v1906_v32 = vld [vmem:[#allocation8 + $0x63] ss:$8 sm:$0x3] }
  0x6a   :  { %v955_v35 = vrot.slane %v948_v33, %v3806_v7  ;;  %v1023_v39 = vrot.slane %v1016_v36, %v3806_v7  ;;  %v1151_v45 = vcombine.low %v1146_v41, %v1150_v42  ;;  %v1353_v57 = vrot.slane %v1344_v53, %v3803_v6 }
  0x6b   :  { %582 = vrot.lane.b32.xlu0 %v581_v43, %s3679_s0  ;;  %1664 = vrot.lane.b32.xlu1 %v1663_v46, %s5008_s10  ;;  %s5011_s10 = smov 101   ;;  %v1208_v43 = vld [vmem:[#allocation8 + $0x36] ss:$8 sm:$0x3]  ;;  %v1090_v44 = vrot.slane %v1083_v40, %v3806_v7  ;;  %v1415_v61 = vrot.slane %v1410_v58, %v3800_v5  ;;  %v1419_v62 = vrot.slane %v1410_v58, %v3803_v6  ;;  %vm5043_vm11 = vcmask 416768  }
  0x6c   :  { %v1213_v46 = vrot.slane %v1208_v43, %v3800_v5  ;;  %v1217_v47 = vrot.slane %v1208_v43, %v3803_v6  ;;  %v1158_v49 = vrot.slane %v1151_v45, %v3806_v7  ;;  %v1354_v60 = vcombine.low %v1349_v56, %v1353_v57  ;;  %v1938_v43 = vld [vmem:[#allocation8 + $0x64] ss:$8 sm:$0x3] }
  0x6d   :  { %v1420_v1 = vcombine.low %v1415_v61, %v1419_v62  ;;  %v1555_v12 = vrot.slane %v1546_v8, %v3803_v6  ;;  %v1757_v33 = vrot.slane %v1748_v26, %v3803_v6  ;;  %v1879_v36 = vrot.slane %v1874_v15, %v3800_v5 }
  0x6e   :  { %v1218_v50 = vcombine.low %v1213_v46, %v1217_v47  ;;  %v1883_v37 = vrot.slane %v1874_v15, %v3803_v6  ;;  %v1911_v41 = vrot.slane %v1906_v32, %v3800_v5  ;;  %v1915_v42 = vrot.slane %v1906_v32, %v3803_v6 }
  0x6f   :  { %616 = vrot.lane.b32.xlu0 %v615_v52, %s3681_s11  ;;  %1732 = vrot.lane.b32.xlu1 %v1731_v55, %s5009_s22  ;;  %s3685_s22 = smov 32   ;;  %v1285_v52 = vrot.slane %v1276_v48, %v3803_v6  ;;  %v1427_v9 = vrot.slane %v1420_v1, %v3806_v7  ;;  %v1943_v47 = vrot.slane %v1938_v43, %v3800_v5  ;;  %vm245_vm13 = vcmask 7168  }
  0x70   :  { %v1225_v54 = vrot.slane %v1218_v50, %v3806_v7  ;;  %v1884_v40 = vcombine.low %v1879_v36, %v1883_v37  ;;  %v1916_v45 = vcombine.low %v1911_v41, %v1915_v42  ;;  %v1947_v48 = vrot.slane %v1938_v43, %v3803_v6 }
  0x71   :  { %v1286_v55 = vcombine.low %v1281_v51, %v1285_v52  ;;  %vm279_vm14 = vcmask 15360   ;;  %vm313_vm15 = vcmask 23552   ;;  %vm347_vm0 = vcmask 31744  }
  0x72   :  { %v1923_v50 = vrot.slane %v1916_v45, %v3806_v7  ;;  %v1948_v51 = vcombine.low %v1943_v47, %v1947_v48  ;;  %vm381_vm1 = vcmask 39936   ;;  %vm415_vm2 = vcmask 48128  }
  0x73   :  { %650 = vrot.lane.b32.xlu0 %v649_v63, %s3683_s23  ;;  %1800 = vrot.lane.b32.xlu1 %v1799_v0, %s5011_s10  ;;  %s3688_s10 = smov 33   ;;  %v1293_v59 = vrot.slane %v1286_v55, %v3806_v7  ;;  %v1478_v63 = vld [vmem:[#allocation8 + $0x46] ss:$8 sm:$0x3]  ;;  %v1361_v0 = vrot.slane %v1354_v60, %v3806_v7  ;;  %vm449_vm3 = vcmask 130048   ;;  %vm483_vm4 = vcmask 138240  }
  0x74   :  { %v1483_v2 = vrot.slane %v1478_v63, %v3800_v5  ;;  %v1955_v56 = vrot.slane %v1948_v51, %v3806_v7  ;;  %v2034_v60 = vld [vmem:[#allocation8 + $0x67] ss:$8 sm:$0x3]  ;;  %vm517_vm5 = vcmask 146432   ;;  %vm551_vm6 = vcmask 154624  }
  0x75   :  { %v2043_v1 = vrot.slane %v2034_v60, %v3803_v6  ;;  %vm5035_vm7 = vcmask 277504   ;;  %vm5033_vm8 = vcmask 285696   ;;  %vm585_vm9 = vcmask 162816  }
  0x76   :  { %vm619_vm10 = vcmask 171008  }
  0x77   :  { %684 = vrot.lane.b32.xlu0 %v683_v4, %s3685_s22  ;;  %1834 = vrot.lane.b32.xlu1 %v1833_v11, %s5012_s8  ;;  %s3689_s8 = smov 34   ;;  %v1487_v4 = vrot.slane %v1478_v63, %v3803_v6  ;;  %v1551_v11 = vrot.slane %v1546_v8, %v3800_v5  ;;  %v2066_v8 = vld [vmem:[#allocation8 + $0x70] ss:$8 sm:$0x3] }
  0x79   :  { %v1488_v10 = vcombine.low %v1483_v2, %v1487_v4  ;;  %v1556_v17 = vcombine.low %v1551_v11, %v1555_v12  ;;  %v2071_v12 = vrot.slane %v2066_v8, %v3800_v5 }
  0x7b   :  { %718 = vrot.lane.b32.xlu0 %v717_v13, %s3688_s10  ;;  %v1614_v13 = vld [vmem:[#allocation8 + $0x52] ss:$8 sm:$0x3]  ;;  %v1495_v16 = vrot.slane %v1488_v10, %v3806_v7  ;;  %v1563_v22 = vrot.slane %v1556_v17, %v3806_v7 }
  0x7c   :  { %v1619_v18 = vrot.slane %v1614_v13, %v3800_v5  ;;  %v1623_v19 = vrot.slane %v1614_v13, %v3803_v6  ;;  %v2075_v13 = vrot.slane %v2066_v8, %v3803_v6 }
  0x7e   :  { %v1624_v23 = vcombine.low %v1619_v18, %v1623_v19  ;;  %v2076_v19 = vcombine.low %v2071_v12, %v2075_v13 }
  0x7f   :  { %752 = vrot.lane.b32.xlu0 %v751_v20, %s3689_s8  ;;  %v1680_v20 = vld [vmem:[#allocation8 + $0x54] ss:$8 sm:$0x3] }
  0x80   :  { %v1685_v24 = vrot.slane %v1680_v20, %v3800_v5  ;;  %v1631_v28 = vrot.slane %v1624_v23, %v3806_v7 }
  0x83   :  { %820 = vrot.lane.b32.xlu0 %v819_v25, %s3690_s6  ;;  %v1689_v25 = vrot.slane %v1680_v20, %v3803_v6 }
  0x85   :  { %v1690_v30 = vcombine.low %v1685_v24, %v1689_v25 }
  0x87   :  { %888 = vrot.lane.b32.xlu0 %v887_v31, %s3691_s4  ;;  %v1753_v31 = vrot.slane %v1748_v26, %v3800_v5  ;;  %v1697_v34 = vrot.slane %v1690_v30, %v3806_v7  ;;  %v2083_v26 = vrot.slane %v2076_v19, %v3806_v7 }
  0x8b   :  { %956 = vrot.lane.b32.xlu0 %v955_v35, %s3692_s29  ;;  %v1758_v35 = vcombine.low %v1753_v31, %v1757_v33 }
  0x8f   :  { %1024 = vrot.lane.b32.xlu0 %v1023_v39, %s3671_s28  ;;  %v1765_v39 = vrot.slane %v1758_v35, %v3806_v7 }
  0x93   :  { %1091 = vrot.lane.b32.xlu0 %v1090_v44, %s5019_s27  ;;  %s5021_s27 = smov 68   ;;  %v1891_v44 = vrot.slane %v1884_v40, %v3806_v7 }
  0x97   :  { %1159 = vrot.lane.b32.xlu0 %v1158_v49, %s3694_s26  ;;  %v1970_v49 = vld [vmem:[#allocation8 + $0x65] ss:$8 sm:$0x3] }
  0x98   :  { %v1975_v52 = vrot.slane %v1970_v49, %v3800_v5  ;;  %v1979_v53 = vrot.slane %v1970_v49, %v3803_v6 }
  0x9a   :  { %v1980_v57 = vcombine.low %v1975_v52, %v1979_v53 }
  0x9b   :  { %1226 = vrot.lane.b32.xlu0 %v1225_v54, %s5020_s25  ;;  %s5022_s25 = smov 70   ;;  %v2002_v54 = vld [vmem:[#allocation8 + $0x66] ss:$8 sm:$0x3] }
  0x9c   :  { %v2007_v58 = vrot.slane %v2002_v54, %v3800_v5  ;;  %v1987_v61 = vrot.slane %v1980_v57, %v3806_v7 }
  0x9f   :  { %1294 = vrot.lane.b32.xlu0 %v1293_v59, %s5021_s27  ;;  %s5023_s27 = smov 81   ;;  %v2011_v59 = vrot.slane %v2002_v54, %v3803_v6 }
  0xa1   :  { %v2012_v63 = vcombine.low %v2007_v58, %v2011_v59 }
  0xa3   :  { %1362 = vrot.lane.b32.xlu0 %v1361_v0, %s5022_s25  ;;  %s5024_s25 = smov 83   ;;  %v2039_v0 = vrot.slane %v2034_v60, %v3800_v5  ;;  %v2019_v10 = vrot.slane %v2012_v63, %v3806_v7  ;;  %v2098_v60 = vld [vmem:[#allocation8 + $0x71] ss:$8 sm:$0x3] }
  0xa5   :  { %v4026_v14 = vpop.permute.xlu0 %276  ;;  %v2044_v11 = vcombine.low %v2039_v0, %v2043_v1  ;;  %v2107_v1 = vrot.slane %v2098_v60, %v3803_v6 }
  0xa7   :  { %1428 = vrot.lane.b32.xlu0 %v1427_v9, %s5023_s27  ;;  %s5025_s27 = smov 85   ;;  %v2051_v18 = vrot.slane %v2044_v11, %v3806_v7 }
  0xa9   :  { %v4032_v21 = vpop.permute.xlu0 %310 }
  0xaa   :  { %v312_v15 = vrot.slane %v4032_v21, 6 }
  0xab   :  { %1496 = vrot.lane.b32.xlu0 %v1495_v16, %s5024_s25  ;;  %s3701_s25 = smov 96   ;;  %v243_v16 = vpop.permute.xlu1 %242 }
  0xac   :  { %v244_v17 = vrot.slane %v243_v16, 6  ;;  %v314_v36 = vsel %vm313_vm15, %v312_v15, %v4032_v21 }
  0xad   :  { %v4038_v27 = vpop.permute.xlu0 %344 }
  0xae   :  { %v246_v23 = vsel %vm245_vm13, %v244_v17, %v243_v16  ;;  %v346_v37 = vrot.slane %v4038_v27, 6 }
  0xaf   :  { %1564 = vrot.lane.b32.xlu0 %v1563_v22, %s5025_s27  ;;  %s5028_s27 = smov 98   ;;  %v278_v22 = vrot.slane %v4026_v14, 6 }
  0xb1   :  { %v4044_v29 = vpop.permute.xlu0 %378  ;;  %v280_v33 = vsel %vm279_vm14, %v278_v22, %v4026_v14 }
  0xb2   :  { %v380_v40 = vrot.slane %v4044_v29, 6 }
  0xb3   :  { %1632 = vrot.lane.b32.xlu0 %v1631_v28, %s3701_s25 }
  0xb4   :  { %v382_v21 = vsel %vm381_vm1, %v380_v40, %v4044_v29 }
  0xb5   :  { %v4050_v38 = vpop.permute.xlu0 %412 }
  0xb6   :  { %v414_v43 = vrot.slane %v4050_v38, 6 }
  0xb7   :  { %1698 = vrot.lane.b32.xlu0 %v1697_v34, %s5028_s27  ;;  %s5030_s27 = smov 110  }
  0xb8   :  { %v416_v47 = vsel %vm415_vm2, %v414_v43, %v4050_v38 }
  0xb9   :  { %v4058_v46 = vpop.permute.xlu0 %446 }
  0xba   :  { %v448_v48 = vrot.slane %v4058_v46, 6 }
  0xbb   :  { %1766 = vrot.lane.b32.xlu0 %v1765_v39, %s5027_s21  ;;  %v348_v39 = vsel %vm347_vm0, %v346_v37, %v4038_v27  ;;  %s5029_s21 = smov 111  }
  0xbc   :  { %v450_v51 = vsel %vm449_vm3, %v448_v48, %v4058_v46 }
  0xbd   :  { %v4066_v55 = vpop.permute.xlu0 %480 }
  0xbe   :  { %v482_v52 = vrot.slane %v4066_v55, 6 }
  0xbf   :  { %1892 = vrot.lane.b32.xlu0 %v1891_v44, %s3657_s12  ;;  %s3705_s12 = smov 126   ;;  %v787_v44 = vpop.permute.xlu1 %786 }
  0xc3   :  { %1924 = vrot.lane.b32.xlu0 %v1923_v50, %s3656_s1  ;;  %s3704_s1 = smov 127   ;;  %v4131_v29 = vpop.permute.xlu1 %854 }
  0xc6   :  { %v154_v62 = vpop.permute.xlu0 %153 }
  0xc7   :  { %1956 = vrot.lane.b32.xlu0 %v1955_v56, %s3658_s13  ;;  %v155_v4 = vrot.slane %v154_v62, 6  ;;  %s3706_s13 = smov 125   ;;  %v484_v56 = vsel %vm483_vm4, %v482_v52, %v4066_v55  ;;  %v4145_v57 = vpop.permute.xlu1 %922  ;;  %v2103_v55 = vrot.slane %v2098_v60, %v3800_v5 }
  0xc9   :  { %v157_v9 = vsel %vm5043_vm11, %v155_v4, %v154_v62  ;;  %v788_v62 = vrot.slane %v787_v44, 6  ;;  %v2108_v17 = vcombine.low %v2103_v55, %v2107_v1 }
  0xca   :  { %164 = vst.msk [vmem:[#allocation2] sm:$0x3f] %vm4076_vm12, %v157_v9  ;;  %v2130_v9 = vld [vmem:[#allocation8 + $0x72] ss:$8 sm:$0x3] }
  0xcb   :  { %1988 = vrot.lane.b32.xlu0 %v1987_v61, %s3660_s15  ;;  %s3708_s15 = smov 123   ;;  %v790_v13 = vsel %vm5033_vm8, %v788_v62, %v787_v44  ;;  %v2139_v19 = vrot.slane %v2130_v9, %v3803_v6  ;;  %v2226_v44 = vld [vmem:[#allocation8 + $0x75] ss:$8 sm:$0x3]  ;;  %vm5036_vm8 = vcmask 261120  }
  0xcc   :  { %v2235_v52 = vrot.slane %v2226_v44, %v3803_v6 }
  0xcf   :  { %2020 = vrot.lane.b32.xlu0 %v2019_v10, %s3662_s17  ;;  %s3709_s17 = smov 122   ;;  %v4156_v10 = vpop.permute.xlu1 %990 }
  0xd1   :  { %v193_v20 = vpop.permute.xlu0 %192  ;;  %v4091_v24 = vld [vmem:[#allocation2] sm:$0x3f] }
  0xd2   :  { %v194_v25 = vrot.slane %v193_v20, 6  ;;  %v248_v28 = vmul.f32 %v246_v23, %v4091_v24  ;;  %v282_v34 = vmul.f32 %v280_v33, %v4091_v24  ;;  %v316_v32 = vmul.f32 %v314_v36, %v4091_v24 }
  0xd3   :  { %2052 = vrot.lane.b32.xlu0 %v2051_v18, %s3664_s19  ;;  %v350_v41 = vmul.f32 %v348_v39, %v4091_v24  ;;  %v384_v45 = vmul.f32 %v382_v21, %v4091_v24  ;;  %v418_v49 = vmul.f32 %v416_v47, %v4091_v24  ;;  %v452_v38 = vmul.f32 %v450_v51, %v4091_v24  ;;  %s3710_s19 = smov 112  }
  0xd4   :  { %v195_v30 = vsel %vm5043_vm11, %v194_v25, %v193_v20  ;;  %250 = vrot.lane.b32.xlu1 %v248_v28, %s3704_s1  ;;  %v486_v58 = vmul.f32 %v484_v56, %v4091_v24  ;;  %v2135_v18 = vrot.slane %v2130_v9, %v3800_v5  ;;  %v2162_v20 = vld [vmem:[#allocation8 + $0x73] ss:$8 sm:$0x3]  ;;  %v2258_v56 = vld [vmem:[#allocation8 + $0x76] ss:$8 sm:$0x3] }
  0xd5   :  { %197 = vst.msk [vmem:[#allocation3] sm:$0x3f] %vm4076_vm12, %v195_v30  ;;  %v515_v31 = vpop.permute.xlu0 %514  ;;  %v2167_v28 = vrot.slane %v2162_v20, %v3800_v5  ;;  %v4175_v30 = vpop.permute.xlu1 %1057  ;;  %vm653_vm12 = vcmask 179200   ;;  %v2267_v62 = vrot.slane %v2258_v56, %v3803_v6 }
  0xd6   :  { %v516_v53 = vrot.slane %v515_v31, 6  ;;  %v2140_v15 = vcombine.low %v2135_v18, %v2139_v19 }
  0xd7   :  { %2084 = vrot.lane.b32.xlu0 %v2083_v26, %s3654_s9  ;;  %s3707_s9 = smov 124   ;;  %v792_v26 = vmul.f32 %v790_v13, %v4091_v24 }
  0xd8   :  { %284 = vrot.lane.b32.xlu1 %v282_v34, %s3705_s12  ;;  %v518_v46 = vsel %vm517_vm5, %v516_v53, %v515_v31  ;;  %v2115_v31 = vrot.slane %v2108_v17, %v3806_v7  ;;  %v2171_v34 = vrot.slane %v2162_v20, %v3803_v6  ;;  %v2147_v40 = vrot.slane %v2140_v15, %v3806_v7 }
  0xd9   :  { %v549_v35 = vpop.permute.xlu0 %548  ;;  %v520_v0 = vmul.f32 %v518_v46, %v4091_v24 }
  0xda   :  { %v550_v59 = vrot.slane %v549_v35, 6  ;;  %v2172_v21 = vcombine.low %v2167_v28, %v2171_v34 }
  0xdc   :  { %318 = vrot.lane.b32.xlu1 %v316_v32, %s3706_s13  ;;  %v552_v2 = vsel %vm551_vm6, %v550_v59, %v549_v35  ;;  %v2194_v35 = vld [vmem:[#allocation8 + $0x74] ss:$8 sm:$0x3] }
  0xdd   :  { %v4110_v14 = vpop.permute.xlu0 %582  ;;  %v554_v16 = vmul.f32 %v552_v2, %v4091_v24  ;;  %v2203_v39 = vrot.slane %v2194_v35, %v3803_v6 }
  0xde   :  { %v584_v4 = vrot.slane %v4110_v14, 6 }
  0xe0   :  { %352 = vrot.lane.b32.xlu1 %v350_v41, %s3707_s9  ;;  %v586_v22 = vsel %vm585_vm9, %v584_v4, %v4110_v14  ;;  %v2199_v14 = vrot.slane %v2194_v35, %v3800_v5 }
  0xe1   :  { %v4117_v42 = vpop.permute.xlu0 %616  ;;  %v588_v33 = vmul.f32 %v586_v22, %v4091_v24 }
  0xe2   :  { %v618_v23 = vrot.slane %v4117_v42, 6  ;;  %v2204_v48 = vcombine.low %v2199_v14, %v2203_v39  ;;  %v2386_v14 = vld [vmem:[#allocation8 + $0x82] ss:$8 sm:$0x3]  ;;  %v924_v39 = vrot.slane %v4145_v57, 6 }
  0xe4   :  { %386 = vrot.lane.b32.xlu1 %v384_v45, %s3708_s15  ;;  %v620_v36 = vsel %vm619_vm10, %v618_v23, %v4117_v42  ;;  %v4195_v45 = vpop.permute.xlu1 %1125  ;;  %v2211_v46 = vrot.slane %v2204_v48, %v3806_v7 }
  0xe5   :  { %v4124_v27 = vpop.permute.xlu0 %650  ;;  %v622_v41 = vmul.f32 %v620_v36, %v4091_v24 }
  0xe6   :  { %v652_v37 = vrot.slane %v4124_v27, 6 }
  0xe8   :  { %420 = vrot.lane.b32.xlu1 %v418_v49, %s3709_s17  ;;  %v654_v42 = vsel %vm653_vm12, %v652_v37, %v4124_v27  ;;  %v2179_v49 = vrot.slane %v2172_v21, %v3806_v7  ;;  %v2231_v27 = vrot.slane %v2226_v44, %v3800_v5  ;;  %v4212_v59 = vpop.permute.xlu1 %1192  ;;  %v2395_v21 = vrot.slane %v2386_v14, %v3803_v6 }
  0xe9   :  { %v4133_v50 = vpop.permute.xlu0 %684  ;;  %v656_v51 = vmul.f32 %v654_v42, %v4091_v24 }
  0xea   :  { %v686_v43 = vrot.slane %v4133_v50, 6 }
  0xec   :  { %454 = vrot.lane.b32.xlu1 %v452_v38, %s3710_s19  ;;  %v688_v38 = vsel %vm5036_vm8, %v686_v43, %v4133_v50  ;;  %v2263_v50 = vrot.slane %v2258_v56, %v3800_v5  ;;  %vm5038_vm8 = vcmask 293888   ;;  %v4232_v17 = vpop.permute.xlu1 %1260 }
  0xed   :  { %v4140_v54 = vpop.permute.xlu0 %718  ;;  %v690_v60 = vmul.f32 %v688_v38, %v4091_v24 }
  0xee   :  { %v720_v53 = vrot.slane %v4140_v54, 6 }
  0xf0   :  { %488 = vrot.lane.b32.xlu1 %v486_v58, %s5029_s21  ;;  %s5031_s21 = smov 94   ;;  %v4249_v34 = vpop.permute.xlu1 %1328 }
  0xf1   :  { %v753_v61 = vpop.permute.xlu0 %752 }
  0xf2   :  { %v754_v63 = vrot.slane %v753_v61, 6 }
  0xf4   :  { %v756_v8 = vsel %vm5035_vm7, %v754_v63, %v753_v61  ;;  %522 = vrot.lane.b32.xlu1 %v520_v0, %s5030_s27  ;;  %s5032_s27 = smov 109   ;;  %vm5037_vm7 = vcmask 269312   ;;  %v2236_v61 = vcombine.low %v2231_v27, %v2235_v52  ;;  %v2290_v63 = vld [vmem:[#allocation8 + $0x77] ss:$8 sm:$0x3]  ;;  %v4269_v27 = vpop.permute.xlu1 %1396 }
  0xf5   :  { %v4158_v11 = vpop.permute.xlu0 %820  ;;  %v758_v12 = vmul.f32 %v756_v8, %v4091_v24  ;;  %v722_v0 = vsel %vm5037_vm7, %v720_v53, %v4140_v54  ;;  %v2295_v2 = vrot.slane %v2290_v63, %v3800_v5  ;;  %v2299_v4 = vrot.slane %v2290_v63, %v3803_v6 }
  0xf6   :  { %v822_v55 = vrot.slane %v4158_v11, 6  ;;  %v2243_v8 = vrot.slane %v2236_v61, %v3806_v7  ;;  %v724_v9 = vmul.f32 %v722_v0, %v4091_v24  ;;  %v856_v54 = vrot.slane %v4131_v29, 6  ;;  %v2450_v61 = vld [vmem:[#allocation8 + $0x84] ss:$8 sm:$0x3] }
  0xf7   :  { %760 = vrot.lane.b32.xlu0 %v758_v12, %s5031_s21  ;;  %s5034_s21 = smov 93   ;;  %v2268_v12 = vcombine.low %v2263_v50, %v2267_v62  ;;  %vm5039_vm7 = vcmask 302080   ;;  %v2300_v19 = vcombine.low %v2295_v2, %v2299_v4  ;;  %v2455_v2 = vrot.slane %v2450_v61, %v3800_v5 }
  0xf8   :  { %556 = vrot.lane.b32.xlu1 %v554_v16, %s5032_s27  ;;  %s3716_s27 = smov 108   ;;  %v824_v13 = vsel %vm5038_vm8, %v822_v55, %v4158_v11  ;;  %v2322_v16 = vld [vmem:[#allocation8 + $0x80] ss:$8 sm:$0x3]  ;;  %vm5040_vm8 = vcmask 310272   ;;  %v4284_v63 = vpop.permute.xlu1 %1462  ;;  %v2459_v4 = vrot.slane %v2450_v61, %v3803_v6 }
  0xf9   :  { %v4170_v25 = vpop.permute.xlu0 %888  ;;  %v2275_v20 = vrot.slane %v2268_v12, %v3806_v7  ;;  %v826_v22 = vmul.f32 %v824_v13, %v4091_v24  ;;  %v2327_v23 = vrot.slane %v2322_v16, %v3800_v5  ;;  %v2331_v11 = vrot.slane %v2322_v16, %v3803_v6 }
  0xfa   :  { %v890_v28 = vrot.slane %v4170_v25, 6  ;;  %v2307_v15 = vrot.slane %v2300_v19, %v3806_v7  ;;  %v2460_v19 = vcombine.low %v2455_v2, %v2459_v4  ;;  %v2642_v4 = vld [vmem:[#allocation8 + $0x92] ss:$8 sm:$0x3] }
  0xfb   :  { %794 = vrot.lane.b32.xlu0 %v792_v26, %s5034_s21  ;;  %s3717_s21 = smov 107   ;;  %v858_v26 = vsel %vm5039_vm7, %v856_v54, %v4131_v29  ;;  %v2332_v35 = vcombine.low %v2327_v23, %v2331_v11  ;;  %vm5041_vm7 = vcmask 392192   ;;  %v2514_v23 = vld [vmem:[#allocation8 + $0x86] ss:$8 sm:$0x3] }
  0xfc   :  { %590 = vrot.lane.b32.xlu1 %v588_v33, %s3716_s27  ;;  %v860_v36 = vmul.f32 %v858_v26, %v4091_v24  ;;  %v4304_v11 = vpop.permute.xlu1 %1530 }
  0xfd   :  { %v4184_v32 = vpop.permute.xlu0 %956  ;;  %v2339_v43 = vrot.slane %v2332_v35, %v3806_v7  ;;  %v2523_v35 = vrot.slane %v2514_v23, %v3803_v6 }
  0xff   :  { %2116 = vrot.lane.b32.xlu0 %v2115_v31, %s3667_s24  ;;  %s3718_s24 = smov 106   ;;  %v2354_v31 = vld [vmem:[#allocation8 + $0x81] ss:$8 sm:$0x3] }
 0x100   :  { %624 = vrot.lane.b32.xlu1 %v622_v41, %s3717_s21  ;;  %v2359_v29 = vrot.slane %v2354_v31, %v3800_v5  ;;  %v2363_v37 = vrot.slane %v2354_v31, %v3803_v6  ;;  %v2391_v41 = vrot.slane %v2386_v14, %v3800_v5 }
 0x101   :  { %v4197_v47 = vpop.permute.xlu0 %1024 }
 0x102   :  { %v2364_v44 = vcombine.low %v2359_v29, %v2363_v37  ;;  %v2396_v52 = vcombine.low %v2391_v41, %v2395_v21  ;;  %v2546_v29 = vld [vmem:[#allocation8 + $0x87] ss:$8 sm:$0x3] }
 0x103   :  { %2148 = vrot.lane.b32.xlu0 %v2147_v40, %s3675_s5  ;;  %s3719_s5 = smov 95   ;;  %v892_v40 = vsel %vm5040_vm8, %v890_v28, %v4170_v25  ;;  %v926_v25 = vsel %vm5041_vm7, %v924_v39, %v4145_v57  ;;  %vm5042_vm8 = vcmask 400384   ;;  %vm5057_vm7 = vcmask 408576   ;;  %v4319_v39 = vpop.permute.xlu1 %1598 }
 0x104   :  { %658 = vrot.lane.b32.xlu1 %v656_v51, %s3718_s24  ;;  %v894_v48 = vmul.f32 %v892_v40, %v4091_v24  ;;  %v2418_v51 = vld [vmem:[#allocation8 + $0x83] ss:$8 sm:$0x3]  ;;  %v2371_v38 = vrot.slane %v2364_v44, %v3806_v7  ;;  %v928_v53 = vmul.f32 %v926_v25, %v4091_v24  ;;  %v2403_v62 = vrot.slane %v2396_v52, %v3806_v7 }
 0x105   :  { %v4208_v58 = vpop.permute.xlu0 %1091  ;;  %v2423_v56 = vrot.slane %v2418_v51, %v3800_v5  ;;  %v2427_v57 = vrot.slane %v2418_v51, %v3803_v6  ;;  %v2467_v28 = vrot.slane %v2460_v19, %v3806_v7  ;;  %v2555_v21 = vrot.slane %v2546_v29, %v3803_v6  ;;  %v2674_v19 = vld [vmem:[#allocation8 + $0x93] ss:$8 sm:$0x3] }
 0x106   :  { %v1127_v44 = vrot.slane %v4195_v45, 6 }
 0x107   :  { %2180 = vrot.lane.b32.xlu0 %v2179_v49, %s3677_s7  ;;  %s3720_s7 = smov 92   ;;  %v958_v49 = vrot.slane %v4184_v32, 6  ;;  %v2428_v0 = vcombine.low %v2423_v56, %v2427_v57  ;;  %v2610_v57 = vld [vmem:[#allocation8 + $0x91] ss:$8 sm:$0x3] }
 0x108   :  { %692 = vrot.lane.b32.xlu1 %v690_v60, %s3701_s25 }
 0x109   :  { %v4221_v1 = vpop.permute.xlu0 %1159  ;;  %v960_v60 = vsel %vm5042_vm8, %v958_v49, %v4184_v32  ;;  %v2482_v32 = vld [vmem:[#allocation8 + $0x85] ss:$8 sm:$0x3]  ;;  %v2435_v16 = vrot.slane %v2428_v0, %v3806_v7  ;;  %vm5044_vm8 = vcmask 424960   ;;  %v2615_v0 = vrot.slane %v2610_v57, %v3800_v5 }
 0x10a   :  { %v962_v55 = vmul.f32 %v960_v60, %v4091_v24  ;;  %v2487_v12 = vrot.slane %v2482_v32, %v3800_v5  ;;  %v2491_v54 = vrot.slane %v2482_v32, %v3803_v6  ;;  %v1161_v56 = vrot.slane %v4221_v1, 6 }
 0x10b   :  { %2212 = vrot.lane.b32.xlu0 %v2211_v46, %s3679_s0  ;;  %s3721_s0 = smov 91   ;;  %v992_v46 = vrot.slane %v4156_v10, 6 }
 0x10c   :  { %726 = vrot.lane.b32.xlu1 %v724_v9, %s3719_s5  ;;  %v1026_v9 = vrot.slane %v4197_v47, 6  ;;  %v2492_v26 = vcombine.low %v2487_v12, %v2491_v54 }
 0x10d   :  { %v4234_v18 = vpop.permute.xlu0 %1226 }
 0x10e   :  { %v2499_v14 = vrot.slane %v2492_v26, %v3806_v7 }
 0x10f   :  { %2244 = vrot.lane.b32.xlu0 %v2243_v8, %s3681_s11  ;;  %v994_v8 = vsel %vm5057_vm7, %v992_v46, %v4156_v10  ;;  %v1059_v10 = vrot.slane %v4175_v30, 6  ;;  %v4339_v46 = vpop.permute.xlu1 %1664  ;;  %s3731_s11 = smov 61   ;;  %vm5060_vm7 = vcmask 670720  }
 0x110   :  { %828 = vrot.lane.b32.xlu1 %v826_v22, %s3720_s7  ;;  %v1027_v22 = vsel %vm5043_vm11, %v1026_v9, %v4197_v47  ;;  %vm5045_vm11 = vcmask 433152  }
 0x111   :  { %v4245_v33 = vpop.permute.xlu0 %1294  ;;  %v1029_v31 = vmul.f32 %v1027_v22, %v4091_v24  ;;  %v1061_v47 = vsel %vm5044_vm8, %v1059_v10, %v4175_v30  ;;  %v2551_v30 = vrot.slane %v2546_v29, %v3800_v5  ;;  %vm5046_vm8 = vcmask 441344  }
 0x112   :  { %v1063_v41 = vmul.f32 %v1061_v47, %v4091_v24  ;;  %v1228_v10 = vrot.slane %v4234_v18, 6  ;;  %v2679_v22 = vrot.slane %v2674_v19, %v3800_v5  ;;  %v2706_v47 = vld [vmem:[#allocation8 + $0x94] ss:$8 sm:$0x3] }
 0x113   :  { %2276 = vrot.lane.b32.xlu0 %v2275_v20, %s3683_s23  ;;  %s3722_s23 = smov 90   ;;  %v996_v20 = vmul.f32 %v994_v8, %v4091_v24  ;;  %v4354_v9 = vpop.permute.xlu1 %1732 }
 0x114   :  { %862 = vrot.lane.b32.xlu1 %v860_v36, %s3721_s0  ;;  %v1093_v36 = vrot.slane %v4208_v58, 6 }
 0x115   :  { %v4261_v42 = vpop.permute.xlu0 %1362 }
 0x117   :  { %2308 = vrot.lane.b32.xlu0 %v2307_v15, %s3685_s22  ;;  %v2519_v15 = vrot.slane %v2514_v23, %v3800_v5  ;;  %v2683_v23 = vrot.slane %v2674_v19, %v3803_v6  ;;  %v1398_v19 = vrot.slane %v4269_v27, 6 }
 0x118   :  { %896 = vrot.lane.b32.xlu1 %v894_v48, %s3722_s23  ;;  %v1095_v48 = vsel %vm5045_vm11, %v1093_v36, %v4208_v58  ;;  %v1129_v58 = vsel %vm5046_vm8, %v1127_v44, %v4195_v45  ;;  %vm5047_vm11 = vcmask 523264   ;;  %v2619_v45 = vrot.slane %v2610_v57, %v3803_v6  ;;  %v4374_v36 = vpop.permute.xlu1 %1800 }
 0x119   :  { %v4280_v50 = vpop.permute.xlu0 %1428  ;;  %v2524_v40 = vcombine.low %v2519_v15, %v2523_v35  ;;  %v1163_v2 = vsel %vm5047_vm11, %v1161_v56, %v4221_v1  ;;  %vm5048_vm8 = vcmask 531456   ;;  %v2651_v1 = vrot.slane %v2642_v4, %v3803_v6 }
 0x11a   :  { %v2620_v12 = vcombine.low %v2615_v0, %v2619_v45  ;;  %v1165_v54 = vmul.f32 %v1163_v2, %v4091_v24  ;;  %vm5049_vm11 = vcmask 539648   ;;  %v2684_v29 = vcombine.low %v2679_v22, %v2683_v23 }
 0x11b   :  { %2340 = vrot.lane.b32.xlu0 %v2339_v43, %s3688_s10  ;;  %s3723_s10 = smov 79   ;;  %v2578_v43 = vld [vmem:[#allocation8 + $0x90] ss:$8 sm:$0x3]  ;;  %v2531_v52 = vrot.slane %v2524_v40, %v3806_v7  ;;  %v1230_v35 = vsel %vm5049_vm11, %v1228_v10, %v4234_v18  ;;  %vm5051_vm11 = vcmask 556032   ;;  %v1364_v2 = vrot.slane %v4261_v42, 6 }
 0x11c   :  { %930 = vrot.lane.b32.xlu1 %v928_v53, %s3673_s30  ;;  %v2583_v25 = vrot.slane %v2578_v43, %v3800_v5  ;;  %v2587_v49 = vrot.slane %v2578_v43, %v3803_v6  ;;  %v1097_v53 = vmul.f32 %v1095_v48, %v4091_v24  ;;  %v1232_v40 = vmul.f32 %v1230_v35, %v4091_v24  ;;  %v2738_v43 = vld [vmem:[#allocation8 + $0x95] ss:$8 sm:$0x3]  ;;  %v2834_v10 = vld [vmem:[#allocation8 + $0xa0] ss:$8 sm:$0x3] }
 0x11d   :  { %v4296_v13 = vpop.permute.xlu0 %1496  ;;  %v2691_v48 = vrot.slane %v2684_v29, %v3806_v7  ;;  %v2843_v35 = vrot.slane %v2834_v10, %v3803_v6 }
 0x11e   :  { %v2588_v60 = vcombine.low %v2583_v25, %v2587_v49  ;;  %v4389_v25 = vpop.permute.xlu1 %1834 }
 0x11f   :  { %2372 = vrot.lane.b32.xlu0 %v2371_v38, %s3689_s8  ;;  %s3724_s8 = smov 78   ;;  %v2556_v38 = vcombine.low %v2551_v30, %v2555_v21  ;;  %v2715_v30 = vrot.slane %v2706_v47, %v3803_v6  ;;  %v1296_v21 = vrot.slane %v4245_v33, 6 }
 0x120   :  { %964 = vrot.lane.b32.xlu1 %v962_v55, %s3723_s10  ;;  %v1194_v55 = vrot.slane %v4212_v59, 6  ;;  %v2595_v8 = vrot.slane %v2588_v60, %v3806_v7 }
 0x121   :  { %v4315_v37 = vpop.permute.xlu0 %1564  ;;  %v2563_v61 = vrot.slane %v2556_v38, %v3806_v7  ;;  %v2747_v38 = vrot.slane %v2738_v43, %v3803_v6  ;;  %v1298_v56 = vsel %vm5051_vm11, %v1296_v21, %v4245_v33  ;;  %vm5055_vm11 = vcmask 572416  }
 0x123   :  { %2404 = vrot.lane.b32.xlu0 %v2403_v62, %s3659_s14  ;;  %s3725_s14 = smov 77   ;;  %v1131_v62 = vmul.f32 %v1129_v58, %v4091_v24  ;;  %v1330_v58 = vrot.slane %v4249_v34, 6 }
 0x124   :  { %998 = vrot.lane.b32.xlu1 %v996_v20, %s3724_s8  ;;  %v1196_v20 = vsel %vm5048_vm8, %v1194_v55, %v4212_v59  ;;  %v1262_v59 = vrot.slane %v4232_v17, 6  ;;  %vm5050_vm8 = vcmask 547840   ;;  %v1300_v55 = vmul.f32 %v1298_v56, %v4091_v24 }
 0x125   :  { %v4331_v51 = vpop.permute.xlu0 %1632  ;;  %v1198_v15 = vmul.f32 %v1196_v20, %v4091_v24  ;;  %v1366_v20 = vsel %vm5055_vm11, %v1364_v2, %v4261_v42  ;;  %vm1431_vm11 = vcmask 662528  }
 0x126   :  { %v1264_v18 = vsel %vm5050_vm8, %v1262_v59, %v4232_v17  ;;  %v2743_v17 = vrot.slane %v2738_v43, %v3800_v5  ;;  %vm5054_vm8 = vcmask 564224   ;;  %v2839_v59 = vrot.slane %v2834_v10, %v3800_v5 }
 0x127   :  { %2436 = vrot.lane.b32.xlu0 %v2435_v16, %s3690_s6  ;;  %s3726_s6 = smov 76   ;;  %v2647_v16 = vrot.slane %v2642_v4, %v3800_v5  ;;  %v1332_v33 = vsel %vm5054_vm8, %v1330_v58, %v4249_v34  ;;  %v2802_v4 = vld [vmem:[#allocation8 + $0x97] ss:$8 sm:$0x3]  ;;  %vm5059_vm8 = vcmask 654336  }
 0x128   :  { %1031 = vrot.lane.b32.xlu1 %v1029_v31, %s3725_s14  ;;  %v2748_v45 = vcombine.low %v2743_v17, %v2747_v38  ;;  %v2811_v34 = vrot.slane %v2802_v4, %v3803_v6  ;;  %v1399_v42 = vsel %vm5059_vm8, %v1398_v19, %v4269_v27  ;;  %v1498_v17 = vrot.slane %v4296_v13, 6 }
 0x129   :  { %v4350_v32 = vpop.permute.xlu0 %1698  ;;  %v2652_v31 = vcombine.low %v2647_v16, %v2651_v1  ;;  %v1334_v16 = vmul.f32 %v1332_v33, %v4091_v24  ;;  %v2807_v1 = vrot.slane %v2802_v4, %v3800_v5  ;;  %v1401_v29 = vmul.f32 %v1399_v42, %v4091_v24 }
 0x12a   :  { %vm1499_vm8 = vcmask 678912   ;;  %v1566_v4 = vrot.slane %v4315_v37, 6 }
 0x12b   :  { %2468 = vrot.lane.b32.xlu0 %v2467_v28, %s3661_s16  ;;  %s5053_s16 = smov 75   ;;  %v2627_v28 = vrot.slane %v2620_v12, %v3806_v7  ;;  %v2755_v12 = vrot.slane %v2748_v45, %v3806_v7 }
 0x12c   :  { %1065 = vrot.lane.b32.xlu1 %v1063_v41, %s3726_s6  ;;  %v2711_v41 = vrot.slane %v2706_v47, %v3800_v5  ;;  %v1430_v47 = vrot.slane %v4280_v50, 6 }
 0x12d   :  { %v4366_v26 = vpop.permute.xlu0 %1766 }
 0x12e   :  { %v2716_v49 = vcombine.low %v2711_v41, %v2715_v30  ;;  %v2844_v30 = vcombine.low %v2839_v59, %v2843_v35  ;;  %v1432_v27 = vsel %vm1431_vm11, %v1430_v47, %v4280_v50  ;;  %v1634_v59 = vrot.slane %v4331_v51, 6 }
 0x12f   :  { %2500 = vrot.lane.b32.xlu0 %v2499_v14, %s3691_s4  ;;  %s3728_s4 = smov 74   ;;  %v2659_v14 = vrot.slane %v2652_v31, %v3806_v7  ;;  %v1434_v43 = vmul.f32 %v1432_v27, %v4091_v24 }
 0x130   :  { %1099 = vrot.lane.b32.xlu1 %v1097_v53, %s5053_s16  ;;  %v2770_v53 = vld [vmem:[#allocation8 + $0x96] ss:$8 sm:$0x3]  ;;  %s5109_s16 = smov 54  }
 0x131   :  { %v4385_v44 = vpop.permute.xlu0 %1892  ;;  %v2775_v57 = vrot.slane %v2770_v53, %v3800_v5  ;;  %v2779_v60 = vrot.slane %v2770_v53, %v3803_v6 }
 0x132   :  { %v1894_v21 = vrot.slane %v4385_v44, 6 }
 0x133   :  { %2532 = vrot.lane.b32.xlu0 %v2531_v52, %s3663_s18  ;;  %v1266_v52 = vmul.f32 %v1264_v18, %v4091_v24  ;;  %v1464_v18 = vrot.slane %v4284_v63, 6 }
 0x134   :  { %1133 = vrot.lane.b32.xlu1 %v1131_v62, %s3728_s4  ;;  %v2723_v62 = vrot.slane %v2716_v49, %v3806_v7  ;;  %v1895_v38 = vsel %vm245_vm13, %v1894_v21, %v4385_v44  ;;  %vm1567_vm13 = vcmask 695296  }
 0x137   :  { %2564 = vrot.lane.b32.xlu0 %v2563_v61, %s3692_s29  ;;  %s3729_s29 = smov 63   ;;  %v4401_v61 = vpop.permute.xlu0 %1924 }
 0x138   :  { %1167 = vrot.lane.b32.xlu1 %v1165_v54, %s3694_s26  ;;  %v1926_v53 = vrot.slane %v4401_v61, 6 }
 0x13a   :  { %v1927_v44 = vsel %vm279_vm14, %v1926_v53, %v4401_v61  ;;  %vm5065_vm14 = vcmask 703488   ;;  %v1700_v53 = vrot.slane %v4350_v32, 6 }
 0x13b   :  { %2596 = vrot.lane.b32.xlu0 %v2595_v8, %s3665_s20  ;;  %s5052_s20 = smov 62   ;;  %v2780_v8 = vcombine.low %v2775_v57, %v2779_v60  ;;  %v1957_v22 = vpop.permute.xlu0 %1956  ;;  %v4460_v57 = vld [vmem:[#allocation3] sm:$0x3f]  ;;  %v1500_v60 = vsel %vm1499_vm8, %v1498_v17, %v4296_v13 }
 0x13c   :  { %1200 = vrot.lane.b32.xlu1 %v1198_v15, %s3729_s29  ;;  %v2812_v15 = vcombine.low %v2807_v1, %v2811_v34  ;;  %v1958_v45 = vrot.slane %v1957_v22, 6  ;;  %v1600_v34 = vrot.slane %v4319_v39, 6 }
 0x13d   :  { %v2787_v23 = vrot.slane %v2780_v8, %v3806_v7  ;;  %v1929_v8 = vmul.f32 %v1927_v44, %v4460_v57 }
 0x13e   :  { %v1959_v61 = vsel %vm313_vm15, %v1958_v45, %v1957_v22  ;;  %vm695_vm15 = vcmask 785408  }
 0x13f   :  { %2628 = vrot.lane.b32.xlu0 %v2627_v28, %s3671_s28  ;;  %s5107_s28 = smov 52   ;;  %v1368_v28 = vmul.f32 %v1366_v20, %v4091_v24  ;;  %v1961_v19 = vmul.f32 %v1959_v61, %v4460_v57  ;;  %v1635_v27 = vsel %vm695_vm15, %v1634_v59, %v4331_v51 }
 0x140   :  { %1234 = vrot.lane.b32.xlu1 %v1232_v40, %s5052_s20  ;;  %s3732_s20 = smov 60   ;;  %v2819_v40 = vrot.slane %v2812_v15, %v3806_v7  ;;  %v201_v15 = vld [vmem:[#allocation8] ss:$8 sm:$0x3] }
 0x143   :  { %2660 = vrot.lane.b32.xlu0 %v2659_v14, %s5107_s28  ;;  %s5108_s28 = smov 53   ;;  %v1989_v14 = vpop.permute.xlu0 %1988 }
 0x144   :  { %1268 = vrot.lane.b32.xlu1 %v1266_v52, %s3731_s11  ;;  %v1466_v52 = vsel %vm5060_vm7, %v1464_v18, %v4284_v63  ;;  %v1532_v63 = vrot.slane %v4304_v11, 6  ;;  %vm1533_vm7 = vcmask 687104   ;;  %v1666_v18 = vrot.slane %v4339_v46, 6 }
 0x145   :  { %v1468_v58 = vmul.f32 %v1466_v52, %v4091_v24 }
 0x146   :  { %v4405_v0 = vpop.permute.xlu1 %250  ;;  %v1534_v13 = vsel %vm1533_vm7, %v1532_v63, %v4304_v11  ;;  %v1568_v11 = vsel %vm1567_vm13, %v1566_v4, %v4315_v37  ;;  %v1602_v37 = vsel %vm5065_vm14, %v1600_v34, %v4319_v39  ;;  %vm355_vm14 = vcmask 1014784  }
 0x147   :  { %2692 = vrot.lane.b32.xlu0 %v2691_v48, %s5108_s28  ;;  %s5056_s28 = smov 59   ;;  %v2851_v48 = vrot.slane %v2844_v30, %v3806_v7  ;;  %v2021_v50 = vpop.permute.xlu0 %2020  ;;  %v1604_v30 = vmul.f32 %v1602_v37, %v4091_v24  ;;  %v252_v61 = vrot.slane %v4405_v0, 2 }
 0x148   :  { %1302 = vrot.lane.b32.xlu1 %v1300_v55, %s3732_s20  ;;  %v1502_v55 = vmul.f32 %v1500_v60, %v4091_v24  ;;  %v2022_v22 = vrot.slane %v2021_v50, 6 }
 0x14a   :  { %v4414_v54 = vpop.permute.xlu1 %284  ;;  %v2023_v47 = vsel %vm381_vm1, %v2022_v22, %v2021_v50  ;;  %v1637_v50 = vmul.f32 %v1635_v27, %v4091_v24  ;;  %vm5062_vm1 = vcmask 801792   ;;  %v2866_v27 = vld [vmem:[#allocation8 + $0xa1] ss:$8 sm:$0x3] }
 0x14b   :  { %2724 = vrot.lane.b32.xlu0 %v2723_v62, %s5109_s16  ;;  %s5058_s16 = smov 58   ;;  %v1897_v62 = vmul.f32 %v1895_v38, %v4460_v57  ;;  %v2053_v33 = vpop.permute.xlu0 %2052  ;;  %v2025_v21 = vmul.f32 %v2023_v47, %v4460_v57  ;;  %v286_v22 = vrot.slane %v4414_v54, 2  ;;  %v4554_v47 = vld [vmem:[#allocation2] sm:$0x3f] }
 0x14c   :  { %1336 = vrot.lane.b32.xlu1 %v1334_v16, %s5056_s28  ;;  %s5110_s28 = smov 65   ;;  %v1536_v16 = vmul.f32 %v1534_v13, %v4091_v24  ;;  %v1702_v13 = vsel %vm5062_vm1, %v1700_v53, %v4350_v32  ;;  %v199_v32 = vstv %s5004_s2  ;;  %vm5066_vm1 = vcmask 818176   ;;  %s5113_s2 = smov 111  }
 0x14e   :  { %v4426_v31 = vpop.permute.xlu1 %318 }
 0x14f   :  { %2756 = vrot.lane.b32.xlu0 %v2755_v12, %s3694_s26  ;;  %v1990_v12 = vrot.slane %v1989_v14, 6  ;;  %v2085_v20 = vpop.permute.xlu0 %2084  ;;  %v320_v37 = vrot.slane %v4426_v31, 2 }
 0x150   :  { %1370 = vrot.lane.b32.xlu1 %v1368_v28, %s5058_s16  ;;  %s5111_s16 = smov 66   ;;  %v2086_v52 = vrot.slane %v2085_v20, 6 }
 0x151   :  { %v1991_v10 = vsel %vm347_vm0, %v1990_v12, %v1989_v14  ;;  %v206_v14 = vrot.slane %v201_v15, %v3800_v5  ;;  %vm5063_vm0 = vcmask 793600  }
 0x152   :  { %v4437_v41 = vpop.permute.xlu1 %352  ;;  %v1993_v35 = vmul.f32 %v1991_v10, %v4460_v57  ;;  %v1668_v51 = vsel %vm5063_vm0, %v1666_v18, %v4339_v46  ;;  %v2087_v60 = vsel %vm449_vm3, %v2086_v52, %v2085_v20  ;;  %v200_v46 = vld [vmem:[#allocation2] sm:$0xf]  ;;  %vm253_vm3 = vcmask 1039360  }
 0x153   :  { %2788 = vrot.lane.b32.xlu0 %v2787_v23, %s5110_s28  ;;  %s5061_s28 = smov 47   ;;  %v1570_v23 = vmul.f32 %v1568_v11, %v4091_v24  ;;  %v1670_v45 = vmul.f32 %v1668_v51, %v4091_v24  ;;  %v2089_v4 = vmul.f32 %v2087_v60, %v4460_v57  ;;  %v1704_v11 = vmul.f32 %v1702_v13, %v4091_v24 }
 0x154   :  { %1403 = vrot.lane.b32.xlu1 %v1401_v29, %s3663_s18  ;;  %v2054_v29 = vrot.slane %v2053_v33, 6  ;;  %v1768_v10 = vrot.slane %v4366_v26, 6  ;;  %vm287_vm0 = vcmask 1031168   ;;  %v354_v18 = vrot.slane %v4437_v41, 2 }
 0x155   :  { %v2871_v60 = vrot.slane %v2866_v27, %v3800_v5 }
 0x156   :  { %v4447_v49 = vpop.permute.xlu1 %386 }
 0x157   :  { %2820 = vrot.lane.b32.xlu0 %v2819_v40, %s5111_s16  ;;  %s5112_s16 = smov 67   ;;  %v210_v40 = vrot.slane %v201_v15, %v3803_v6  ;;  %v254_v15 = vsel %vm253_vm3, %v4405_v0, %v252_v61  ;;  %v1770_v0 = vsel %vm5066_vm1, %v1768_v10, %v4366_v26  ;;  %v388_v26 = vrot.slane %v4447_v49, 2 }
 0x158   :  { %1436 = vrot.lane.b32.xlu1 %v1434_v43, %s5061_s28  ;;  %s3736_s28 = smov 46   ;;  %v1772_v53 = vmul.f32 %v4554_v47, %v1770_v0  ;;  %vm5069_vm1 = vcmask 834560  }
 0x159   :  { %v211_v17 = vcombine.low %v206_v14, %v210_v40  ;;  %v1802_v40 = vrot.slane %v4374_v36, 6 }
 0x15a   :  { %v4458_v56 = vpop.permute.xlu1 %420 }
 0x15b   :  { %2852 = vrot.lane.b32.xlu0 %v2851_v48, %s5112_s16  ;;  %s3737_s16 = smov 45   ;;  %v2055_v48 = vsel %vm415_vm2, %v2054_v29, %v2053_v33  ;;  %v218_v44 = vrot.slane %v211_v17, %v3806_v7  ;;  %v1734_v33 = vrot.slane %v4354_v9, 6  ;;  %vm5064_vm2 = vcmask 809984  }
 0x15c   :  { %1470 = vrot.lane.b32.xlu1 %v1468_v58, %s3736_s28  ;;  %v2057_v58 = vmul.f32 %v2055_v48, %v4460_v57 }
 0x15d   :  { %v220_v34 = vmul.f32 %v218_v44, %v200_v46  ;;  %v1736_v20 = vsel %vm5064_vm2, %v1734_v33, %v4354_v9  ;;  %vm5067_vm2 = vcmask 1022976  }
 0x15e   :  { %v4471_v2 = vpop.permute.xlu1 %454  ;;  %v1738_v29 = vmul.f32 %v4554_v47, %v1736_v20 }
 0x15f   :  { %1899 = vrot.lane.b32.xlu0 %v1897_v62, %s3704_s1  ;;  %s3738_s1 = smov 44  }
 0x160   :  { %1504 = vrot.lane.b32.xlu1 %v1502_v55, %s3737_s16 }
 0x162   :  { %v4481_v1 = vpop.permute.xlu1 %488 }
 0x163   :  { %1931 = vrot.lane.b32.xlu0 %v1929_v8, %s3705_s12  ;;  %s3739_s12 = smov 43  }
 0x164   :  { %1538 = vrot.lane.b32.xlu1 %v1536_v16, %s3738_s1 }
 0x166   :  { %v4491_v28 = vpop.permute.xlu1 %522 }
 0x167   :  { %1963 = vrot.lane.b32.xlu0 %v1961_v19, %s3706_s13  ;;  %s3740_s13 = smov 42  }
 0x168   :  { %1572 = vrot.lane.b32.xlu1 %v1570_v23, %s3739_s12 }
 0x169   :  { %v4497_v42 = vpop.permute.xlu0 %760 }
 0x16a   :  { %v4505_v39 = vpop.permute.xlu1 %556 }
 0x16b   :  { %1995 = vrot.lane.b32.xlu0 %v1993_v35, %s3707_s9  ;;  %s3741_s9 = smov 31   ;;  %v221_v35 = vadd.f32 %v220_v34, %v199_v32 }
 0x16c   :  { %1606 = vrot.lane.b32.xlu1 %v1604_v30, %s3740_s13  ;;  %v288_v30 = vsel %vm287_vm0, %v4414_v54, %v286_v22 }
 0x16d   :  { %v4511_v43 = vpop.permute.xlu0 %794  ;;  %v256_v48 = vadd.f32 %v254_v15, %v221_v35 }
 0x16e   :  { %v4517_v38 = vpop.permute.xlu1 %590 }
 0x16f   :  { %2027 = vrot.lane.b32.xlu0 %v2025_v21, %s3708_s15  ;;  %v1836_v21 = vrot.slane %v4389_v25, 6  ;;  %s3743_s15 = smov 29  }
 0x170   :  { %1639 = vrot.lane.b32.xlu1 %v1637_v50, %s3685_s22  ;;  %v322_v50 = vsel %vm5067_vm2, %v4426_v31, %v320_v37  ;;  %v356_v31 = vsel %vm355_vm14, %v4437_v41, %v354_v18  ;;  %vm457_vm2 = vcmask 916480   ;;  %v524_v37 = vrot.slane %v4491_v28, 2 }
 0x171   :  { %v2117_v63 = vpop.permute.xlu0 %2116 }
 0x172   :  { %v2118_v62 = vrot.slane %v2117_v63, 6  ;;  %v4528_v55 = vpop.permute.xlu1 %624 }
 0x173   :  { %2059 = vrot.lane.b32.xlu0 %v2057_v58, %s3709_s17  ;;  %v290_v58 = vadd.f32 %v288_v30, %v256_v48  ;;  %s5114_s17 = smov 110  }
 0x174   :  { %1672 = vrot.lane.b32.xlu1 %v1670_v45, %s3741_s9  ;;  %v2119_v12 = vsel %vm483_vm4, %v2118_v62, %v2117_v63  ;;  %vm5070_vm4 = vcmask 826368   ;;  %v2875_v62 = vrot.slane %v2866_v27, %v3803_v6  ;;  %v422_v45 = vrot.slane %v4458_v56, 2  ;;  %v2962_v27 = vld [vmem:[#allocation8 + $0xa4] ss:$8 sm:$0x3] }
 0x175   :  { %v2149_v8 = vpop.permute.xlu0 %2148  ;;  %v2121_v24 = vmul.f32 %v2119_v12, %v4460_v57  ;;  %v1804_v44 = vsel %vm5070_vm4, %v1802_v40, %v4374_v36  ;;  %v324_v46 = vadd.f32 %v322_v50, %v290_v58  ;;  %v456_v36 = vrot.slane %v4471_v2, 2 }
 0x176   :  { %v2150_v16 = vrot.slane %v2149_v8, 6  ;;  %v4539_v19 = vpop.permute.xlu1 %658  ;;  %v1806_v12 = vmul.f32 %v4554_v47, %v1804_v44  ;;  %v2876_v32 = vcombine.low %v2871_v60, %v2875_v62  ;;  %vm5072_vm4 = vcmask 891904  }
 0x177   :  { %2091 = vrot.lane.b32.xlu0 %v2089_v4, %s3710_s19  ;;  %s3742_s19 = smov 30   ;;  %v2898_v4 = vld [vmem:[#allocation8 + $0xa2] ss:$8 sm:$0x3]  ;;  %v358_v34 = vadd.f32 %v356_v31, %v324_v46  ;;  %v458_v15 = vsel %vm457_vm2, %v4471_v2, %v456_v36  ;;  %v558_v2 = vrot.slane %v4505_v39, 2  ;;  %v592_v50 = vrot.slane %v4517_v38, 2 }
 0x178   :  { %1706 = vrot.lane.b32.xlu1 %v1704_v11, %s3742_s19  ;;  %v2151_v9 = vsel %vm517_vm5, %v2150_v16, %v2149_v8  ;;  %vm389_vm5 = vcmask 1006592   ;;  %v1838_v16 = vsel %vm5069_vm1, %v1836_v21, %v4389_v25  ;;  %v2903_v10 = vrot.slane %v2898_v4, %v3800_v5 }
 0x179   :  { %v2181_v23 = vpop.permute.xlu0 %2180  ;;  %v2153_v52 = vmul.f32 %v2151_v9, %v4460_v57  ;;  %v390_v8 = vsel %vm389_vm5, %v4447_v49, %v388_v26  ;;  %v490_v49 = vrot.slane %v4481_v1, 2  ;;  %v2907_v22 = vrot.slane %v2898_v4, %v3803_v6 }
 0x17a   :  { %v2182_v59 = vrot.slane %v2181_v23, 6  ;;  %v4558_v14 = vpop.permute.xlu1 %692  ;;  %v1840_v35 = vmul.f32 %v4554_v47, %v1838_v16  ;;  %vm5083_vm1 = vcmask 900096   ;;  %v2883_v30 = vrot.slane %v2876_v32, %v3806_v7 }
 0x17b   :  { %2123 = vrot.lane.b32.xlu0 %v2121_v24, %s5113_s2  ;;  %s5068_s2 = smov 28   ;;  %v392_v24 = vadd.f32 %v390_v8, %v358_v34  ;;  %v2908_v18 = vcombine.low %v2903_v10, %v2907_v22  ;;  %v2967_v58 = vrot.slane %v2962_v27, %v3800_v5  ;;  %v2971_v60 = vrot.slane %v2962_v27, %v3803_v6 }
 0x17c   :  { %1740 = vrot.lane.b32.xlu1 %v1738_v29, %s3743_s15  ;;  %v2183_v54 = vsel %vm551_vm6, %v2182_v59, %v2181_v23  ;;  %vm423_vm6 = vcmask 998400   ;;  %v2930_v59 = vld [vmem:[#allocation8 + $0xa3] ss:$8 sm:$0x3]  ;;  %v560_v62 = vsel %vm5072_vm4, %v4505_v39, %v558_v2  ;;  %v660_v8 = vrot.slane %v4539_v19, 2 }
 0x17d   :  { %v2213_v17 = vpop.permute.xlu0 %2212  ;;  %v2185_v33 = vmul.f32 %v2183_v54, %v4460_v57  ;;  %v424_v20 = vsel %vm423_vm6, %v4458_v56, %v422_v45  ;;  %v2915_v46 = vrot.slane %v2908_v18, %v3806_v7  ;;  %vm5074_vm4 = vcmask 867328  }
 0x17e   :  { %v2214_v51 = vrot.slane %v2213_v17, 6  ;;  %v4575_v63 = vpop.permute.xlu1 %726  ;;  %v426_v29 = vadd.f32 %v424_v20, %v392_v24  ;;  %v694_v34 = vrot.slane %v4558_v14, 2  ;;  %v662_v24 = vsel %vm5074_vm4, %v4539_v19, %v660_v8 }
 0x17f   :  { %2155 = vrot.lane.b32.xlu0 %v2153_v52, %s5114_s17  ;;  %s5115_s17 = smov 109   ;;  %v2935_v52 = vrot.slane %v2930_v59, %v3800_v5  ;;  %vm5076_vm4 = vcmask 769024  }
 0x180   :  { %1774 = vrot.lane.b32.xlu1 %v1772_v53, %s5068_s2  ;;  %v2215_v61 = vsel %vm585_vm9, %v2214_v51, %v2213_v17  ;;  %vm5071_vm9 = vcmask 908288   ;;  %s3745_s2 = smov 27   ;;  %v460_v21 = vadd.f32 %v458_v15, %v426_v29  ;;  %v2939_v17 = vrot.slane %v2930_v59, %v3803_v6  ;;  %v3026_v15 = vld [vmem:[#allocation8 + $0xa6] ss:$8 sm:$0x3] }
 0x181   :  { %v2245_v13 = vpop.permute.xlu0 %2244  ;;  %v2217_v23 = vmul.f32 %v2215_v61, %v4460_v57  ;;  %v492_v0 = vsel %vm5071_vm9, %v4481_v1, %v490_v49  ;;  %v526_v1 = vsel %vm5083_vm1, %v4491_v28, %v524_v37  ;;  %vm5073_vm9 = vcmask 875520   ;;  %v3058_v29 = vld [vmem:[#allocation8 + $0xa7] ss:$8 sm:$0x3] }
 0x182   :  { %v2246_v41 = vrot.slane %v2245_v13, 6  ;;  %v4594_v11 = vpop.permute.xlu1 %828  ;;  %v494_v51 = vadd.f32 %v492_v0, %v460_v21  ;;  %v626_v28 = vrot.slane %v4528_v55, 2  ;;  %v3035_v18 = vrot.slane %v3026_v15, %v3803_v6 }
 0x183   :  { %2187 = vrot.lane.b32.xlu0 %v2185_v33, %s5115_s17  ;;  %s3746_s17 = smov 26   ;;  %v2940_v33 = vcombine.low %v2935_v52, %v2939_v17  ;;  %v3063_v52 = vrot.slane %v3058_v29, %v3800_v5  ;;  %v3067_v17 = vrot.slane %v3058_v29, %v3803_v6  ;;  %vm5133_vm1 = vcmask 408576  }
 0x184   :  { %1808 = vrot.lane.b32.xlu1 %v1806_v12, %s3745_s2  ;;  %v2247_v56 = vsel %vm619_vm10, %v2246_v41, %v2245_v13  ;;  %vm5079_vm10 = vcmask 883712   ;;  %v528_v44 = vadd.f32 %v526_v1, %v494_v51  ;;  %v2994_v13 = vld [vmem:[#allocation8 + $0xa5] ss:$8 sm:$0x3]  ;;  %v2972_v12 = vcombine.low %v2967_v58, %v2971_v60 }
 0x185   :  { %v2277_v25 = vpop.permute.xlu0 %2276  ;;  %v2249_v48 = vmul.f32 %v2247_v56, %v4460_v57  ;;  %v594_v4 = vsel %vm5079_vm10, %v4517_v38, %v592_v50  ;;  %v628_v16 = vsel %vm5073_vm9, %v4528_v55, %v626_v28  ;;  %v2999_v32 = vrot.slane %v2994_v13, %v3800_v5  ;;  %v3090_v58 = vld [vmem:[#allocation8 + $0xb0] ss:$8 sm:$0x3] }
 0x186   :  { %v2278_v9 = vrot.slane %v2277_v25, 6  ;;  %v4609_v40 = vpop.permute.xlu1 %862  ;;  %v562_v61 = vadd.f32 %v560_v62, %v528_v44  ;;  %v3003_v38 = vrot.slane %v2994_v13, %v3803_v6  ;;  %v2947_v22 = vrot.slane %v2940_v33, %v3806_v7 }
 0x187   :  { %2219 = vrot.lane.b32.xlu0 %v2217_v23, %s3716_s27  ;;  %s5116_s27 = smov 68   ;;  %v728_v23 = vrot.slane %v4575_v63, 2  ;;  %vm5075_vm9 = vcmask 777216   ;;  %v2979_v59 = vrot.slane %v2972_v12, %v3806_v7  ;;  %v762_v1 = vrot.slane %v4497_v42, 2 }
 0x188   :  { %1842 = vrot.lane.b32.xlu1 %v1840_v35, %s3746_s17  ;;  %v2279_v26 = vsel %vm653_vm12, %v2278_v9, %v2277_v25  ;;  %vm5117_vm12 = vcmask 261120   ;;  %v596_v20 = vadd.f32 %v594_v4, %v562_v61  ;;  %v696_v9 = vsel %vm695_vm15, %v4558_v14, %v694_v34 }
 0x189   :  { %v2309_v47 = vpop.permute.xlu0 %2308  ;;  %v2281_v31 = vmul.f32 %v2279_v26, %v4460_v57  ;;  %v3004_v35 = vcombine.low %v2999_v32, %v3003_v38  ;;  %v730_v27 = vsel %vm5075_vm9, %v4575_v63, %v728_v23  ;;  %v3068_v28 = vcombine.low %v3063_v52, %v3067_v17  ;;  %v3154_v23 = vld [vmem:[#allocation8 + $0xb2] ss:$8 sm:$0x3] }
 0x18a   :  { %v2310_v54 = vrot.slane %v2309_v47, 6  ;;  %v4624_v53 = vpop.permute.xlu1 %896  ;;  %v630_v37 = vadd.f32 %v628_v16, %v596_v20  ;;  %v764_v44 = vsel %vm5076_vm4, %v4497_v42, %v762_v1  ;;  %vm5077_vm9 = vcmask 760832  }
 0x18b   :  { %2251 = vrot.lane.b32.xlu0 %v2249_v48, %s3717_s21  ;;  %s5118_s21 = smov 69   ;;  %v3011_v63 = vrot.slane %v3004_v35, %v3806_v7  ;;  %v3075_v61 = vrot.slane %v3068_v28, %v3806_v7  ;;  %v830_v16 = vrot.slane %v4594_v11, 2  ;;  %vm5126_vm4 = vcmask 302080  }
 0x18c   :  { %2884 = vrot.lane.b32.xlu1 %v2883_v30, %s5116_s27  ;;  %v2311_v39 = vsel %vm5117_vm12, %v2310_v54, %v2309_v47  ;;  %vm5119_vm12 = vcmask 269312   ;;  %v664_v19 = vadd.f32 %v662_v24, %v630_v37  ;;  %v3031_v30 = vrot.slane %v3026_v15, %v3800_v5  ;;  %s5124_s27 = smov 81   ;;  %v3186_v37 = vld [vmem:[#allocation8 + $0xb3] ss:$8 sm:$0x3] }
 0x18d   :  { %v2341_v45 = vpop.permute.xlu0 %2340  ;;  %v2313_v49 = vmul.f32 %v2311_v39, %v4460_v57  ;;  %v864_v24 = vrot.slane %v4609_v40, 2  ;;  %v3159_v29 = vrot.slane %v3154_v23, %v3800_v5  ;;  %vm5129_vm10 = vcmask 392192  }
 0x18e   :  { %v2342_v36 = vrot.slane %v2341_v45, 6  ;;  %v4639_v41 = vpop.permute.xlu1 %930  ;;  %v698_v48 = vadd.f32 %v696_v9, %v664_v19  ;;  %v3036_v51 = vcombine.low %v3031_v30, %v3035_v18  ;;  %v3163_v19 = vrot.slane %v3154_v23, %v3803_v6  ;;  %v3282_v23 = vld [vmem:[#allocation8 + $0xb6] ss:$8 sm:$0x3] }
 0x18f   :  { %2283 = vrot.lane.b32.xlu0 %v2281_v31, %s3718_s24  ;;  %s5120_s24 = smov 70   ;;  %v796_v31 = vrot.slane %v4511_v43, 2  ;;  %v3191_v18 = vrot.slane %v3186_v37, %v3800_v5 }
 0x190   :  { %2916 = vrot.lane.b32.xlu1 %v2915_v46, %s5118_s21  ;;  %v2343_v55 = vsel %vm5119_vm12, %v2342_v36, %v2341_v45  ;;  %vm5121_vm12 = vcmask 277504   ;;  %v732_v50 = vadd.f32 %v730_v27, %v698_v48  ;;  %v3095_v45 = vrot.slane %v3090_v58, %v3800_v5  ;;  %v3122_v36 = vld [vmem:[#allocation8 + $0xb1] ss:$8 sm:$0x3]  ;;  %s5125_s21 = smov 93  }
 0x191   :  { %v2373_v10 = vpop.permute.xlu0 %2372  ;;  %v2345_v0 = vmul.f32 %v2343_v55, %v4460_v57  ;;  %v3099_v46 = vrot.slane %v3090_v58, %v3803_v6  ;;  %v3043_v8 = vrot.slane %v3036_v51, %v3806_v7  ;;  %v798_v12 = vsel %vm5077_vm9, %v4511_v43, %v796_v31 }
 0x192   :  { %v2374_v25 = vrot.slane %v2373_v10, 6  ;;  %v4654_v56 = vpop.permute.xlu1 %964  ;;  %v766_v33 = vadd.f32 %v764_v44, %v732_v50  ;;  %vm5080_vm9 = vcmask 744448   ;;  %v3195_v27 = vrot.slane %v3186_v37, %v3803_v6 }
 0x193   :  { %2315 = vrot.lane.b32.xlu0 %v2313_v49, %s3701_s25  ;;  %v3100_v32 = vcombine.low %v3095_v45, %v3099_v46  ;;  %v3164_v50 = vcombine.low %v3159_v29, %v3163_v19  ;;  %v3287_v19 = vrot.slane %v3282_v23, %v3800_v5 }
 0x194   :  { %2948 = vrot.lane.b32.xlu1 %v2947_v22, %s5120_s24  ;;  %v2375_v21 = vsel %vm5121_vm12, %v2374_v25, %v2373_v10  ;;  %vm5122_vm12 = vcmask 285696   ;;  %v800_v38 = vadd.f32 %v798_v12, %v766_v33  ;;  %s5127_s24 = smov 82   ;;  %v3127_v10 = vrot.slane %v3122_v36, %v3800_v5 }
 0x195   :  { %v2405_v2 = vpop.permute.xlu0 %2404  ;;  %v2377_v26 = vmul.f32 %v2375_v21, %v4460_v57  ;;  %v3131_v22 = vrot.slane %v3122_v36, %v3803_v6  ;;  %v898_v25 = vrot.slane %v4624_v53, 2  ;;  %v3107_v15 = vrot.slane %v3100_v32, %v3806_v7 }
 0x196   :  { %v2406_v14 = vrot.slane %v2405_v2, 6  ;;  %v4667_v47 = vpop.permute.xlu1 %998  ;;  %v3171_v33 = vrot.slane %v3164_v50, %v3806_v7 }
 0x197   :  { %2347 = vrot.lane.b32.xlu0 %v2345_v0, %s3719_s5  ;;  %s5123_s5 = smov 94   ;;  %v3132_v35 = vcombine.low %v3127_v10, %v3131_v22  ;;  %v866_v0 = vsel %vm5080_vm9, %v4609_v40, %v864_v24  ;;  %vm5131_vm9 = vcmask 654336  }
 0x198   :  { %2980 = vrot.lane.b32.xlu1 %v2979_v59, %s3673_s30  ;;  %v2407_v60 = vsel %vm5122_vm12, %v2406_v14, %v2405_v2  ;;  %vm5078_vm12 = vcmask 752640   ;;  %v966_v14 = vrot.slane %v4654_v56, 2 }
 0x199   :  { %v4673_v54 = vpop.permute.xlu0 %2436  ;;  %v2409_v13 = vmul.f32 %v2407_v60, %v4460_v57  ;;  %v832_v55 = vsel %vm5078_vm12, %v4594_v11, %v830_v16  ;;  %v932_v11 = vrot.slane %v4639_v41, 2  ;;  %vm5082_vm12 = vcmask 646144  }
 0x19a   :  { %v4679_v62 = vpop.permute.xlu1 %1031  ;;  %v834_v9 = vadd.f32 %v832_v55, %v800_v38  ;;  %v3139_v1 = vrot.slane %v3132_v35, %v3806_v7  ;;  %v3196_v60 = vcombine.low %v3191_v18, %v3195_v27  ;;  %v968_v28 = vsel %vm5082_vm12, %v4654_v56, %v966_v14  ;;  %v3250_v56 = vld [vmem:[#allocation8 + $0xb5] ss:$8 sm:$0x3] }
 0x19b   :  { %2379 = vrot.lane.b32.xlu0 %v2377_v26, %s5123_s5  ;;  %s5128_s5 = smov 83   ;;  %v3218_v26 = vld [vmem:[#allocation8 + $0xb4] ss:$8 sm:$0x3]  ;;  %v1033_v44 = vrot.slane %v4679_v62, 2  ;;  %vm5084_vm12 = vcmask 613376   ;;  %v3255_v10 = vrot.slane %v3250_v56, %v3800_v5  ;;  %v3259_v22 = vrot.slane %v3250_v56, %v3803_v6 }
 0x19c   :  { %3012 = vrot.lane.b32.xlu1 %v3011_v63, %s5124_s27  ;;  %v868_v52 = vadd.f32 %v866_v0, %v834_v9  ;;  %v934_v63 = vsel %vm5131_vm9, %v4639_v41, %v932_v11  ;;  %v3223_v31 = vrot.slane %v3218_v26, %v3800_v5  ;;  %v3227_v45 = vrot.slane %v3218_v26, %v3803_v6  ;;  %s5132_s27 = smov 85  }
 0x19d   :  { %v2469_v4 = vpop.permute.xlu0 %2468  ;;  %vm5085_vm9 = vcmask 621568   ;;  %v3291_v0 = vrot.slane %v3282_v23, %v3803_v6 }
 0x19e   :  { %v2470_v39 = vrot.slane %v2469_v4, 6  ;;  %v4690_v42 = vpop.permute.xlu1 %1065  ;;  %v3228_v32 = vcombine.low %v3223_v31, %v3227_v45 }
 0x19f   :  { %2411 = vrot.lane.b32.xlu0 %v2409_v13, %s5125_s21  ;;  %s5141_s21 = smov 100  }
 0x1a0   :  { %v2471_v34 = vsel %vm5126_vm4, %v2470_v39, %v2469_v4  ;;  %3044 = vrot.lane.b32.xlu1 %v3043_v8, %s5127_s24  ;;  %vm5081_vm4 = vcmask 736256   ;;  %v1067_v4 = vrot.slane %v4690_v42, 2  ;;  %v3235_v9 = vrot.slane %v3228_v32, %v3806_v7  ;;  %s5146_s24 = smov 102  }
 0x1a1   :  { %v2473_v20 = vmul.f32 %v2471_v34, %v4460_v57  ;;  %v4698_v49 = vpop.permute.xlu0 %2500  ;;  %v900_v21 = vsel %vm5081_vm4, %v4624_v53, %v898_v25  ;;  %v1000_v53 = vrot.slane %v4667_v47, 2  ;;  %vm5087_vm4 = vcmask 637952  }
 0x1a2   :  { %v4705_v43 = vpop.permute.xlu1 %1099  ;;  %v902_v51 = vadd.f32 %v900_v21, %v868_v52  ;;  %v1069_v24 = vsel %vm5085_vm9, %v4690_v42, %v1067_v4  ;;  %v3260_v42 = vcombine.low %v3255_v10, %v3259_v22  ;;  %vm5135_vm9 = vcmask 523264  }
 0x1a3   :  { %2475 = vrot.lane.b32.xlu0 %v2473_v20, %s3721_s0  ;;  %s5130_s0 = smov 84   ;;  %v1002_v13 = vsel %vm5087_vm4, %v4667_v47, %v1000_v53  ;;  %v1101_v16 = vrot.slane %v4705_v43, 2  ;;  %vm5089_vm4 = vcmask 506880   ;;  %v3346_v53 = vld [vmem:[#allocation8 + $0xc0] ss:$8 sm:$0x3] }
 0x1a4   :  { %3076 = vrot.lane.b32.xlu1 %v3075_v61, %s5128_s5  ;;  %v936_v46 = vadd.f32 %v934_v63, %v902_v51  ;;  %v3203_v61 = vrot.slane %v3196_v60, %v3806_v7  ;;  %v3292_v63 = vcombine.low %v3287_v19, %v3291_v0 }
 0x1a5   :  { %v2533_v59 = vpop.permute.xlu0 %2532 }
 0x1a6   :  { %v2534_v2 = vrot.slane %v2533_v59, 6  ;;  %v4717_v30 = vpop.permute.xlu1 %1133  ;;  %v970_v39 = vadd.f32 %v968_v28, %v936_v46  ;;  %v3351_v46 = vrot.slane %v3346_v53, %v3800_v5  ;;  %v3299_v4 = vrot.slane %v3292_v63, %v3806_v7 }
 0x1a8   :  { %v2535_v48 = vsel %vm5129_vm10, %v2534_v2, %v2533_v59  ;;  %3108 = vrot.lane.b32.xlu1 %v3107_v15, %s5130_s0  ;;  %vm5086_vm10 = vcmask 629760   ;;  %v1004_v38 = vadd.f32 %v1002_v13, %v970_v39  ;;  %v1103_v15 = vsel %vm5084_vm12, %v4705_v43, %v1101_v16  ;;  %v3314_v59 = vld [vmem:[#allocation8 + $0xb7] ss:$8 sm:$0x3] }
 0x1a9   :  { %v2537_v40 = vmul.f32 %v2535_v48, %v4460_v57  ;;  %v4726_v17 = vpop.permute.xlu0 %2564  ;;  %v1035_v12 = vsel %vm5086_vm10, %v4679_v62, %v1033_v44  ;;  %v1135_v62 = vrot.slane %v4717_v30, 2  ;;  %vm5088_vm12 = vcmask 515072   ;;  %v3378_v39 = vld [vmem:[#allocation8 + $0xc1] ss:$8 sm:$0x3] }
 0x1aa   :  { %v1168_v58 = vpop.permute.xlu1 %1167  ;;  %v1037_v55 = vadd.f32 %v1035_v12, %v1004_v38  ;;  %v3319_v21 = vrot.slane %v3314_v59, %v3800_v5  ;;  %v3323_v14 = vrot.slane %v3314_v59, %v3803_v6  ;;  %vm5136_vm10 = vcmask 424960  }
 0x1ab   :  { %2539 = vrot.lane.b32.xlu0 %v2537_v40, %s3673_s30  ;;  %s5134_s30 = smov 86   ;;  %v1169_v37 = vrot.slane %v1168_v58, 2 }
 0x1ac   :  { %3140 = vrot.lane.b32.xlu1 %v3139_v1, %s5132_s27  ;;  %v1071_v35 = vadd.f32 %v1069_v24, %v1037_v55  ;;  %v3324_v44 = vcombine.low %v3319_v21, %v3323_v14  ;;  %v3383_v24 = vrot.slane %v3378_v39, %v3800_v5 }
 0x1ad   :  { %v2597_v41 = vpop.permute.xlu0 %2596  ;;  %v1170_v48 = vsel %vm5135_vm9, %v1168_v58, %v1169_v37  ;;  %vm5091_vm9 = vcmask 490496  }
 0x1ae   :  { %v2598_v8 = vrot.slane %v2597_v41, 6  ;;  %v1201_v36 = vpop.permute.xlu1 %1200  ;;  %v1105_v27 = vadd.f32 %v1103_v15, %v1071_v35  ;;  %v3331_v12 = vrot.slane %v3324_v44, %v3806_v7  ;;  %v2566_v44 = vrot.slane %v4726_v17, 6 }
 0x1af   :  { %v1202_v2 = vrot.slane %v1201_v36, 2 }
 0x1b0   :  { %v2599_v34 = vsel %vm5133_vm1, %v2598_v8, %v2597_v41  ;;  %3172 = vrot.lane.b32.xlu1 %v3171_v33, %s5134_s30  ;;  %vm1136_vm1 = vcmask 605184   ;;  %v3355_v41 = vrot.slane %v3346_v53, %v3803_v6 }
 0x1b1   :  { %v2601_v47 = vmul.f32 %v2599_v34, %v4460_v57  ;;  %v4750_v20 = vpop.permute.xlu0 %2628  ;;  %v1137_v11 = vsel %vm1136_vm1, %v4717_v30, %v1135_v62  ;;  %v3267_v30 = vrot.slane %v3260_v42, %v3806_v7  ;;  %v1204_v51 = vsel %vm5088_vm12, %v1201_v36, %v1202_v2 }
 0x1b2   :  { %v1235_v25 = vpop.permute.xlu1 %1234  ;;  %v1139_v1 = vadd.f32 %v1137_v11, %v1105_v27  ;;  %vm5090_vm12 = vcmask 482304   ;;  %v3356_v38 = vcombine.low %v3351_v46, %v3355_v41  ;;  %v3387_v62 = vrot.slane %v3378_v39, %v3803_v6 }
 0x1b3   :  { %2603 = vrot.lane.b32.xlu0 %v2601_v47, %s3724_s8  ;;  %v1236_v40 = vrot.slane %v1235_v25, 2  ;;  %s5138_s8 = smov 98   ;;  %v2438_v11 = vrot.slane %v4673_v54, 6 }
 0x1b4   :  { %3204 = vrot.lane.b32.xlu1 %v3203_v61, %s3701_s25  ;;  %s5137_s25 = smov 97   ;;  %v1172_v28 = vadd.f32 %v1170_v48, %v1139_v1  ;;  %v3363_v59 = vrot.slane %v3356_v38, %v3806_v7  ;;  %v3388_v35 = vcombine.low %v3383_v24, %v3387_v62  ;;  %v2502_v1 = vrot.slane %v4698_v49, 6 }
 0x1b5   :  { %v2661_v29 = vpop.permute.xlu0 %2660  ;;  %v1238_v31 = vsel %vm5089_vm4, %v1235_v25, %v1236_v40  ;;  %vm5139_vm4 = vcmask 441344  }
 0x1b6   :  { %v2662_v18 = vrot.slane %v2661_v29, 6  ;;  %v1269_v43 = vpop.permute.xlu1 %1268  ;;  %v1206_v33 = vadd.f32 %v1204_v51, %v1172_v28  ;;  %v3395_v21 = vrot.slane %v3388_v35, %v3806_v7 }
 0x1b7   :  { %v1270_v60 = vrot.slane %v1269_v43, 2 }
 0x1b8   :  { %v2663_v52 = vsel %vm5136_vm10, %v2662_v18, %v2661_v29  ;;  %3236 = vrot.lane.b32.xlu1 %v3235_v9, %s5137_s25  ;;  %vm5093_vm10 = vcmask 498688   ;;  %v1240_v36 = vadd.f32 %v1238_v31, %v1206_v33 }
 0x1b9   :  { %v2665_v50 = vmul.f32 %v2663_v52, %v4460_v57  ;;  %v4772_v26 = vpop.permute.xlu0 %2692  ;;  %v1272_v8 = vsel %vm5093_vm10, %v1269_v43, %v1270_v60  ;;  %vm5145_vm10 = vcmask 293888  }
 0x1ba   :  { %v1303_v58 = vpop.permute.xlu1 %1302  ;;  %v1274_v47 = vadd.f32 %v1272_v8, %v1240_v36  ;;  %v2439_v40 = vsel %vm5145_vm10, %v2438_v11, %v4673_v54  ;;  %vm5148_vm10 = vcmask 547840  }
 0x1bb   :  { %2667 = vrot.lane.b32.xlu0 %v2665_v50, %s3726_s6  ;;  %v1304_v45 = vrot.slane %v1303_v58, 2  ;;  %s5140_s6 = smov 99   ;;  %v2441_v51 = vmul.f32 %v2439_v40, %v4460_v57 }
 0x1bc   :  { %3268 = vrot.lane.b32.xlu1 %v3267_v30, %s5138_s8 }
 0x1bd   :  { %v2725_v13 = vpop.permute.xlu0 %2724  ;;  %v1306_v34 = vsel %vm5091_vm9, %v1303_v58, %v1304_v45  ;;  %vm5144_vm9 = vcmask 392192  }
 0x1be   :  { %v2726_v56 = vrot.slane %v2725_v13, 6  ;;  %v1337_v61 = vpop.permute.xlu1 %1336  ;;  %v1308_v55 = vadd.f32 %v1306_v34, %v1274_v47 }
 0x1bf   :  { %v1338_v32 = vrot.slane %v1337_v61, 2 }
 0x1c0   :  { %v2727_v16 = vsel %vm5139_vm4, %v2726_v56, %v2725_v13  ;;  %3300 = vrot.lane.b32.xlu1 %v3299_v4, %s5140_s6  ;;  %vm5092_vm4 = vcmask 474112   ;;  %v2630_v4 = vrot.slane %v4750_v20, 6 }
 0x1c1   :  { %v2729_v10 = vmul.f32 %v2727_v16, %v4460_v57  ;;  %v4788_v22 = vpop.permute.xlu0 %2756  ;;  %v1340_v23 = vsel %vm5090_vm12, %v1337_v61, %v1338_v32  ;;  %vm5142_vm12 = vcmask 531456   ;;  %v2694_v16 = vrot.slane %v4772_v26, 6 }
 0x1c2   :  { %v1371_v25 = vpop.permute.xlu1 %1370  ;;  %v1342_v37 = vadd.f32 %v1340_v23, %v1308_v55  ;;  %v2758_v24 = vrot.slane %v4788_v22, 6 }
 0x1c3   :  { %2731 = vrot.lane.b32.xlu0 %v2729_v10, %s3728_s4  ;;  %v1372_v15 = vrot.slane %v1371_v25, 2  ;;  %s5143_s4 = smov 101  }
 0x1c4   :  { %3332 = vrot.lane.b32.xlu1 %v3331_v12, %s5141_s21 }
 0x1c5   :  { %v2789_v9 = vpop.permute.xlu0 %2788  ;;  %v1374_v42 = vsel %vm5092_vm4, %v1371_v25, %v1372_v15  ;;  %vm5094_vm4 = vcmask 384000  }
 0x1c6   :  { %v2790_v29 = vrot.slane %v2789_v9, 6  ;;  %v1376_v19 = vadd.f32 %v1374_v42, %v1342_v37  ;;  %v1404_v0 = vpop.permute.xlu1 %1403 }
 0x1c7   :  { %v1405_v18 = vrot.slane %v1404_v0, 2 }
 0x1c8   :  { %v2791_v2 = vsel %vm5142_vm12, %v2790_v29, %v2789_v9  ;;  %3364 = vrot.lane.b32.xlu1 %v3363_v59, %s5143_s4  ;;  %vm5095_vm12 = vcmask 375808   ;;  %v4845_v59 = vld [vmem:[#allocation3] sm:$0x3f] }
 0x1c9   :  { %v2793_v27 = vmul.f32 %v2791_v2, %v4460_v57  ;;  %v4801_v43 = vpop.permute.xlu0 %2820  ;;  %v1406_v14 = vsel %vm5144_vm9, %v1404_v0, %v1405_v18  ;;  %vm5147_vm9 = vcmask 310272  }
 0x1ca   :  { %v1408_v48 = vadd.f32 %v1406_v14, %v1376_v19  ;;  %v1437_v52 = vpop.permute.xlu1 %1436  ;;  %v2503_v58 = vsel %vm5147_vm9, %v2502_v1, %v4698_v49  ;;  %vm5149_vm9 = vcmask 400384   ;;  %v2822_v37 = vrot.slane %v4801_v43, 6 }
 0x1cb   :  { %2795 = vrot.lane.b32.xlu0 %v2793_v27, %s3729_s29  ;;  %v1438_v50 = vrot.slane %v1437_v52, 2  ;;  %v2505_v41 = vmul.f32 %v2503_v58, %v4460_v57  ;;  %v2567_v49 = vsel %vm5149_vm9, %v2566_v44, %v4726_v17  ;;  %vm5098_vm9 = vcmask 351232  }
 0x1cc   :  { %3396 = vrot.lane.b32.xlu1 %v3395_v21, %s5146_s24  ;;  %v2569_v39 = vmul.f32 %v2567_v49, %v4460_v57 }
 0x1cd   :  { %v2853_v30 = vpop.permute.xlu0 %2852  ;;  %v1440_v53 = vsel %vm5094_vm4, %v1437_v52, %v1438_v50  ;;  %vm5096_vm4 = vcmask 367616  }
 0x1ce   :  { %v2854_v63 = vrot.slane %v2853_v30, 6  ;;  %v1442_v60 = vadd.f32 %v1440_v53, %v1408_v48  ;;  %v1471_v28 = vpop.permute.xlu1 %1470 }
 0x1cf   :  { %v1472_v31 = vrot.slane %v1471_v28, 2 }
 0x1d0   :  { %v2855_v54 = vsel %vm5148_vm10, %v2854_v63, %v2853_v30  ;;  %2443 = vrot.lane.b32.xlu1 %v2441_v51, %s3720_s7  ;;  %vm5097_vm10 = vcmask 359424   ;;  %s5153_s7 = smov 75  }
 0x1d1   :  { %v2857_v45 = vmul.f32 %v2855_v54, %v4460_v57  ;;  %v1474_v46 = vsel %vm5095_vm12, %v1471_v28, %v1472_v31  ;;  %vm5150_vm12 = vcmask 416768   ;;  %v4859_v54 = vpop.permute.xlu0 %1899 }
 0x1d2   :  { %v1476_v33 = vadd.f32 %v1474_v46, %v1442_v60  ;;  %v1505_v13 = vpop.permute.xlu1 %1504  ;;  %v2631_v12 = vsel %vm5150_vm12, %v2630_v4, %v4750_v20  ;;  %vm5099_vm12 = vcmask 343040  }
 0x1d3   :  { %2859 = vrot.lane.b32.xlu0 %v2857_v45, %s3731_s11  ;;  %v1506_v8 = vrot.slane %v1505_v13, 2  ;;  %v2633_v32 = vmul.f32 %v2631_v12, %v4460_v57 }
 0x1d4   :  { %2507 = vrot.lane.b32.xlu1 %v2505_v41, %s3722_s23  ;;  %s5156_s23 = smov 62  }
 0x1d5   :  { %v1508_v56 = vsel %vm5096_vm4, %v1505_v13, %v1506_v8  ;;  %vm5151_vm4 = vcmask 433152   ;;  %v4862_v4 = vpop.permute.xlu0 %1931 }
 0x1d6   :  { %v1510_v36 = vadd.f32 %v1508_v56, %v1476_v33  ;;  %v1539_v61 = vpop.permute.xlu1 %1538  ;;  %v2695_v10 = vsel %vm5151_vm4, %v2694_v16, %v4772_v26  ;;  %vm5154_vm4 = vcmask 539648  }
 0x1d7   :  { %v1540_v34 = vrot.slane %v1539_v61, 2  ;;  %v2697_v23 = vmul.f32 %v2695_v10, %v4460_v57  ;;  %v2823_v57 = vsel %vm5154_vm4, %v2822_v37, %v4801_v43  ;;  %vm1743_vm4 = vcmask 236544  }
 0x1d8   :  { %2571 = vrot.lane.b32.xlu1 %v2569_v39, %s3723_s10  ;;  %v2825_v0 = vmul.f32 %v4845_v59, %v2823_v57  ;;  %s5161_s10 = smov 58  }
 0x1d9   :  { %v1542_v17 = vsel %vm5097_vm10, %v1539_v61, %v1540_v34  ;;  %vm5152_vm10 = vcmask 523264   ;;  %v4868_v12 = vpop.permute.xlu0 %1963 }
 0x1da   :  { %v1544_v38 = vadd.f32 %v1542_v17, %v1510_v36  ;;  %v1573_v47 = vpop.permute.xlu1 %1572  ;;  %v2759_v15 = vsel %vm5152_vm10, %v2758_v24, %v4788_v22  ;;  %vm5155_vm10 = vcmask 261120  }
 0x1db   :  { %v1574_v62 = vrot.slane %v1573_v47, 2  ;;  %v2761_v35 = vmul.f32 %v4845_v59, %v2759_v15 }
 0x1dc   :  { %2635 = vrot.lane.b32.xlu1 %v2633_v32, %s3725_s14  ;;  %s5163_s14 = smov 47  }
 0x1dd   :  { %v1576_v20 = vsel %vm5098_vm9, %v1573_v47, %v1574_v62  ;;  %vm5100_vm9 = vcmask 252928   ;;  %v4874_v24 = vpop.permute.xlu0 %1995  ;;  %v1851_v62 = vld [vmem:[#allocation8 + $0x61] ss:$8 sm:$0x3] }
 0x1de   :  { %v1578_v55 = vadd.f32 %v1576_v20, %v1544_v38  ;;  %v1607_v25 = vpop.permute.xlu1 %1606  ;;  %v1856_v15 = vrot.slane %v1851_v62, %v3800_v5  ;;  %v1860_v37 = vrot.slane %v1851_v62, %v3803_v6 }
 0x1df   :  { %v1608_v9 = vrot.slane %v1607_v25, 2 }
 0x1e0   :  { %2699 = vrot.lane.b32.xlu1 %v2697_v23, %s5153_s7  ;;  %v1861_v57 = vcombine.low %v1856_v15, %v1860_v37 }
 0x1e1   :  { %v1610_v26 = vsel %vm5099_vm12, %v1607_v25, %v1608_v9  ;;  %vm5101_vm12 = vcmask 244736  }
 0x1e2   :  { %v1612_v29 = vadd.f32 %v1610_v26, %v1578_v55  ;;  %v1640_v42 = vpop.permute.xlu1 %1639  ;;  %v4883_v26 = vpop.permute.xlu0 %2027 }
 0x1e3   :  { %v1641_v19 = vrot.slane %v1640_v42, 2 }
 0x1e4   :  { %2763 = vrot.lane.b32.xlu1 %v2761_v35, %s3694_s26  ;;  %s5159_s26 = smov 59  }
 0x1e5   :  { %v1642_v22 = vsel %vm5155_vm10, %v1640_v42, %v1641_v19  ;;  %vm5102_vm10 = vcmask 228352  }
 0x1e6   :  { %v1644_v11 = vadd.f32 %v1642_v22, %v1612_v29  ;;  %v1673_v2 = vpop.permute.xlu1 %1672 }
 0x1e7   :  { %v1674_v18 = vrot.slane %v1673_v2, 2 }
 0x1e8   :  { %2827 = vrot.lane.b32.xlu1 %v2825_v0, %s5156_s23 }
 0x1e9   :  { %v1676_v27 = vsel %vm5100_vm9, %v1673_v2, %v1674_v18  ;;  %vm5103_vm9 = vcmask 220160   ;;  %v2060_v2 = vpop.permute.xlu0 %2059  ;;  %v1868_v18 = vrot.slane %v1861_v57, %v3806_v7 }
 0x1ea   :  { %v1678_v21 = vadd.f32 %v1676_v27, %v1644_v11  ;;  %v1707_v14 = vpop.permute.xlu1 %1706  ;;  %v1849_v27 = vld [vmem:[#allocation3] sm:$0xf]  ;;  %v2061_v15 = vrot.slane %v2060_v2, 2 }
 0x1eb   :  { %v1708_v48 = vrot.slane %v1707_v14, 2 }
 0x1ed   :  { %v1710_v43 = vsel %vm5101_vm12, %v1707_v14, %v1708_v48  ;;  %vm5104_vm12 = vcmask 211968  }
 0x1ee   :  { %v1712_v52 = vadd.f32 %v1710_v43, %v1678_v21  ;;  %v1741_v40 = vpop.permute.xlu1 %1740 }
 0x1ef   :  { %v1742_v1 = vrot.slane %v1741_v40, 2 }
 0x1f1   :  { %v1744_v50 = vsel %vm1743_vm4, %v1741_v40, %v1742_v1  ;;  %v1901_v40 = vrot.slane %v4859_v54, 2 }
 0x1f2   :  { %v1746_v30 = vadd.f32 %v1744_v50, %v1712_v52  ;;  %v1775_v63 = vpop.permute.xlu1 %1774  ;;  %v1870_v52 = vmul.f32 %v1868_v18, %v1849_v27  ;;  %v2092_v50 = vpop.permute.xlu0 %2091 }
 0x1f3   :  { %v1776_v53 = vrot.slane %v1775_v63, 2  ;;  %v2093_v57 = vrot.slane %v2092_v50, 2 }
 0x1f5   :  { %v1778_v51 = vsel %vm5102_vm10, %v1775_v63, %v1776_v53  ;;  %vm5157_vm10 = vcmask 556032   ;;  %v2094_v27 = vsel %vm457_vm2, %v2092_v50, %v2093_v57  ;;  %vm5174_vm2 = vcmask 900096  }
 0x1f6   :  { %v1780_v60 = vadd.f32 %v1778_v51, %v1746_v30  ;;  %v1809_v28 = vpop.permute.xlu1 %1808  ;;  %v1902_v51 = vsel %vm253_vm3, %v4859_v54, %v1901_v40  ;;  %vm5172_vm3 = vcmask 908288  }
 0x1f7   :  { %v1810_v58 = vrot.slane %v1809_v28, 2 }
 0x1f9   :  { %v1812_v44 = vsel %vm5103_vm9, %v1809_v28, %v1810_v58  ;;  %vm5158_vm9 = vcmask 564224  }
 0x1fa   :  { %v1814_v31 = vadd.f32 %v1812_v44, %v1780_v60  ;;  %v1843_v45 = vpop.permute.xlu1 %1842  ;;  %v1933_v60 = vrot.slane %v4862_v4, 2 }
 0x1fb   :  { %v1844_v46 = vrot.slane %v1843_v45, 2 }
 0x1fd   :  { %v1846_v41 = vsel %vm5104_vm12, %v1843_v45, %v1844_v46  ;;  %vm5160_vm12 = vcmask 572416   ;;  %v2124_v46 = vpop.permute.xlu0 %2123 }
 0x1fe   :  { %v1848_v33 = vadd.f32 %v1846_v41, %v1814_v31  ;;  %v2885_v13 = vpop.permute.xlu1 %2884  ;;  %v1934_v41 = vsel %vm287_vm0, %v4862_v4, %v1933_v60  ;;  %vm5170_vm0 = vcmask 818176  }
 0x1ff   :  { %v2886_v49 = vrot.slane %v2885_v13, 6 }
 0x200   :  { %v1871_v30 = vadd.f32 %v1870_v52, %v1848_v33  ;;  %v1965_v33 = vrot.slane %v4868_v12, 2 }
 0x201   :  { %v2887_v8 = vsel %vm5157_vm10, %v2886_v49, %v2885_v13  ;;  %vm5176_vm10 = vcmask 891904  }
 0x202   :  { %v2889_v56 = vmul.f32 %v4845_v59, %v2887_v8  ;;  %v2917_v39 = vpop.permute.xlu1 %2916  ;;  %v1904_v58 = vadd.f32 %v1902_v51, %v1871_v30 }
 0x203   :  { %v2918_v36 = vrot.slane %v2917_v39, 6 }
 0x204   :  { %2891 = vrot.lane.b32.xlu1 %v2889_v56, %s3732_s20  ;;  %v1936_v54 = vadd.f32 %v1934_v41, %v1904_v58 }
 0x205   :  { %v2919_v61 = vsel %vm5158_vm9, %v2918_v36, %v2917_v39  ;;  %vm5162_vm9 = vcmask 654336   ;;  %v1997_v36 = vrot.slane %v4874_v24, 2 }
 0x206   :  { %v2921_v16 = vmul.f32 %v4845_v59, %v2919_v61  ;;  %v2949_v34 = vpop.permute.xlu1 %2948 }
 0x207   :  { %v2950_v17 = vrot.slane %v2949_v34, 6 }
 0x208   :  { %2923 = vrot.lane.b32.xlu0 %v2921_v16, %s5159_s26  ;;  %v2156_v16 = vpop.permute.xlu0 %2155 }
 0x209   :  { %v2951_v32 = vsel %vm5160_vm12, %v2950_v17, %v2949_v34  ;;  %vm5164_vm12 = vcmask 670720   ;;  %v2157_v30 = vrot.slane %v2156_v16, 2 }
 0x20a   :  { %v2953_v38 = vmul.f32 %v4845_v59, %v2951_v32  ;;  %v2981_v47 = vpop.permute.xlu1 %2980 }
 0x20b   :  { %v2982_v10 = vrot.slane %v2981_v47, 6  ;;  %v2158_v60 = vsel %vm5174_vm2, %v2156_v16, %v2157_v30  ;;  %vm5188_vm2 = vcmask 637952  }
 0x20c   :  { %2955 = vrot.lane.b32.xlu1 %v2953_v38, %s5161_s10  ;;  %v1998_v38 = vsel %vm355_vm14, %v4874_v24, %v1997_v36  ;;  %vm5169_vm14 = vcmask 809984  }
 0x20d   :  { %v2983_v20 = vsel %vm5162_vm9, %v2982_v10, %v2981_v47  ;;  %v2029_v47 = vrot.slane %v4883_v26, 2  ;;  %vm5177_vm9 = vcmask 883712  }
 0x20e   :  { %v2985_v23 = vmul.f32 %v4845_v59, %v2983_v20  ;;  %v3013_v55 = vpop.permute.xlu1 %3012 }
 0x20f   :  { %v3014_v25 = vrot.slane %v3013_v55, 6 }
 0x210   :  { %2987 = vrot.lane.b32.xlu0 %v2985_v23, %s3663_s18  ;;  %s3748_s18 = smov [#allocation10]  }
 0x211   :  { %v3015_v9 = vsel %vm1431_vm11, %v3014_v25, %v3013_v55  ;;  %vm5165_vm11 = vcmask 703488   ;;  %v2188_v55 = vpop.permute.xlu0 %2187  ;;  %v2030_v25 = vsel %vm389_vm5, %v4883_v26, %v2029_v47  ;;  %vm5173_vm5 = vcmask 826368   ;;  %s3453_s29 = sshll.u32 %s3748_s18, 4  ;;  %s3454_s29 = int_to_ptr.vmem [resolvable:$true] %s3453_s29 }
 0x212   :  { %v3017_v35 = vmul.f32 %v4845_v59, %v3015_v9  ;;  %v3045_v29 = vpop.permute.xlu1 %3044  ;;  %s3621_s20 = scalar_lea.vmem %s3454_s29, 256  ;;  %p3626_p3 = scmp.lt.s32.totalorder %s3454_s29, %s3454_s29 }
 0x213   :  { %v3046_v42 = vrot.slane %v3045_v29, 6  ;;  %p3622_p2 = scmp.ne.s32.totalorder %s3454_s29, %s3621_s20  ;;  %p3627_p4 = scmp.lt.s32.totalorder %s3621_s20, %s3621_s20 }
 0x214   :  { %3019 = vrot.lane.b32.xlu1 %v3017_v35, %s5163_s14 }
 0x215   :  { %v3047_v19 = vsel %vm5164_vm12, %v3046_v42, %v3045_v29  ;;  %v2062_v42 = vsel %vm423_vm6, %v2060_v2, %v2061_v15  ;;  %vm5175_vm6 = vcmask 834560   ;;  %vm5178_vm12 = vcmask 875520   ;;  %p3628_p5 = por %p3627_p4, %p3626_p3 }
 0x216   :  { %v3049_v22 = vmul.f32 %v4845_v59, %v3047_v19  ;;  %v3077_v0 = vpop.permute.xlu1 %3076 }
 0x217   :  { %v3078_v11 = vrot.slane %v3077_v0, 6  ;;  %p3629_p6 = pnand %p3628_p5, %p3622_p2 }
 0x218   :  { %3051 = vrot.lane.b32.xlu0 %v3049_v22, %s3736_s28  ;;  %v2220_v22 = vpop.permute.xlu0 %2219 }
 0x219   :  { %v3079_v21 = vsel %vm1499_vm8, %v3078_v11, %v3077_v0  ;;  %vm5167_vm8 = vcmask 793600   ;;  %v2221_v41 = vrot.slane %v2220_v22, 2 }
 0x21a   :  { %v3081_v14 = vmul.f32 %v4845_v59, %v3079_v21  ;;  %v3109_v48 = vpop.permute.xlu1 %3108  ;;  %v2125_v21 = vrot.slane %v2124_v46, 2 }
 0x21b   :  { %v3110_v43 = vrot.slane %v3109_v48, 6 }
 0x21c   :  { %3083 = vrot.lane.b32.xlu1 %v3081_v14, %s3737_s16  ;;  %v2252_v40 = vpop.permute.xlu0 %2251 }
 0x21d   :  { %v3111_v1 = vsel %vm1533_vm7, %v3110_v43, %v3109_v48  ;;  %vm5166_vm7 = vcmask 1022976  }
 0x21e   :  { %v3113_v7 = vmul.f32 %v4845_v59, %v3111_v1  ;;  %v3141_v63 = vpop.permute.xlu1 %3140  ;;  %v1966_v39 = vsel %vm5166_vm7, %v4868_v12, %v1965_v33  ;;  %v2126_v1 = vsel %vm5172_vm3, %v2124_v46, %v2125_v21  ;;  %vm5180_vm7 = vcmask 777216  }
 0x21f   :  { %v3142_v53 = vrot.slane %v3141_v63, 6  ;;  %v1968_v4 = vadd.f32 %v1966_v39, %v1936_v54  ;;  %v2222_v54 = vsel %vm5177_vm9, %v2220_v22, %v2221_v41  ;;  %vm5186_vm3 = vcmask 654336  }
 0x220   :  { %3115 = vrot.lane.b32.xlu0 %v3113_v7, %s3738_s1  ;;  %vm5191_vm9 = vcmask 613376  }
 0x221   :  { %v3143_v28 = vsel %vm1567_vm13, %v3142_v53, %v3141_v63  ;;  %v2000_v12 = vadd.f32 %v1998_v38, %v1968_v4  ;;  %vm5168_vm13 = vcmask 801792  }
 0x222   :  { %v3145_v44 = vmul.f32 %v4845_v59, %v3143_v28  ;;  %v3173_v31 = vpop.permute.xlu1 %3172  ;;  %v2189_v28 = vrot.slane %v2188_v55, 2 }
 0x223   :  { %v3174_v45 = vrot.slane %v3173_v31, 6  ;;  %v2032_v9 = vadd.f32 %v2030_v25, %v2000_v12 }
 0x224   :  { %3147 = vrot.lane.b32.xlu1 %v3145_v44, %s3739_s12  ;;  %v2190_v46 = vsel %vm5176_vm10, %v2188_v55, %v2189_v28  ;;  %vm5190_vm10 = vcmask 621568  }
 0x225   :  { %v3175_v13 = vsel %vm5165_vm11, %v3174_v45, %v3173_v31  ;;  %v2064_v0 = vadd.f32 %v2062_v42, %v2032_v9  ;;  %v2284_v31 = vpop.permute.xlu0 %2283  ;;  %vm5179_vm11 = vcmask 867328  }
 0x226   :  { %v3177_v49 = vmul.f32 %v4845_v59, %v3175_v13  ;;  %v3205_v8 = vpop.permute.xlu1 %3204  ;;  %v2285_v39 = vrot.slane %v2284_v31, 2 }
 0x227   :  { %v3206_v56 = vrot.slane %v3205_v8, 6  ;;  %v2096_v48 = vadd.f32 %v2094_v27, %v2064_v0 }
 0x228   :  { %3179 = vrot.lane.b32.xlu0 %v3177_v49, %s3740_s13  ;;  %v2253_v49 = vrot.slane %v2252_v40, 2  ;;  %v2286_v16 = vsel %vm5179_vm11, %v2284_v31, %v2285_v39  ;;  %vm5193_vm11 = vcmask 515072  }
 0x229   :  { %v3207_v61 = vsel %vm695_vm15, %v3206_v56, %v3205_v8  ;;  %v2128_v63 = vadd.f32 %v2126_v1, %v2096_v48  ;;  %v2316_v13 = vpop.permute.xlu0 %2315 }
 0x22a   :  { %v3209_v34 = vmul.f32 %v4845_v59, %v3207_v61  ;;  %v3237_v17 = vpop.permute.xlu1 %3236  ;;  %v2254_v56 = vsel %vm5178_vm12, %v2252_v40, %v2253_v49  ;;  %v2317_v4 = vrot.slane %v2316_v13, 2  ;;  %vm5192_vm12 = vcmask 523264  }
 0x22b   :  { %v3238_v32 = vrot.slane %v3237_v17, 6  ;;  %v2160_v44 = vadd.f32 %v2158_v60, %v2128_v63 }
 0x22c   :  { %3211 = vrot.lane.b32.xlu1 %v3209_v34, %s3685_s22  ;;  %s5171_s22 = smov 28  }
 0x22d   :  { %v3239_v10 = vsel %vm5167_vm8, %v3238_v32, %v3237_v17  ;;  %v2192_v33 = vadd.f32 %v2190_v46, %v2160_v44  ;;  %v2348_v61 = vpop.permute.xlu0 %2347  ;;  %v2318_v17 = vsel %vm695_vm15, %v2316_v13, %v2317_v4  ;;  %vm5181_vm8 = vcmask 769024  }
 0x22e   :  { %v3241_v62 = vmul.f32 %v4845_v59, %v3239_v10  ;;  %v3269_v20 = vpop.permute.xlu1 %3268  ;;  %v2349_v32 = vrot.slane %v2348_v61, 2  ;;  %vm5184_vm15 = vcmask 744448  }
 0x22f   :  { %v3270_v23 = vrot.slane %v3269_v20, 6  ;;  %v2224_v8 = vadd.f32 %v2222_v54, %v2192_v33 }
 0x230   :  { %3243 = vrot.lane.b32.xlu0 %v3241_v62, %s3741_s9  ;;  %v2350_v47 = vsel %vm5180_vm7, %v2348_v61, %v2349_v32  ;;  %vm5194_vm7 = vcmask 506880  }
 0x231   :  { %v3271_v37 = vsel %vm5168_vm13, %v3270_v23, %v3269_v20  ;;  %v2256_v36 = vadd.f32 %v2254_v56, %v2224_v8  ;;  %v2380_v34 = vpop.permute.xlu0 %2379  ;;  %vm5182_vm13 = vcmask 760832  }
 0x232   :  { %v3273_v24 = vmul.f32 %v4845_v59, %v3271_v37  ;;  %v3301_v35 = vpop.permute.xlu1 %3300  ;;  %v2381_v10 = vrot.slane %v2380_v34, 2 }
 0x233   :  { %v3302_v29 = vrot.slane %v3301_v35, 6 }
 0x234   :  { %3275 = vrot.lane.b32.xlu1 %v3273_v24, %s3742_s19  ;;  %v2382_v23 = vsel %vm5181_vm8, %v2380_v34, %v2381_v10  ;;  %vm5196_vm8 = vcmask 490496  }
 0x235   :  { %v3303_v19 = vsel %vm5169_vm14, %v3302_v29, %v3301_v35  ;;  %v2412_v62 = vpop.permute.xlu0 %2411  ;;  %vm5183_vm14 = vcmask 752640  }
 0x236   :  { %v3305_v11 = vmul.f32 %v4845_v59, %v3303_v19  ;;  %v3333_v26 = vpop.permute.xlu1 %3332  ;;  %v2413_v55 = vrot.slane %v2412_v62, 2 }
 0x237   :  { %v3334_v18 = vrot.slane %v3333_v26, 6 }
 0x238   :  { %3307 = vrot.lane.b32.xlu0 %v3305_v11, %s3743_s15  ;;  %v2414_v9 = vsel %vm5182_vm13, %v2412_v62, %v2413_v55  ;;  %vm5197_vm13 = vcmask 482304  }
 0x239   :  { %v3335_v14 = vsel %vm5170_vm0, %v3334_v18, %v3333_v26  ;;  %v2476_v37 = vpop.permute.xlu0 %2475  ;;  %vm5185_vm0 = vcmask 736256  }
 0x23a   :  { %v3337_v43 = vmul.f32 %v4845_v59, %v3335_v14  ;;  %v3365_v2 = vpop.permute.xlu1 %3364  ;;  %v2477_v42 = vrot.slane %v2476_v37, 2 }
 0x23b   :  { %v3366_v52 = vrot.slane %v3365_v2, 6 }
 0x23c   :  { %3339 = vrot.lane.b32.xlu1 %v3337_v43, %s5171_s22  ;;  %v2478_v22 = vsel %vm5184_vm15, %v2476_v37, %v2477_v42  ;;  %vm5199_vm15 = vcmask 392192  }
 0x23d   :  { %v3367_v7 = vsel %vm5173_vm5, %v3366_v52, %v3365_v2  ;;  %v2540_v0 = vpop.permute.xlu0 %2539  ;;  %vm5187_vm5 = vcmask 646144  }
 0x23e   :  { %v3369_v53 = vmul.f32 %v4845_v59, %v3367_v7  ;;  %v3397_v50 = vpop.permute.xlu1 %3396  ;;  %v2541_v27 = vrot.slane %v2540_v0, 2 }
 0x23f   :  { %v3398_v51 = vrot.slane %v3397_v50, 6 }
 0x240   :  { %3371 = vrot.lane.b32.xlu0 %v3369_v53, %s3745_s2  ;;  %v2542_v48 = vsel %vm5186_vm3, %v2540_v0, %v2541_v27  ;;  %vm5201_vm3 = vcmask 375808  }
 0x241   :  { %v3399_v58 = vsel %vm5175_vm6, %v3398_v51, %v3397_v50  ;;  %v2604_v43 = vpop.permute.xlu0 %2603  ;;  %vm5189_vm6 = vcmask 629760  }
 0x242   :  { %v3401_v45 = vmul.f32 %v4845_v59, %v3399_v58  ;;  %v2288_v59 = vadd.f32 %v2286_v16, %v2256_v36  ;;  %v2444_v20 = vpop.permute.xlu1 %2443  ;;  %v2605_v1 = vrot.slane %v2604_v43, 2 }
 0x243   :  { %v2445_v25 = vrot.slane %v2444_v20, 2 }
 0x244   :  { %3403 = vrot.lane.b32.xlu1 %v3401_v45, %s3746_s17  ;;  %v2320_v38 = vadd.f32 %v2318_v17, %v2288_v59  ;;  %v2606_v63 = vsel %vm5188_vm2, %v2604_v43, %v2605_v1  ;;  %vm5203_vm2 = vcmask 359424  }
 0x245   :  { %v2446_v24 = vsel %vm5183_vm14, %v2444_v20, %v2445_v25  ;;  %v2668_v53 = vpop.permute.xlu0 %2667  ;;  %vm5198_vm14 = vcmask 474112  }
 0x246   :  { %v2352_v12 = vadd.f32 %v2350_v47, %v2320_v38  ;;  %v2508_v29 = vpop.permute.xlu1 %2507  ;;  %v2669_v28 = vrot.slane %v2668_v53, 2 }
 0x247   :  { %v2509_v19 = vrot.slane %v2508_v29, 2 }
 0x248   :  { %v2384_v15 = vadd.f32 %v2382_v23, %v2352_v12  ;;  %v2670_v31 = vsel %vm5190_vm10, %v2668_v53, %v2669_v28  ;;  %vm5205_vm10 = vcmask 343040  }
 0x249   :  { %v2510_v26 = vsel %vm5185_vm0, %v2508_v29, %v2509_v19  ;;  %v2732_v45 = vpop.permute.xlu0 %2731  ;;  %vm5200_vm0 = vcmask 384000  }
 0x24a   :  { %v2416_v35 = vadd.f32 %v2414_v9, %v2384_v15  ;;  %v2572_v18 = vpop.permute.xlu1 %2571  ;;  %v2733_v13 = vrot.slane %v2732_v45, 2 }
 0x24b   :  { %v2573_v14 = vrot.slane %v2572_v18, 2 }
 0x24c   :  { %v2448_v57 = vadd.f32 %v2446_v24, %v2416_v35  ;;  %v2734_v8 = vsel %vm1136_vm1, %v2732_v45, %v2733_v13  ;;  %vm5195_vm1 = vcmask 498688  }
 0x24d   :  { %v2574_v52 = vsel %vm5187_vm5, %v2572_v18, %v2573_v14  ;;  %v2796_v56 = vpop.permute.xlu0 %2795  ;;  %vm5202_vm5 = vcmask 367616  }
 0x24e   :  { %v2480_v11 = vadd.f32 %v2478_v22, %v2448_v57  ;;  %v2636_v40 = vpop.permute.xlu1 %2635  ;;  %v2797_v16 = vrot.slane %v2796_v56, 2 }
 0x24f   :  { %v2637_v7 = vrot.slane %v2636_v40, 2 }
 0x250   :  { %v2512_v21 = vadd.f32 %v2510_v26, %v2480_v11  ;;  %v2798_v17 = vsel %vm5193_vm11, %v2796_v56, %v2797_v16  ;;  %vm5208_vm11 = vcmask 244736  }
 0x251   :  { %v2638_v51 = vsel %vm5189_vm6, %v2636_v40, %v2637_v7  ;;  %v2860_v34 = vpop.permute.xlu0 %2859  ;;  %vm5204_vm6 = vcmask 351232  }
 0x252   :  { %v2544_v2 = vadd.f32 %v2542_v48, %v2512_v21  ;;  %v2700_v60 = vpop.permute.xlu1 %2699  ;;  %v2861_v12 = vrot.slane %v2860_v34, 2 }
 0x253   :  { %v2701_v44 = vrot.slane %v2700_v60, 2 }
 0x254   :  { %v2576_v30 = vadd.f32 %v2574_v52, %v2544_v2  ;;  %v2862_v15 = vsel %vm5195_vm1, %v2860_v34, %v2861_v12  ;;  %vm5210_vm1 = vcmask 220160  }
 0x255   :  { %v2702_v41 = vsel %vm5191_vm9, %v2700_v60, %v2701_v44  ;;  %vm5206_vm9 = vcmask 261120  }
 0x256   :  { %v2608_v50 = vadd.f32 %v2606_v63, %v2576_v30  ;;  %v2764_v33 = vpop.permute.xlu1 %2763 }
 0x257   :  { %v2765_v49 = vrot.slane %v2764_v33, 2 }
 0x258   :  { %v2640_v58 = vadd.f32 %v2638_v51, %v2608_v50 }
 0x259   :  { %v2766_v36 = vsel %vm5192_vm12, %v2764_v33, %v2765_v49  ;;  %vm5207_vm12 = vcmask 252928  }
 0x25a   :  { %v2672_v46 = vadd.f32 %v2670_v31, %v2640_v58  ;;  %v2828_v61 = vpop.permute.xlu1 %2827 }
 0x25b   :  { %v2829_v59 = vrot.slane %v2828_v61, 2 }
 0x25c   :  { %v2704_v54 = vadd.f32 %v2702_v41, %v2672_v46 }
 0x25d   :  { %v2830_v47 = vsel %vm5194_vm7, %v2828_v61, %v2829_v59  ;;  %vm5209_vm7 = vcmask 228352  }
 0x25e   :  { %v2736_v39 = vadd.f32 %v2734_v8, %v2704_v54 }
 0x260   :  { %v2768_v4 = vadd.f32 %v2766_v36, %v2736_v39 }
 0x262   :  { %v2800_v32 = vadd.f32 %v2798_v17, %v2768_v4 }
 0x264   :  { %v2832_v20 = vadd.f32 %v2830_v47, %v2800_v32 }
 0x266   :  { %v2864_v24 = vadd.f32 %v2862_v15, %v2832_v20 }
 0x276   :  { %v2892_v38 = vpop.permute.xlu1 %2891 }
 0x277   :  { %v2893_v62 = vrot.slane %v2892_v38, 2 }
 0x279   :  { %v2894_v37 = vsel %vm5196_vm8, %v2892_v38, %v2893_v62  ;;  %vm5211_vm8 = vcmask 211968  }
 0x27a   :  { %v2924_v10 = vpop.permute.xlu0 %2923  ;;  %v2896_v57 = vadd.f32 %v2894_v37, %v2864_v24 }
 0x27b   :  { %v2925_v55 = vrot.slane %v2924_v10, 2 }
 0x27d   :  { %v2926_v29 = vsel %vm5197_vm13, %v2924_v10, %v2925_v55 }
 0x27e   :  { %v2956_v23 = vpop.permute.xlu1 %2955  ;;  %v2928_v11 = vadd.f32 %v2926_v29, %v2896_v57 }
 0x27f   :  { %v2957_v9 = vrot.slane %v2956_v23, 2 }
 0x281   :  { %v2958_v22 = vsel %vm5198_vm14, %v2956_v23, %v2957_v9 }
 0x282   :  { %v2988_v25 = vpop.permute.xlu0 %2987  ;;  %v2960_v21 = vadd.f32 %v2958_v22, %v2928_v11 }
 0x283   :  { %v2989_v42 = vrot.slane %v2988_v25, 2 }
 0x285   :  { %v2990_v18 = vsel %vm5199_vm15, %v2988_v25, %v2989_v42  ;;  %v3747_v42 = vmov 1966171168  }
 0x286   :  { %v3020_v35 = vpop.permute.xlu1 %3019  ;;  %v2992_v2 = vadd.f32 %v2990_v18, %v2960_v21  ;;  %v3417_v57 = vunpack.c.l.s4 %v3747_v42 }
 0x287   :  { %v3021_v0 = vrot.slane %v3020_v35, 2 }
 0x289   :  { %v3022_v48 = vsel %vm5200_vm0, %v3020_v35, %v3021_v0 }
 0x28a   :  { %v3052_v19 = vpop.permute.xlu0 %3051  ;;  %v3024_v30 = vadd.f32 %v3022_v48, %v2992_v2  ;;  %v3575_v2 = vld [vmem:[#allocation5] sm:$0xff] }
 0x28b   :  { %v3053_v27 = vrot.slane %v3052_v19, 2 }
 0x28d   :  { %v3054_v40 = vsel %vm5201_vm3, %v3052_v19, %v3053_v27  ;;  %v3418_v19 = vunpack.c.0.s8 %v3417_v57 }
 0x28e   :  { %v3084_v26 = vpop.permute.xlu1 %3083  ;;  %v3056_v50 = vadd.f32 %v3054_v40, %v3024_v30  ;;  %v3576_v40 = vld [vmem:[#allocation5 + $0x8] sm:$0xff] }
 0x28f   :  { %v3085_v43 = vrot.slane %v3084_v26, 2  ;;  %v3421_v22 = vsub.s32 %v3418_v19, %v3797_v3 }
 0x291   :  { %v3086_v63 = vsel %vm5202_vm5, %v3084_v26, %v3085_v43 }
 0x292   :  { %v3116_v14 = vpop.permute.xlu0 %3115  ;;  %v3088_v58 = vadd.f32 %v3086_v63, %v3056_v50 }
 0x293   :  { %v3117_v1 = vrot.slane %v3116_v14, 2 }
 0x295   :  { %v3118_v60 = vsel %vm5203_vm2, %v3116_v14, %v3117_v1 }
 0x296   :  { %v3148_v52 = vpop.permute.xlu1 %3147  ;;  %v3120_v46 = vadd.f32 %v3118_v60, %v3088_v58 }
 0x297   :  { %v3149_v53 = vrot.slane %v3148_v52, 2 }
 0x299   :  { %v3150_v31 = vsel %vm5204_vm6, %v3148_v52, %v3149_v53 }
 0x29a   :  { %v3180_v7 = vpop.permute.xlu0 %3179  ;;  %v3152_v54 = vadd.f32 %v3150_v31, %v3120_v46 }
 0x29b   :  { %v3181_v28 = vrot.slane %v3180_v7, 2 }
 0x29d   :  { %v3182_v33 = vsel %vm5205_vm10, %v3180_v7, %v3181_v28 }
 0x29e   :  { %v3212_v51 = vpop.permute.xlu1 %3211  ;;  %v3184_v39 = vadd.f32 %v3182_v33, %v3152_v54 }
 0x29f   :  { %v3213_v45 = vrot.slane %v3212_v51, 2 }
 0x2a1   :  { %v3214_v8 = vsel %vm5206_vm9, %v3212_v51, %v3213_v45 }
 0x2a2   :  { %v3244_v44 = vpop.permute.xlu0 %3243  ;;  %v3216_v16 = vadd.f32 %v3214_v8, %v3184_v39 }
 0x2a3   :  { %v3245_v13 = vrot.slane %v3244_v44, 2 }
 0x2a5   :  { %v3246_v36 = vsel %vm5207_vm12, %v3244_v44, %v3245_v13 }
 0x2a6   :  { %v3276_v41 = vpop.permute.xlu1 %3275  ;;  %v3248_v17 = vadd.f32 %v3246_v36, %v3216_v16 }
 0x2a7   :  { %v3277_v56 = vrot.slane %v3276_v41, 2 }
 0x2a9   :  { %v3278_v59 = vsel %vm5208_vm11, %v3276_v41, %v3277_v56 }
 0x2aa   :  { %v3308_v49 = vpop.permute.xlu0 %3307  ;;  %v3280_v38 = vadd.f32 %v3278_v59, %v3248_v17 }
 0x2ab   :  { %v3309_v61 = vrot.slane %v3308_v49, 2 }
 0x2ad   :  { %v3310_v32 = vsel %vm1743_vm4, %v3308_v49, %v3309_v61 }
 0x2ae   :  { %v3340_v4 = vpop.permute.xlu1 %3339  ;;  %v3312_v62 = vadd.f32 %v3310_v32, %v3280_v38 }
 0x2af   :  { %v3341_v34 = vrot.slane %v3340_v4, 2 }
 0x2b1   :  { %v3342_v10 = vsel %vm5209_vm7, %v3340_v4, %v3341_v34 }
 0x2b2   :  { %v3372_v47 = vpop.permute.xlu0 %3371  ;;  %v3344_v23 = vadd.f32 %v3342_v10, %v3312_v62 }
 0x2b3   :  { %v3373_v12 = vrot.slane %v3372_v47, 2 }
 0x2b5   :  { %v3374_v20 = vsel %vm5210_vm1, %v3372_v47, %v3373_v12 }
 0x2b6   :  { %v3404_v55 = vpop.permute.xlu1 %3403  ;;  %v3376_v15 = vadd.f32 %v3374_v20, %v3344_v23 }
 0x2b7   :  { %v3405_v25 = vrot.slane %v3404_v55, 2 }
 0x2b9   :  { %v3406_v37 = vsel %vm5211_vm8, %v3404_v55, %v3405_v25 }
 0x2ba   :  { %v3408_v9 = vadd.f32 %v3406_v37, %v3376_v15 }
 0x2bc   :  { %v3466_v24 = vmul.f32 -1.442695, %v3408_v9 }
 0x2be   :  { %3569 = vpow2.f32 %v3466_v24 }
 0x2c8   :  { %v3570_v35 = vpop.eup %3569 }
 0x2c9   :  { %v3412_v29 = vadd.f32 1.0, %v3570_v35 }
 0x2cb   :  { %3571 = vrcp.f32 %v3412_v29 }
 0x2d5   :  { %v3572_v0 = vpop.eup %3571 }
 0x2d6   :  { %v3422_v11 = vrot.slane %v3572_v0, %v3421_v22 }
 0x2d8   :  { %v3423_v26 = vcombine.high %v3422_v11, %v3422_v11  ;;  %v3427_v18 = vrot.slane %v3422_v11, %v3800_v5  ;;  %v3431_v27 = vrot.slane %v3422_v11, %v3803_v6 }
 0x2da   :  { %v3435_v21 = vrot.slane %v3423_v26, %v3800_v5  ;;  %v3439_v14 = vrot.slane %v3423_v26, %v3803_v6  ;;  %v3440_v48 = vcombine.low %v3427_v18, %v3431_v27 }
 0x2dc   :  { %v3441_v43 = vcombine.low %v3435_v21, %v3439_v14  ;;  %v3444_v52 = vmul.f32 %v3575_v2, %v3440_v48 }
 0x2de   :  { %v3445_v1 = vmul.f32 %v3576_v40, %v3441_v43  ;;  %3446 = vst [vmem:[#allocation10] sm:$0xff] %v3444_v52 }
 0x2e0   :  { %3447 = vst [vmem:[#allocation10 + $0x8] sm:$0xff] %v3445_v1 }
 0x2e1   :  { %3632 = shalt.err (!%p3629_p6)
}
 0x2e2   :  { %s3633_s16 = scalar_lea.hbm %s5005_s3, 256 }
 0x2e3   :  { %p3634_p7 = scmp.ne.s32.totalorder %s5005_s3, %s3633_s16  ;;  %p3637_p8 = scmp.lt.u32.totalorder %s3633_s16, %s5005_s3 }
 0x2e5   :  { %p3639_p9 = pnand %p3637_p8, %p3634_p7 }
 0x2e7   :  { %3642 = shalt.err (!%p3639_p9)
}
 0x2e8   :  { %s5212_s19 = smov 8   ;;  %s5213_s15 = smov 128  }
 0x2e9   :  { %3459 = dma.vmem_to_hbm [thread:$0]  %s3454_s29, 256, %s5005_s3, [#allocation7], %s5213_s15, %s5213_s15, %s5212_s19  }
 0x2ea   :  { %3647 = dma.done.wait [#allocation7], 256  }
 0x2eb   :  { %3648 = vsyncadd [#allocation7], 4294967040 }
 0x2ec   :  { %3463 = vsyncpa [#allocation6], 1 }
 0x2ed   :  { %3464 = vsyncpa [#allocation9], 1 }
 0x2ee   :  { %3465 = vsyncpa [#allocation7], 1 }

</bundles_post_ra>
